<compile_context>
chip_gen: v6e
topology: v6e:2x2x1
jax: 0.10.0
libtpu: 0.0.40
codegen_flags: <defaults>
</compile_context>

<pallas_src>
import functools

import jax
import jax.numpy as jnp
import numpy as np
from jax.experimental import pallas as pl
from jax.experimental.pallas import tpu as pltpu

TB_MAX = 128   # max images per grid step (multiple of 16)
LANE = 128


def _round_up(x, m):
    return (x + m - 1) // m * m


# ----------------------------------------------------------------------------
# Fused whole-network kernel
# ----------------------------------------------------------------------------
def _convnet_kernel(x_ref,        # (28, TB, 28)   bf16 : rows = input height
                    w1_ref,       # (5, 28, 2*N1)  bf16 : conv1 banded, even||odd
                    b1_ref,       # (1, N1)        f32
                    w2_ref,       # (5, N1, 2*N2)  bf16 : conv2 banded, even||odd
                    b2_ref,       # (1, N2)        f32
                    wfc1_ref,     # (4*N2, NH)     bf16
                    bfc1_ref,     # (1, NH)        f32
                    wfc2_ref,     # (NH, NO)       bf16
                    bfc2_ref,     # (1, NO)        f32  (pad lanes = -1e30)
                    out_ref,      # (TB, NO)       f32
                    fc1_in):      # (TB, 4*N2)     bf16 scratch (fc1 input slab)
    tb = x_ref.shape[1]
    n1 = w1_ref.shape[2] // 2
    n2 = w2_ref.shape[2] // 2

    # ---------------- conv1 + fused 2x2 max-pool + bias + relu -------------
    # Rows ordered (input_row, image); layout-free collapse (tb % 16 == 0).
    x2d = x_ref[...].reshape(28 * tb, 28)                      # bf16
    acc = None
    for di in range(5):
        xs = x2d[di * tb:(di + 24) * tb, :]                    # (24*tb, 28)
        p = jnp.dot(xs, w1_ref[di], preferred_element_type=jnp.float32)
        acc = p if acc is None else acc + p                    # (24*tb, 2*n1)
    wmax = jnp.maximum(acc[:, :n1], acc[:, n1:])               # width pool
    wmax = wmax.reshape(12, 2, tb, n1)
    p1 = jnp.maximum(wmax[:, 0], wmax[:, 1])                   # height pool
    p1 = jnp.maximum(p1 + b1_ref[...], 0.0)                    # bias + relu
    p1 = p1.astype(jnp.bfloat16).reshape(12 * tb, n1)          # cast ONCE

    # ---------------- conv2 + fused 2x2 max-pool + bias + relu -------------
    acc = None
    for di in range(5):
        ps = p1[di * tb:(di + 8) * tb, :]                      # (8*tb, n1)
        p = jnp.dot(ps, w2_ref[di], preferred_element_type=jnp.float32)
        acc = p if acc is None else acc + p                    # (8*tb, 2*n2)
    wmax = jnp.maximum(acc[:, :n2], acc[:, n2:])               # width pool
    wmax = wmax.reshape(4, 2, tb, n2)
    p2 = jnp.maximum(wmax[:, 0], wmax[:, 1])                   # height pool
    p2 = jnp.maximum(p2 + b2_ref[...], 0.0).astype(jnp.bfloat16)  # (4, tb, n2)
    # TODO(synk): Dropout2d(p=0.25) is identity here (inference mode only).

    # ---------------- fc1 as ONE matmul over a lane-concatenated slab ------
    for t in range(4):                       # 128-lane-aligned stores
        fc1_in[:, t * n2:(t + 1) * n2] = p2[t]
    h1 = jnp.dot(fc1_in[...], wfc1_ref[...],
                 preferred_element_type=jnp.float32) + bfc1_ref[...]   # (tb, NH)

    # ---------------- fc2 + log_softmax ------------------------------------
    # Padded logit lanes carry -1e30 bias so they vanish in the softmax.
    logits = jnp.dot(h1.astype(jnp.bfloat16), wfc2_ref[...],
                     preferred_element_type=jnp.float32) + bfc2_ref[...]
    m = jnp.max(logits, axis=-1, keepdims=True)
    s = logits - m
    lse = jnp.log(jnp.sum(jnp.exp(s), axis=-1, keepdims=True))
    out_ref[...] = (s - lse).astype(out_ref.dtype)


# ----------------------------------------------------------------------------
# One-time weight preparation (hoisted out of the jitted forward)
# ----------------------------------------------------------------------------
def prepare_params(params, wdtype=jnp.bfloat16):
    """Build parity-fused banded conv matrices, pad all feature widths to 128
    lanes, and fold the PyTorch NCHW flatten permutation into fc1."""
    w1, b1, w2, b2, fc1_w, fc1_b, fc2_w, fc2_b = [
        np.asarray(p, np.float32) for p in params
    ]
    C1 = w1.shape[0]            # 10
    C2 = w2.shape[0]            # 20
    NH = fc1_w.shape[0]         # 100
    NO = fc2_w.shape[0]         # 10

    n1 = _round_up(12 * C1, LANE)   # 128
    n2 = _round_up(4 * C2, LANE)    # 128
    nh = _round_up(NH, LANE)        # 128
    no = _round_up(NO, LANE)        # 128

    # conv1: contract input width (28); even half in lanes [0,n1), odd half in
    # [n1, 2*n1) so the width max-pool is a max of two 128-aligned lane slices.
    w1cat = np.zeros((5, 28, 2 * n1), np.float32)
    for di in range(5):
        for wt in range(12):
            col = wt * C1
            for dj in range(5):
                w1cat[di, 2 * wt + dj, col:col + C1] = w1[:, 0, di, dj]
                w1cat[di, 2 * wt + 1 + dj, n1 + col:n1 + col + C1] = w1[:, 0, di, dj]
    b1row = np.zeros((1, n1), np.float32)
    b1row[0, :12 * C1] = np.tile(b1, 12)

    # conv2: input columns (w_in*C1 + c_in) -> even/odd output columns.
    w2cat = np.zeros((5, n1, 2 * n2), np.float32)
    for di in range(5):
        for ut in range(4):
            for dj in range(5):
                for c in range(C1):
                    w2cat[di, (2 * ut + dj) * C1 + c,
                          ut * C2:(ut + 1) * C2] = w2[:, c, di, dj]
                    w2cat[di, (2 * ut + 1 + dj) * C1 + c,
                          n2 + ut * C2:n2 + (ut + 1) * C2] = w2[:, c, di, dj]
    b2row = np.zeros((1, n2), np.float32)
    b2row[0, :4 * C2] = np.tile(b2, 4)

    # fc1: single matmul over the (tb, 4*n2) slab where height group h sits at
    # lanes [h*n2, (h+1)*n2) with column w*C2 + c.  PyTorch flattens (B,C2,4,4)
    # as f = c*16 + h*4 + w.
    wfc1 = np.zeros((4 * n2, nh), np.float32)
    for h in range(4):
        for w in range(4):
            for c in range(C2):
                wfc1[h * n2 + w * C2 + c, :NH] = fc1_w[:, c * 16 + h * 4 + w]
    bfc1 = np.zeros((1, nh), np.float32)
    bfc1[0, :NH] = fc1_b

    # fc2: pad logits to 128 lanes; pad lanes get zero weights and -1e30 bias
    # so the in-kernel log_softmax ignores them; wrapper slices [:, :NO].
    wfc2 = np.zeros((nh, no), np.float32)
    wfc2[:NH, :NO] = fc2_w.T
    bfc2 = np.full((1, no), -1e30, np.float32)
    bfc2[0, :NO] = fc2_b

    return (jnp.asarray(w1cat, wdtype), jnp.asarray(b1row, jnp.float32),
            jnp.asarray(w2cat, wdtype), jnp.asarray(b2row, jnp.float32),
            jnp.asarray(wfc1, wdtype), jnp.asarray(bfc1, jnp.float32),
            jnp.asarray(wfc2, wdtype), jnp.asarray(bfc2, jnp.float32))


# ----------------------------------------------------------------------------
# Forward pass (single fused pallas_call, grid over batch tiles)
# ----------------------------------------------------------------------------
@functools.partial(jax.jit, static_argnames=("num_classes", "tb_max"))
def convnet_forward(x_nchw, prep, num_classes=10, tb_max=TB_MAX):
    (w1cat, b1r, w2cat, b2r, wfc1, bfc1, wfc2, bfc2) = prep
    B = x_nchw.shape[0]
    tb = min(tb_max, _round_up(B, 16))       # batch tile (multiple of 16)
    Bp = _round_up(B, tb)

    x = x_nchw.reshape(B, 28, 28).astype(jnp.bfloat16)   # bf16 halves traffic
    if Bp != B:
        x = jnp.pad(x, ((0, Bp - B), (0, 0), (0, 0)))
    xt = jnp.transpose(x, (1, 0, 2))                     # (28, Bp, 28) bf16

    n2 = w2cat.shape[2] // 2
    no = wfc2.shape[1]

    out = pl.pallas_call(
        _convnet_kernel,
        out_shape=jax.ShapeDtypeStruct((Bp, no), jnp.float32),
        grid=(Bp // tb,),
        in_specs=[
            pl.BlockSpec((28, tb, 28), lambda i: (0, i, 0)),   # input tile
            pl.BlockSpec(w1cat.shape, lambda i: (0, 0, 0)),
            pl.BlockSpec(b1r.shape, lambda i: (0, 0)),
            pl.BlockSpec(w2cat.shape, lambda i: (0, 0, 0)),
            pl.BlockSpec(b2r.shape, lambda i: (0, 0)),
            pl.BlockSpec(wfc1.shape, lambda i: (0, 0)),
            pl.BlockSpec(bfc1.shape, lambda i: (0, 0)),
            pl.BlockSpec(wfc2.shape, lambda i: (0, 0)),
            pl.BlockSpec(bfc2.shape, lambda i: (0, 0)),
        ],
        out_specs=pl.BlockSpec((tb, no), lambda i: (i, 0)),    # lane-dense out
        scratch_shapes=[pltpu.VMEM((tb, 4 * n2), jnp.bfloat16)],
        compiler_params=pltpu.CompilerParams(
            dimension_semantics=("parallel",),
            vmem_limit_bytes=32 * 1024 * 1024),
    )(xt, w1cat, b1r, w2cat, b2r, wfc1, bfc1, wfc2, bfc2)
    return out[:B, :num_classes]


# ----------------------------------------------------------------------------
# Parameter init (PyTorch-style) and a pure-JAX reference for validation
# ----------------------------------------------------------------------------
def init_params(key, num_channels=10):
    ks = jax.random.split(key, 8)

    def u(k, shape, fan_in):
        bound = 1.0 / jnp.sqrt(jnp.float32(fan_in))
        return jax.random.uniform(k, shape, jnp.float32, -bound, bound)

    w1 = u(ks[0], (num_channels, 1, 5, 5), 1 * 5 * 5)
    b1 = u(ks[1], (num_channels,), 1 * 5 * 5)
    w2 = u(ks[2], (num_channels * 2, num_channels, 5, 5), num_channels * 5 * 5)
    b2 = u(ks[3], (num_channels * 2,), num_channels * 5 * 5)
    fc1_w = u(ks[4], (100, num_channels * 32), num_channels * 32)
    fc1_b = u(ks[5], (100,), num_channels * 32)
    fc2_w = u(ks[6], (10, 100), 100)
    fc2_b = u(ks[7], (10,), 100)
    return (w1, b1, w2, b2, fc1_w, fc1_b, fc2_w, fc2_b)


def reference_forward(x_nchw, params):
    w1, b1, w2, b2, fc1_w, fc1_b, fc2_w, fc2_b = params

    def conv(x, w, b):
        y = jax.lax.conv_general_dilated(
            x, w, (1, 1), "VALID", dimension_numbers=("NCHW", "OIHW", "NCHW"))
        return y + b[None, :, None, None]

    def pool(x):
        B, C, H, W = x.shape
        return x.reshape(B, C, H // 2, 2, W // 2, 2).max(axis=(3, 5))

    x = jax.nn.relu(pool(conv(x_nchw, w1, b1)))
    x = jax.nn.relu(pool(conv(x, w2, b2)))
    x = x.reshape(x.shape[0], -1)
    x = x @ fc1_w.T + fc1_b
    x = x @ fc2_w.T + fc2_b
    return jax.nn.log_softmax(x, axis=-1)


if __name__ == "__main__":
    key = jax.random.PRNGKey(0)
    kp, kx = jax.random.split(key)
    params = init_params(kp, num_channels=10)
    prep = prepare_params(params)

    # MNIST-shaped input (28x28 is fixed by fc1's 10*32 = 320 features).
    # B=12 is not a multiple of the batch tile, exercising the padding path.
    B = 12
    x = jax.random.normal(kx, (B, 1, 28, 28), jnp.float32)

    out = jax.block_until_ready(convnet_forward(x, prep))
    assert out.shape == (B, 10)
    # log_softmax rows exponentiate-and-sum to ~1
    assert jnp.allclose(jnp.exp(out).sum(axis=-1), 1.0, atol=1e-4)
    # compare against a pure-JAX/XLA f32 reference (bf16 MXU inputs => loose tol)
    ref = reference_forward(x, params)
    err = float(jnp.max(jnp.abs(out - ref)))
    assert err < 0.25, f"mismatch vs reference: {err}"
    print("KERNEL_OK")
</pallas_src>

<mosaic_0001>
module attributes {stable_mosaic.version = 11 : i64} {
  func.func @_convnet_kernel(%arg0: i32, %arg1: memref<28x16x28xbf16, #tpu.memory_space<vmem>>, %arg2: memref<5x28x256xbf16, #tpu.memory_space<vmem>>, %arg3: memref<1x128xf32, #tpu.memory_space<vmem>>, %arg4: memref<5x128x256xbf16, #tpu.memory_space<vmem>>, %arg5: memref<1x128xf32, #tpu.memory_space<vmem>>, %arg6: memref<512x128xbf16, #tpu.memory_space<vmem>>, %arg7: memref<1x128xf32, #tpu.memory_space<vmem>>, %arg8: memref<128x128xbf16, #tpu.memory_space<vmem>>, %arg9: memref<1x128xf32, #tpu.memory_space<vmem>>, %arg10: memref<16x128xf32, #tpu.memory_space<vmem>>, %arg11: memref<16x512xbf16, #tpu.memory_space<vmem>>) attributes {dimension_semantics = [#tpu.dimension_semantics<parallel>], iteration_bounds = array<i64: 1>, scalar_prefetch = 0 : i64, scratch_operands = 1 : i64, tpu.core_type = #tpu.core_type<tc>, window_params = [{transform_indices = @transform_0, window_bounds = array<i64: 28, 16, 28>}, {pipeline_mode = #tpu.pipeline_mode<synchronous>, transform_indices = @transform_1, window_bounds = array<i64: 5, 28, 256>}, {pipeline_mode = #tpu.pipeline_mode<synchronous>, transform_indices = @transform_2, window_bounds = array<i64: 1, 128>}, {pipeline_mode = #tpu.pipeline_mode<synchronous>, transform_indices = @transform_3, window_bounds = array<i64: 5, 128, 256>}, {pipeline_mode = #tpu.pipeline_mode<synchronous>, transform_indices = @transform_4, window_bounds = array<i64: 1, 128>}, {pipeline_mode = #tpu.pipeline_mode<synchronous>, transform_indices = @transform_5, window_bounds = array<i64: 512, 128>}, {pipeline_mode = #tpu.pipeline_mode<synchronous>, transform_indices = @transform_6, window_bounds = array<i64: 1, 128>}, {pipeline_mode = #tpu.pipeline_mode<synchronous>, transform_indices = @transform_7, window_bounds = array<i64: 128, 128>}, {pipeline_mode = #tpu.pipeline_mode<synchronous>, transform_indices = @transform_8, window_bounds = array<i64: 1, 128>}, {transform_indices = @transform_9, window_bounds = array<i64: 16, 128>}]} {
    %c0 = arith.constant 0 : index
    %c0_0 = arith.constant 0 : index
    %c0_1 = arith.constant 0 : index
    %0 = vector.load %arg1[%c0, %c0_0, %c0_1] : memref<28x16x28xbf16, #tpu.memory_space<vmem>>, vector<28x16x28xbf16>
    %1 = vector.shape_cast %0 : vector<28x16x28xbf16> to vector<448x28xbf16>
    %2 = vector.extract_strided_slice %1 {offsets = [0, 0], sizes = [384, 28], strides = [1, 1]} : vector<448x28xbf16> to vector<384x28xbf16>
    %c0_2 = arith.constant 0 : index
    %c0_3 = arith.constant 0 : index
    %c0_4 = arith.constant 0 : index
    %3 = vector.load %arg2[%c0_2, %c0_3, %c0_4] : memref<5x28x256xbf16, #tpu.memory_space<vmem>>, vector<1x28x256xbf16>
    %4 = vector.shape_cast %3 : vector<1x28x256xbf16> to vector<28x256xbf16>
    %cst = arith.constant dense<0.000000e+00> : vector<384x256xf32>
    %5 = tpu.matmul %2, %4, %cst {dimension_numbers = #tpu.dot_dimension_numbers<[1], [0], [0], [1], [0, 0, 1, 1], [], []>} : vector<384x28xbf16>, vector<28x256xbf16>, vector<384x256xf32> -> vector<384x256xf32>
    %6 = vector.extract_strided_slice %1 {offsets = [16, 0], sizes = [384, 28], strides = [1, 1]} : vector<448x28xbf16> to vector<384x28xbf16>
    %c1 = arith.constant 1 : index
    %c0_5 = arith.constant 0 : index
    %c0_6 = arith.constant 0 : index
    %7 = vector.load %arg2[%c1, %c0_5, %c0_6] : memref<5x28x256xbf16, #tpu.memory_space<vmem>>, vector<1x28x256xbf16>
    %8 = vector.shape_cast %7 : vector<1x28x256xbf16> to vector<28x256xbf16>
    %cst_7 = arith.constant dense<0.000000e+00> : vector<384x256xf32>
    %9 = tpu.matmul %6, %8, %cst_7 {dimension_numbers = #tpu.dot_dimension_numbers<[1], [0], [0], [1], [0, 0, 1, 1], [], []>} : vector<384x28xbf16>, vector<28x256xbf16>, vector<384x256xf32> -> vector<384x256xf32>
    %10 = arith.addf %5, %9 : vector<384x256xf32>
    %11 = vector.extract_strided_slice %1 {offsets = [32, 0], sizes = [384, 28], strides = [1, 1]} : vector<448x28xbf16> to vector<384x28xbf16>
    %c2 = arith.constant 2 : index
    %c0_8 = arith.constant 0 : index
    %c0_9 = arith.constant 0 : index
    %12 = vector.load %arg2[%c2, %c0_8, %c0_9] : memref<5x28x256xbf16, #tpu.memory_space<vmem>>, vector<1x28x256xbf16>
    %13 = vector.shape_cast %12 : vector<1x28x256xbf16> to vector<28x256xbf16>
    %cst_10 = arith.constant dense<0.000000e+00> : vector<384x256xf32>
    %14 = tpu.matmul %11, %13, %cst_10 {dimension_numbers = #tpu.dot_dimension_numbers<[1], [0], [0], [1], [0, 0, 1, 1], [], []>} : vector<384x28xbf16>, vector<28x256xbf16>, vector<384x256xf32> -> vector<384x256xf32>
    %15 = arith.addf %10, %14 : vector<384x256xf32>
    %16 = vector.extract_strided_slice %1 {offsets = [48, 0], sizes = [384, 28], strides = [1, 1]} : vector<448x28xbf16> to vector<384x28xbf16>
    %c3 = arith.constant 3 : index
    %c0_11 = arith.constant 0 : index
    %c0_12 = arith.constant 0 : index
    %17 = vector.load %arg2[%c3, %c0_11, %c0_12] : memref<5x28x256xbf16, #tpu.memory_space<vmem>>, vector<1x28x256xbf16>
    %18 = vector.shape_cast %17 : vector<1x28x256xbf16> to vector<28x256xbf16>
    %cst_13 = arith.constant dense<0.000000e+00> : vector<384x256xf32>
    %19 = tpu.matmul %16, %18, %cst_13 {dimension_numbers = #tpu.dot_dimension_numbers<[1], [0], [0], [1], [0, 0, 1, 1], [], []>} : vector<384x28xbf16>, vector<28x256xbf16>, vector<384x256xf32> -> vector<384x256xf32>
    %20 = arith.addf %15, %19 : vector<384x256xf32>
    %21 = vector.extract_strided_slice %1 {offsets = [64, 0], sizes = [384, 28], strides = [1, 1]} : vector<448x28xbf16> to vector<384x28xbf16>
    %c4 = arith.constant 4 : index
    %c0_14 = arith.constant 0 : index
    %c0_15 = arith.constant 0 : index
    %22 = vector.load %arg2[%c4, %c0_14, %c0_15] : memref<5x28x256xbf16, #tpu.memory_space<vmem>>, vector<1x28x256xbf16>
    %23 = vector.shape_cast %22 : vector<1x28x256xbf16> to vector<28x256xbf16>
    %cst_16 = arith.constant dense<0.000000e+00> : vector<384x256xf32>
    %24 = tpu.matmul %21, %23, %cst_16 {dimension_numbers = #tpu.dot_dimension_numbers<[1], [0], [0], [1], [0, 0, 1, 1], [], []>} : vector<384x28xbf16>, vector<28x256xbf16>, vector<384x256xf32> -> vector<384x256xf32>
    %25 = arith.addf %20, %24 : vector<384x256xf32>
    %26 = vector.extract_strided_slice %25 {offsets = [0, 0], sizes = [384, 128], strides = [1, 1]} : vector<384x256xf32> to vector<384x128xf32>
    %27 = vector.extract_strided_slice %25 {offsets = [0, 128], sizes = [384, 128], strides = [1, 1]} : vector<384x256xf32> to vector<384x128xf32>
    %28 = arith.maximumf %26, %27 : vector<384x128xf32>
    %29 = vector.shape_cast %28 : vector<384x128xf32> to vector<12x2x16x128xf32>
    %30 = vector.extract_strided_slice %29 {offsets = [0, 0, 0, 0], sizes = [12, 1, 16, 128], strides = [1, 1, 1, 1]} : vector<12x2x16x128xf32> to vector<12x1x16x128xf32>
    %31 = vector.shape_cast %30 : vector<12x1x16x128xf32> to vector<12x16x128xf32>
    %32 = vector.extract_strided_slice %29 {offsets = [0, 1, 0, 0], sizes = [12, 1, 16, 128], strides = [1, 1, 1, 1]} : vector<12x2x16x128xf32> to vector<12x1x16x128xf32>
    %33 = vector.shape_cast %32 : vector<12x1x16x128xf32> to vector<12x16x128xf32>
    %34 = arith.maximumf %31, %33 : vector<12x16x128xf32>
    %c0_17 = arith.constant 0 : index
    %c0_18 = arith.constant 0 : index
    %35 = vector.load %arg3[%c0_17, %c0_18] : memref<1x128xf32, #tpu.memory_space<vmem>>, vector<1x128xf32>
    %36 = vector.shape_cast %35 : vector<1x128xf32> to vector<1x1x128xf32>
    %37 = vector.broadcast %36 : vector<1x1x128xf32> to vector<12x16x128xf32>
    %38 = arith.addf %34, %37 : vector<12x16x128xf32>
    %cst_19 = arith.constant 0.000000e+00 : f32
    %39 = vector.broadcast %cst_19 : f32 to vector<12x16x128xf32>
    %40 = arith.maximumf %38, %39 : vector<12x16x128xf32>
    %41 = arith.truncf %40 : vector<12x16x128xf32> to vector<12x16x128xbf16>
    %42 = vector.shape_cast %41 : vector<12x16x128xbf16> to vector<192x128xbf16>
    %43 = vector.extract_strided_slice %42 {offsets = [0, 0], sizes = [128, 128], strides = [1, 1]} : vector<192x128xbf16> to vector<128x128xbf16>
    %c0_20 = arith.constant 0 : index
    %c0_21 = arith.constant 0 : index
    %c0_22 = arith.constant 0 : index
    %44 = vector.load %arg4[%c0_20, %c0_21, %c0_22] : memref<5x128x256xbf16, #tpu.memory_space<vmem>>, vector<1x128x256xbf16>
    %45 = vector.shape_cast %44 : vector<1x128x256xbf16> to vector<128x256xbf16>
    %cst_23 = arith.constant dense<0.000000e+00> : vector<128x256xf32>
    %46 = tpu.matmul %43, %45, %cst_23 {dimension_numbers = #tpu.dot_dimension_numbers<[1], [0], [0], [1], [0, 0, 1, 1], [], []>} : vector<128x128xbf16>, vector<128x256xbf16>, vector<128x256xf32> -> vector<128x256xf32>
    %47 = vector.extract_strided_slice %42 {offsets = [16, 0], sizes = [128, 128], strides = [1, 1]} : vector<192x128xbf16> to vector<128x128xbf16>
    %c1_24 = arith.constant 1 : index
    %c0_25 = arith.constant 0 : index
    %c0_26 = arith.constant 0 : index
    %48 = vector.load %arg4[%c1_24, %c0_25, %c0_26] : memref<5x128x256xbf16, #tpu.memory_space<vmem>>, vector<1x128x256xbf16>
    %49 = vector.shape_cast %48 : vector<1x128x256xbf16> to vector<128x256xbf16>
    %cst_27 = arith.constant dense<0.000000e+00> : vector<128x256xf32>
    %50 = tpu.matmul %47, %49, %cst_27 {dimension_numbers = #tpu.dot_dimension_numbers<[1], [0], [0], [1], [0, 0, 1, 1], [], []>} : vector<128x128xbf16>, vector<128x256xbf16>, vector<128x256xf32> -> vector<128x256xf32>
    %51 = arith.addf %46, %50 : vector<128x256xf32>
    %52 = vector.extract_strided_slice %42 {offsets = [32, 0], sizes = [128, 128], strides = [1, 1]} : vector<192x128xbf16> to vector<128x128xbf16>
    %c2_28 = arith.constant 2 : index
    %c0_29 = arith.constant 0 : index
    %c0_30 = arith.constant 0 : index
    %53 = vector.load %arg4[%c2_28, %c0_29, %c0_30] : memref<5x128x256xbf16, #tpu.memory_space<vmem>>, vector<1x128x256xbf16>
    %54 = vector.shape_cast %53 : vector<1x128x256xbf16> to vector<128x256xbf16>
    %cst_31 = arith.constant dense<0.000000e+00> : vector<128x256xf32>
    %55 = tpu.matmul %52, %54, %cst_31 {dimension_numbers = #tpu.dot_dimension_numbers<[1], [0], [0], [1], [0, 0, 1, 1], [], []>} : vector<128x128xbf16>, vector<128x256xbf16>, vector<128x256xf32> -> vector<128x256xf32>
    %56 = arith.addf %51, %55 : vector<128x256xf32>
    %57 = vector.extract_strided_slice %42 {offsets = [48, 0], sizes = [128, 128], strides = [1, 1]} : vector<192x128xbf16> to vector<128x128xbf16>
    %c3_32 = arith.constant 3 : index
    %c0_33 = arith.constant 0 : index
    %c0_34 = arith.constant 0 : index
    %58 = vector.load %arg4[%c3_32, %c0_33, %c0_34] : memref<5x128x256xbf16, #tpu.memory_space<vmem>>, vector<1x128x256xbf16>
    %59 = vector.shape_cast %58 : vector<1x128x256xbf16> to vector<128x256xbf16>
    %cst_35 = arith.constant dense<0.000000e+00> : vector<128x256xf32>
    %60 = tpu.matmul %57, %59, %cst_35 {dimension_numbers = #tpu.dot_dimension_numbers<[1], [0], [0], [1], [0, 0, 1, 1], [], []>} : vector<128x128xbf16>, vector<128x256xbf16>, vector<128x256xf32> -> vector<128x256xf32>
    %61 = arith.addf %56, %60 : vector<128x256xf32>
    %62 = vector.extract_strided_slice %42 {offsets = [64, 0], sizes = [128, 128], strides = [1, 1]} : vector<192x128xbf16> to vector<128x128xbf16>
    %c4_36 = arith.constant 4 : index
    %c0_37 = arith.constant 0 : index
    %c0_38 = arith.constant 0 : index
    %63 = vector.load %arg4[%c4_36, %c0_37, %c0_38] : memref<5x128x256xbf16, #tpu.memory_space<vmem>>, vector<1x128x256xbf16>
    %64 = vector.shape_cast %63 : vector<1x128x256xbf16> to vector<128x256xbf16>
    %cst_39 = arith.constant dense<0.000000e+00> : vector<128x256xf32>
    %65 = tpu.matmul %62, %64, %cst_39 {dimension_numbers = #tpu.dot_dimension_numbers<[1], [0], [0], [1], [0, 0, 1, 1], [], []>} : vector<128x128xbf16>, vector<128x256xbf16>, vector<128x256xf32> -> vector<128x256xf32>
    %66 = arith.addf %61, %65 : vector<128x256xf32>
    %67 = vector.extract_strided_slice %66 {offsets = [0, 0], sizes = [128, 128], strides = [1, 1]} : vector<128x256xf32> to vector<128x128xf32>
    %68 = vector.extract_strided_slice %66 {offsets = [0, 128], sizes = [128, 128], strides = [1, 1]} : vector<128x256xf32> to vector<128x128xf32>
    %69 = arith.maximumf %67, %68 : vector<128x128xf32>
    %70 = vector.shape_cast %69 : vector<128x128xf32> to vector<4x2x16x128xf32>
    %71 = vector.extract_strided_slice %70 {offsets = [0, 0, 0, 0], sizes = [4, 1, 16, 128], strides = [1, 1, 1, 1]} : vector<4x2x16x128xf32> to vector<4x1x16x128xf32>
    %72 = vector.shape_cast %71 : vector<4x1x16x128xf32> to vector<4x16x128xf32>
    %73 = vector.extract_strided_slice %70 {offsets = [0, 1, 0, 0], sizes = [4, 1, 16, 128], strides = [1, 1, 1, 1]} : vector<4x2x16x128xf32> to vector<4x1x16x128xf32>
    %74 = vector.shape_cast %73 : vector<4x1x16x128xf32> to vector<4x16x128xf32>
    %75 = arith.maximumf %72, %74 : vector<4x16x128xf32>
    %c0_40 = arith.constant 0 : index
    %c0_41 = arith.constant 0 : index
    %76 = vector.load %arg5[%c0_40, %c0_41] : memref<1x128xf32, #tpu.memory_space<vmem>>, vector<1x128xf32>
    %77 = vector.shape_cast %76 : vector<1x128xf32> to vector<1x1x128xf32>
    %78 = vector.broadcast %77 : vector<1x1x128xf32> to vector<4x16x128xf32>
    %79 = arith.addf %75, %78 : vector<4x16x128xf32>
    %cst_42 = arith.constant 0.000000e+00 : f32
    %80 = vector.broadcast %cst_42 : f32 to vector<4x16x128xf32>
    %81 = arith.maximumf %79, %80 : vector<4x16x128xf32>
    %82 = arith.truncf %81 : vector<4x16x128xf32> to vector<4x16x128xbf16>
    %83 = vector.extract_strided_slice %82 {offsets = [0, 0, 0], sizes = [1, 16, 128], strides = [1, 1, 1]} : vector<4x16x128xbf16> to vector<1x16x128xbf16>
    %84 = vector.shape_cast %83 : vector<1x16x128xbf16> to vector<16x128xbf16>
    %c0_43 = arith.constant 0 : index
    %c0_44 = arith.constant 0 : index
    %85 = vector.load %arg11[%c0_43, %c0_44] : memref<16x512xbf16, #tpu.memory_space<vmem>>, vector<16x128xbf16>
    tpu.vector_store %arg11[%c0_43, %c0_44], %84 {strides = array<i32>} : memref<16x512xbf16, #tpu.memory_space<vmem>>, vector<16x128xbf16>,
    %86 = vector.extract_strided_slice %82 {offsets = [1, 0, 0], sizes = [1, 16, 128], strides = [1, 1, 1]} : vector<4x16x128xbf16> to vector<1x16x128xbf16>
    %87 = vector.shape_cast %86 : vector<1x16x128xbf16> to vector<16x128xbf16>
    %c0_45 = arith.constant 0 : index
    %c128 = arith.constant 128 : index
    %88 = vector.load %arg11[%c0_45, %c128] : memref<16x512xbf16, #tpu.memory_space<vmem>>, vector<16x128xbf16>
    tpu.vector_store %arg11[%c0_45, %c128], %87 {strides = array<i32>} : memref<16x512xbf16, #tpu.memory_space<vmem>>, vector<16x128xbf16>,
    %89 = vector.extract_strided_slice %82 {offsets = [2, 0, 0], sizes = [1, 16, 128], strides = [1, 1, 1]} : vector<4x16x128xbf16> to vector<1x16x128xbf16>
    %90 = vector.shape_cast %89 : vector<1x16x128xbf16> to vector<16x128xbf16>
    %c0_46 = arith.constant 0 : index
    %c256 = arith.constant 256 : index
    %91 = vector.load %arg11[%c0_46, %c256] : memref<16x512xbf16, #tpu.memory_space<vmem>>, vector<16x128xbf16>
    tpu.vector_store %arg11[%c0_46, %c256], %90 {strides = array<i32>} : memref<16x512xbf16, #tpu.memory_space<vmem>>, vector<16x128xbf16>,
    %92 = vector.extract_strided_slice %82 {offsets = [3, 0, 0], sizes = [1, 16, 128], strides = [1, 1, 1]} : vector<4x16x128xbf16> to vector<1x16x128xbf16>
    %93 = vector.shape_cast %92 : vector<1x16x128xbf16> to vector<16x128xbf16>
    %c0_47 = arith.constant 0 : index
    %c384 = arith.constant 384 : index
    %94 = vector.load %arg11[%c0_47, %c384] : memref<16x512xbf16, #tpu.memory_space<vmem>>, vector<16x128xbf16>
    tpu.vector_store %arg11[%c0_47, %c384], %93 {strides = array<i32>} : memref<16x512xbf16, #tpu.memory_space<vmem>>, vector<16x128xbf16>,
    %c0_48 = arith.constant 0 : index
    %c0_49 = arith.constant 0 : index
    %95 = vector.load %arg11[%c0_48, %c0_49] : memref<16x512xbf16, #tpu.memory_space<vmem>>, vector<16x512xbf16>
    %c0_50 = arith.constant 0 : index
    %c0_51 = arith.constant 0 : index
    %96 = vector.load %arg6[%c0_50, %c0_51] : memref<512x128xbf16, #tpu.memory_space<vmem>>, vector<512x128xbf16>
    %cst_52 = arith.constant dense<0.000000e+00> : vector<16x128xf32>
    %97 = tpu.matmul %95, %96, %cst_52 {dimension_numbers = #tpu.dot_dimension_numbers<[1], [0], [0], [1], [0, 0, 1, 1], [], []>} : vector<16x512xbf16>, vector<512x128xbf16>, vector<16x128xf32> -> vector<16x128xf32>
    %c0_53 = arith.constant 0 : index
    %c0_54 = arith.constant 0 : index
    %98 = vector.load %arg7[%c0_53, %c0_54] : memref<1x128xf32, #tpu.memory_space<vmem>>, vector<1x128xf32>
    %99 = vector.broadcast %98 : vector<1x128xf32> to vector<16x128xf32>
    %100 = arith.addf %97, %99 : vector<16x128xf32>
    %101 = arith.truncf %100 : vector<16x128xf32> to vector<16x128xbf16>
    %c0_55 = arith.constant 0 : index
    %c0_56 = arith.constant 0 : index
    %102 = vector.load %arg8[%c0_55, %c0_56] : memref<128x128xbf16, #tpu.memory_space<vmem>>, vector<128x128xbf16>
    %cst_57 = arith.constant dense<0.000000e+00> : vector<16x128xf32>
    %103 = tpu.matmul %101, %102, %cst_57 {dimension_numbers = #tpu.dot_dimension_numbers<[1], [0], [0], [1], [0, 0, 1, 1], [], []>} : vector<16x128xbf16>, vector<128x128xbf16>, vector<16x128xf32> -> vector<16x128xf32>
    %c0_58 = arith.constant 0 : index
    %c0_59 = arith.constant 0 : index
    %104 = vector.load %arg9[%c0_58, %c0_59] : memref<1x128xf32, #tpu.memory_space<vmem>>, vector<1x128xf32>
    %105 = vector.broadcast %104 : vector<1x128xf32> to vector<16x128xf32>
    %106 = arith.addf %103, %105 : vector<16x128xf32>
    %cst_60 = arith.constant dense<0xFF800000> : vector<16xf32>
    %107 = vector.multi_reduction <maximumf>, %106, %cst_60 [1] : vector<16x128xf32> to vector<16xf32>
    %108 = vector.shape_cast %107 : vector<16xf32> to vector<16x1xf32>
    %109 = vector.broadcast %108 : vector<16x1xf32> to vector<16x128xf32>
    %110 = arith.subf %106, %109 : vector<16x128xf32>
    %111 = math.exp %110 : vector<16x128xf32>
    %cst_61 = arith.constant dense<0.000000e+00> : vector<16xf32>
    %112 = vector.multi_reduction <add>, %111, %cst_61 [1] : vector<16x128xf32> to vector<16xf32>
    %113 = vector.shape_cast %112 : vector<16xf32> to vector<16x1xf32>
    %114 = math.log %113 : vector<16x1xf32>
    %115 = vector.broadcast %114 : vector<16x1xf32> to vector<16x128xf32>
    %116 = arith.subf %110, %115 : vector<16x128xf32>
    %c0_62 = arith.constant 0 : index
    %c0_63 = arith.constant 0 : index
    %117 = vector.load %arg10[%c0_62, %c0_63] : memref<16x128xf32, #tpu.memory_space<vmem>>, vector<16x128xf32>
    tpu.vector_store %arg10[%c0_62, %c0_63], %116 {strides = array<i32>} : memref<16x128xf32, #tpu.memory_space<vmem>>, vector<16x128xf32>,
    return
  }
  func.func @transform_0(%arg0: i32) -> (i32, i32, i32) {
    %c0_i32 = arith.constant 0 : i32
    %c0_i32_0 = arith.constant 0 : i32
    %c0_i32_1 = arith.constant 0 : i32
    return %c0_i32, %arg0, %c0_i32_0 : i32, i32, i32
  }
  func.func @transform_1(%arg0: i32) -> (i32, i32, i32) {
    %c0_i32 = arith.constant 0 : i32
    %c0_i32_0 = arith.constant 0 : i32
    %c0_i32_1 = arith.constant 0 : i32
    %c0_i32_2 = arith.constant 0 : i32
    return %c0_i32, %c0_i32_0, %c0_i32_1 : i32, i32, i32
  }
  func.func @transform_2(%arg0: i32) -> (i32, i32) {
    %c0_i32 = arith.constant 0 : i32
    %c0_i32_0 = arith.constant 0 : i32
    %c0_i32_1 = arith.constant 0 : i32
    return %c0_i32, %c0_i32_0 : i32, i32
  }
  func.func @transform_3(%arg0: i32) -> (i32, i32, i32) {
    %c0_i32 = arith.constant 0 : i32
    %c0_i32_0 = arith.constant 0 : i32
    %c0_i32_1 = arith.constant 0 : i32
    %c0_i32_2 = arith.constant 0 : i32
    return %c0_i32, %c0_i32_0, %c0_i32_1 : i32, i32, i32
  }
  func.func @transform_4(%arg0: i32) -> (i32, i32) {
    %c0_i32 = arith.constant 0 : i32
    %c0_i32_0 = arith.constant 0 : i32
    %c0_i32_1 = arith.constant 0 : i32
    return %c0_i32, %c0_i32_0 : i32, i32
  }
  func.func @transform_5(%arg0: i32) -> (i32, i32) {
    %c0_i32 = arith.constant 0 : i32
    %c0_i32_0 = arith.constant 0 : i32
    %c0_i32_1 = arith.constant 0 : i32
    return %c0_i32, %c0_i32_0 : i32, i32
  }
  func.func @transform_6(%arg0: i32) -> (i32, i32) {
    %c0_i32 = arith.constant 0 : i32
    %c0_i32_0 = arith.constant 0 : i32
    %c0_i32_1 = arith.constant 0 : i32
    return %c0_i32, %c0_i32_0 : i32, i32
  }
  func.func @transform_7(%arg0: i32) -> (i32, i32) {
    %c0_i32 = arith.constant 0 : i32
    %c0_i32_0 = arith.constant 0 : i32
    %c0_i32_1 = arith.constant 0 : i32
    return %c0_i32, %c0_i32_0 : i32, i32
  }
  func.func @transform_8(%arg0: i32) -> (i32, i32) {
    %c0_i32 = arith.constant 0 : i32
    %c0_i32_0 = arith.constant 0 : i32
    %c0_i32_1 = arith.constant 0 : i32
    return %c0_i32, %c0_i32_0 : i32, i32
  }
  func.func @transform_9(%arg0: i32) -> (i32, i32) {
    %c0_i32 = arith.constant 0 : i32
    %c0_i32_0 = arith.constant 0 : i32
    return %arg0, %c0_i32 : i32, i32
  }
}

</mosaic_0001>

<bundles_post_ra>
// kernel: convnet_forward.1
= control target key start
LH: loop header
LB: loop body
LE: loop exit
PB: predicated region body
PF: predicated region fallthrough
CT: control target
= control target key end

     0   :  { %14 = vsyncpa [#allocation4], 0  ;;  %s7140_s0 = inlined_call_operand.vmem [shape: bf16[28,16,28], index: 0, kind: input, shape index: {}]   ;;  %s7141_s1 = inlined_call_operand.hbm [shape: bf16[5,28,256], index: 1, kind: input, shape index: {}]   ;;  %s7142_s2 = inlined_call_operand.vmem [shape: f32[1,128], index: 2, kind: input, shape index: {}]   ;;  %s7143_s3 = inlined_call_operand.vmem [shape: bf16[5,128,256], index: 3, kind: input, shape index: {}]   ;;  %s7144_s4 = inlined_call_operand.vmem [shape: f32[1,128], index: 4, kind: input, shape index: {}]   ;;  %s7145_s5 = inlined_call_operand.vmem [shape: bf16[512,128], index: 5, kind: input, shape index: {}]   ;;  %s7146_s6 = inlined_call_operand.vmem [shape: f32[1,128], index: 6, kind: input, shape index: {}]   ;;  %s7147_s7 = inlined_call_operand.vmem [shape: bf16[128,128], index: 7, kind: input, shape index: {}]   ;;  %s7148_s8 = inlined_call_operand.vmem [shape: f32[1,128], index: 8, kind: input, shape index: {}]   ;;  %s7149_s9 = inlined_call_operand.hbm [shape: f32[16,128], index: 9, kind: output, shape index: {}]  }
   0x1   :  { %15 = vsyncpa [#allocation5], 0  ;;  %s4803_s30 = smov [#allocation3]  }
   0x2   :  { %s23_s10 = sshll.u32 %s4803_s30, 4  ;;  %s24_s10 = int_to_ptr.vmem [resolvable:$true] %s23_s10 }
   0x3   :  { %s4767_s11 = scalar_lea.vmem %s24_s10, 2560  ;;  %p4772_p1 = scmp.lt.s32.totalorder %s24_s10, %s24_s10 }
   0x4   :  { %p4768_p0 = scmp.ne.s32.totalorder %s24_s10, %s4767_s11  ;;  %p4773_p2 = scmp.lt.s32.totalorder %s4767_s11, %s4767_s11 }
   0x6   :  { %p4774_p3 = por %p4773_p2, %p4772_p1 }
   0x8   :  { %p4775_p4 = pnand %p4774_p3, %p4768_p0 }
   0xa   :  { %4778 = shalt.err (!%p4775_p4)
}
   0xb   :  { %s4804_s12 = smov 128   ;;  %s4805_s13 = smov 8  }
   0xc   :  { %29 = dma.hbm_to_vmem [thread:$0]  %s7141_s1, 2560, %s24_s10, [#allocation4], %s4804_s12, %s4804_s12, %s4805_s13  }
   0xd   :  { %4799 = dma.done.wait [#allocation4], 2560  }
   0xe   :  { %4800 = vsyncadd [#allocation4], 4294964736  ;;  %v7150_v0 = vmov 0   ;;  %vm324_vm0 = vcmask 1045504   ;;  %v4514_v3 = vld [vmem:[#allocation3 + $0x24] ss:$8 sps:$4 sm:$0xff]  }
   0xf   :  { %363 = vmatprep.mubr.bf16.mxu0 %v7150_v0  ;;  %583 = vmatprep.mubr.bf16.mxu1 %v7150_v0  ;;  %v4511_v1 = vld [vmem:[#allocation3 + $0x34] ss:$8 sps:$4 sm:$0x3f]   ;;  %v4513_v2 = vld [vmem:[#allocation3 + $0x30] ss:$8 sps:$4 sm:$0x3f]  }
  0x10   :  { %4047 = vmatprep.subr.msk.bf16.mxu0 %vm324_vm0, %v4511_v1  ;;  %4500 = vmatprep.subr.msk.bf16.mxu1 %vm324_vm0, %v4511_v1  ;;  %v326_v4 = vsel %vm324_vm0, %v4513_v2, 0  ;;  %v4516_v5 = vld [vmem:[#allocation3 + $0x20] ss:$8 sps:$4 sm:$0xff]   ;;  %v4519_v7 = vld [vmem:[#allocation3 + $0x54] ss:$8 sps:$4 sm:$0x3f]  }
  0x11   :  { %344 = vmatpush1.bf16.msra.mxu0 %v326_v4  ;;  %4502 = vmatpush1.bf16.msra.mxu1 %v326_v4  ;;  %v4517_v6 = vld [vmem:[%s7140_s0 + $0x8] sm:$0xff]   ;;  %v4877_v8 = vld [vmem:[%s7140_s0 + $0xb8] sm:$0xff]   ;;  %vm251_vm1 = vcmask 228352   ;;  %v4890_v15 = vld [vmem:[%s7140_s0 + $0x10] sm:$0xff]   ;;  %vm4808_vm2 = vmmov 0  }
  0x12   :  { %345 = vmatprep.subr.bf16.mxu0 %v4514_v3  ;;  %4501 = vmatprep.subr.bf16.mxu1 %v4514_v3  ;;  %v4521_v9 = vld [vmem:[#allocation3 + $0x50] ss:$8 sps:$4 sm:$0x3f]   ;;  %v4524_v11 = vld [vmem:[#allocation3 + $0x14] ss:$8 sps:$4 sm:$0x3f]  }
  0x13   :  { %v941_v10 = vsel %vm324_vm0, %v4521_v9, 0  ;;  %v4526_v12 = vld [vmem:[#allocation3 + $0x10] ss:$8 sps:$4 sm:$0x3f]   ;;  %v4529_v13 = vld [vmem:[#allocation3 + $0x4] ss:$8 sps:$4 sm:$0xff]  }
  0x14   :  { %v631_v14 = vsel %vm324_vm0, %v4526_v12, 0  ;;  %v4527_v16 = vld [vmem:[#allocation3] ss:$8 sps:$4 sm:$0xff]   ;;  %v4904_v18 = vld [vmem:[%s7140_s0 + $0x18] sm:$0xff]   ;;  %v4543_v21 = vld [vmem:[#allocation3 + $0x44] ss:$8 sps:$4 sm:$0xff]  }
  0x15   :  { %346 = vmatpush1.bf16.msra.mxu0 %v4516_v5  ;;  %4503 = vmatpush1.bf16.msra.mxu1 %v4516_v5  ;;  %v4523_v17 = vld [vmem:[%s7140_s0 + $0xc0] sm:$0xff]   ;;  %v4927_v23 = vld [vmem:[%s7140_s0 + $0x28] sm:$0xff]   ;;  %v4938_v24 = vld [vmem:[%s7140_s0 + $0x30] sm:$0xff]  }
  0x16   :  { %4107 = vmatprep.subr.msk.bf16.mxu0 %vm324_vm0, %v4519_v7  ;;  %4077 = vmatprep.subr.msk.bf16.mxu1 %vm324_vm0, %v4524_v11  ;;  %v4531_v19 = vld [vmem:[%s7140_s0] sm:$0xff]   ;;  %v4554_v25 = vld [vmem:[#allocation3 + $0x74] ss:$8 sps:$4 sm:$0x3f]   ;;  %v4974_v31 = vld [vmem:[%s7140_s0 + $0x48] sm:$0xff]  }
  0x17   :  { %v4541_v20 = vld [vmem:[#allocation3 + $0x40] ss:$8 sps:$4 sm:$0xff]   ;;  %v4556_v26 = vld [vmem:[#allocation3 + $0x70] ss:$8 sps:$4 sm:$0x3f]  }
  0x18   :  { %4048 = vmatmul.mubr.msk.bf16.vlgmr.msra.gmra.mxu0 %vm251_vm1, %v4517_v6  ;;  %4070 = vmatmul.mubr.msk.bf16.vlgmr.msra.gmra.mxu1 %vm251_vm1, %v4877_v8  ;;  %v4917_v22 = vld [vmem:[%s7140_s0 + $0x20] sm:$0xff]   ;;  %v4949_v27 = vld [vmem:[%s7140_s0 + $0x38] sm:$0xff]   ;;  %v1347_v28 = vsel %vm324_vm0, %v4556_v26, 0  ;;  %v4985_v32 = vld [vmem:[%s7140_s0 + $0x50] sm:$0xff]  }
  0x19   :  { %959 = vmatpush1.bf16.msra.mxu0 %v941_v10  ;;  %373 = vmatprep.mubr.bf16.mxu0 %v7150_v0  ;;  %v4557_v29 = vld [vmem:[#allocation3 + $0x94] ss:$8 sps:$4 sm:$0x3f]   ;;  %v4962_v30 = vld [vmem:[%s7140_s0 + $0x40] sm:$0xff]   ;;  %v5018_v37 = vld [vmem:[%s7140_s0 + $0x68] sm:$0xff]  }
  0x1a   :  { %593 = vmatprep.mubr.bf16.mxu1 %v7150_v0  ;;  %649 = vmatpush1.bf16.msra.mxu1 %v631_v14  ;;  %v4996_v33 = vld [vmem:[%s7140_s0 + $0x58] sm:$0xff]   ;;  %v4562_v34 = vld [vmem:[#allocation3 + $0x64] ss:$8 sps:$4 sm:$0xff]   ;;  %v4560_v35 = vld [vmem:[#allocation3 + $0x60] ss:$8 sps:$4 sm:$0xff]  }
  0x1b   :  { %650 = vmatprep.subr.bf16.mxu1 %v4529_v13  ;;  %960 = vmatprep.subr.bf16.mxu0 %v4543_v21  ;;  %v5007_v36 = vld [vmem:[%s7140_s0 + $0x60] sm:$0xff]   ;;  %v5029_v38 = vld [vmem:[%s7140_s0 + $0x70] sm:$0xff]   ;;  %v5040_v39 = vld [vmem:[%s7140_s0 + $0x78] sm:$0xff]  }
  0x1c   :  { %v5051_v40 = vld [vmem:[%s7140_s0 + $0x80] sm:$0xff]   ;;  %v5062_v41 = vld [vmem:[%s7140_s0 + $0x88] sm:$0xff]   ;;  %v5073_v42 = vld [vmem:[%s7140_s0 + $0x90] sm:$0xff]  }
  0x1d   :  { %961 = vmatpush1.bf16.msra.mxu0 %v4541_v20  ;;  %v5084_v43 = vld [vmem:[%s7140_s0 + $0x98] sm:$0xff]   ;;  %v5095_v44 = vld [vmem:[%s7140_s0 + $0xa0] sm:$0xff]   ;;  %v5106_v45 = vld [vmem:[%s7140_s0 + $0xa8] sm:$0xff]  }
  0x1e   :  { %651 = vmatpush1.bf16.msra.mxu1 %v4527_v16  ;;  %4167 = vmatprep.subr.msk.bf16.mxu0 %vm324_vm0, %v4557_v29  ;;  %v5117_v46 = vld [vmem:[%s7140_s0 + $0xb0] sm:$0xff]   ;;  %v4565_v49 = vld [vmem:[#allocation3 + $0x84] ss:$8 sps:$4 sm:$0xff]   ;;  %v4563_v50 = vld [vmem:[#allocation3 + $0x80] ss:$8 sps:$4 sm:$0xff]  }
  0x1f   :  { %4137 = vmatprep.subr.msk.bf16.mxu1 %vm324_vm0, %v4554_v25  ;;  %v4559_v47 = vld [vmem:[#allocation3 + $0x90] ss:$8 sps:$4 sm:$0x3f]  }
  0x20   :  { %4049 = vmatmul.mubr.msk.bf16.gmra.mxu0 %vm251_vm1, %v4890_v15  ;;  %4071 = vmatmul.mubr.msk.bf16.gmra.mxu1 %vm251_vm1, %v4523_v17  ;;  %v1753_v48 = vsel %vm324_vm0, %v4559_v47, 0 }
  0x21   :  { %383 = vmatprep.mubr.bf16.mxu0 %v7150_v0  ;;  %668 = vmatprep.mubr.bf16.mxu1 %v7150_v0 }
  0x28   :  { %4050 = vmatmul.mubr.msk.bf16.gmra.mxu0 %vm251_vm1, %v4904_v18  ;;  %4078 = vmatmul.mubr.msk.bf16.vlgmr.msra.gmra.mxu1 %vm251_vm1, %v4531_v19 }
  0x29   :  { %393 = vmatprep.mubr.bf16.mxu0 %v7150_v0  ;;  %678 = vmatprep.mubr.bf16.mxu1 %v7150_v0 }
  0x2a   :  { %1365 = vmatpush1.bf16.msra.mxu1 %v1347_v28 }
  0x2b   :  { %1366 = vmatprep.subr.bf16.mxu1 %v4562_v34 }
  0x2e   :  { %1367 = vmatpush1.bf16.msra.mxu1 %v4560_v35 }
  0x30   :  { %4051 = vmatmul.mubr.msk.bf16.gmra.mxu0 %vm251_vm1, %v4917_v22  ;;  %4079 = vmatmul.mubr.msk.bf16.gmra.mxu1 %vm251_vm1, %v4517_v6 }
  0x31   :  { %403 = vmatprep.mubr.bf16.mxu0 %v7150_v0  ;;  %688 = vmatprep.mubr.bf16.mxu1 %v7150_v0 }
  0x38   :  { %4052 = vmatmul.mubr.msk.bf16.gmra.mxu0 %vm251_vm1, %v4927_v23  ;;  %4080 = vmatmul.mubr.msk.bf16.gmra.mxu1 %vm251_vm1, %v4890_v15 }
  0x39   :  { %413 = vmatprep.mubr.bf16.mxu0 %v7150_v0  ;;  %698 = vmatprep.mubr.bf16.mxu1 %v7150_v0 }
  0x40   :  { %4053 = vmatmul.mubr.msk.bf16.gmra.mxu0 %vm251_vm1, %v4938_v24  ;;  %4081 = vmatmul.mubr.msk.bf16.gmra.mxu1 %vm251_vm1, %v4904_v18 }
  0x41   :  { %423 = vmatprep.mubr.bf16.mxu0 %v7150_v0  ;;  %708 = vmatprep.mubr.bf16.mxu1 %v7150_v0 }
  0x48   :  { %4054 = vmatmul.mubr.msk.bf16.gmra.mxu0 %vm251_vm1, %v4949_v27  ;;  %4082 = vmatmul.mubr.msk.bf16.gmra.mxu1 %vm251_vm1, %v4917_v22 }
  0x49   :  { %433 = vmatprep.mubr.bf16.mxu0 %v7150_v0  ;;  %718 = vmatprep.mubr.bf16.mxu1 %v7150_v0 }
  0x50   :  { %4055 = vmatmul.mubr.msk.bf16.gmra.mxu0 %vm251_vm1, %v4962_v30  ;;  %4083 = vmatmul.mubr.msk.bf16.gmra.mxu1 %vm251_vm1, %v4927_v23 }
  0x51   :  { %443 = vmatprep.mubr.bf16.mxu0 %v7150_v0  ;;  %728 = vmatprep.mubr.bf16.mxu1 %v7150_v0 }
  0x58   :  { %4056 = vmatmul.mubr.msk.bf16.gmra.mxu0 %vm251_vm1, %v4974_v31  ;;  %4084 = vmatmul.mubr.msk.bf16.gmra.mxu1 %vm251_vm1, %v4938_v24 }
  0x59   :  { %453 = vmatprep.mubr.bf16.mxu0 %v7150_v0  ;;  %738 = vmatprep.mubr.bf16.mxu1 %v7150_v0 }
  0x60   :  { %4057 = vmatmul.mubr.msk.bf16.gmra.mxu0 %vm251_vm1, %v4985_v32  ;;  %4085 = vmatmul.mubr.msk.bf16.gmra.mxu1 %vm251_vm1, %v4949_v27 }
  0x61   :  { %463 = vmatprep.mubr.bf16.mxu0 %v7150_v0  ;;  %748 = vmatprep.mubr.bf16.mxu1 %v7150_v0 }
  0x68   :  { %4058 = vmatmul.mubr.msk.bf16.gmra.mxu0 %vm251_vm1, %v4996_v33  ;;  %4086 = vmatmul.mubr.msk.bf16.gmra.mxu1 %vm251_vm1, %v4962_v30 }
  0x69   :  { %473 = vmatprep.mubr.bf16.mxu0 %v7150_v0  ;;  %758 = vmatprep.mubr.bf16.mxu1 %v7150_v0 }
  0x70   :  { %4059 = vmatmul.mubr.msk.bf16.gmra.mxu0 %vm251_vm1, %v5007_v36  ;;  %4087 = vmatmul.mubr.msk.bf16.gmra.mxu1 %vm251_vm1, %v4974_v31 }
  0x71   :  { %483 = vmatprep.mubr.bf16.mxu0 %v7150_v0  ;;  %768 = vmatprep.mubr.bf16.mxu1 %v7150_v0 }
  0x78   :  { %4060 = vmatmul.mubr.msk.bf16.gmra.mxu0 %vm251_vm1, %v5018_v37  ;;  %4088 = vmatmul.mubr.msk.bf16.gmra.mxu1 %vm251_vm1, %v4985_v32 }
  0x79   :  { %493 = vmatprep.mubr.bf16.mxu0 %v7150_v0  ;;  %778 = vmatprep.mubr.bf16.mxu1 %v7150_v0 }
  0x80   :  { %4061 = vmatmul.mubr.msk.bf16.gmra.mxu0 %vm251_vm1, %v5029_v38  ;;  %4089 = vmatmul.mubr.msk.bf16.gmra.mxu1 %vm251_vm1, %v4996_v33 }
  0x81   :  { %503 = vmatprep.mubr.bf16.mxu0 %v7150_v0  ;;  %788 = vmatprep.mubr.bf16.mxu1 %v7150_v0 }
  0x88   :  { %4062 = vmatmul.mubr.msk.bf16.gmra.mxu0 %vm251_vm1, %v5040_v39  ;;  %4090 = vmatmul.mubr.msk.bf16.gmra.mxu1 %vm251_vm1, %v5007_v36 }
  0x89   :  { %513 = vmatprep.mubr.bf16.mxu0 %v7150_v0  ;;  %798 = vmatprep.mubr.bf16.mxu1 %v7150_v0 }
  0x90   :  { %4063 = vmatmul.mubr.msk.bf16.gmra.mxu0 %vm251_vm1, %v5051_v40  ;;  %4091 = vmatmul.mubr.msk.bf16.gmra.mxu1 %vm251_vm1, %v5018_v37 }
  0x91   :  { %523 = vmatprep.mubr.bf16.mxu0 %v7150_v0  ;;  %808 = vmatprep.mubr.bf16.mxu1 %v7150_v0 }
  0x98   :  { %4064 = vmatmul.mubr.msk.bf16.gmra.mxu0 %vm251_vm1, %v5062_v41  ;;  %4092 = vmatmul.mubr.msk.bf16.gmra.mxu1 %vm251_vm1, %v5029_v38 }
  0x99   :  { %533 = vmatprep.mubr.bf16.mxu0 %v7150_v0  ;;  %818 = vmatprep.mubr.bf16.mxu1 %v7150_v0 }
  0xa0   :  { %4065 = vmatmul.mubr.msk.bf16.gmra.mxu0 %vm251_vm1, %v5073_v42  ;;  %4093 = vmatmul.mubr.msk.bf16.gmra.mxu1 %vm251_vm1, %v5040_v39 }
  0xa1   :  { %543 = vmatprep.mubr.bf16.mxu0 %v7150_v0  ;;  %828 = vmatprep.mubr.bf16.mxu1 %v7150_v0 }
  0xa8   :  { %4066 = vmatmul.mubr.msk.bf16.gmra.mxu0 %vm251_vm1, %v5084_v43  ;;  %4094 = vmatmul.mubr.msk.bf16.gmra.mxu1 %vm251_vm1, %v5051_v40 }
  0xa9   :  { %553 = vmatprep.mubr.bf16.mxu0 %v7150_v0  ;;  %838 = vmatprep.mubr.bf16.mxu1 %v7150_v0 }
  0xb0   :  { %4067 = vmatmul.mubr.msk.bf16.gmra.mxu0 %vm251_vm1, %v5095_v44  ;;  %4095 = vmatmul.mubr.msk.bf16.gmra.mxu1 %vm251_vm1, %v5062_v41 }
  0xb1   :  { %563 = vmatprep.mubr.bf16.mxu0 %v7150_v0  ;;  %848 = vmatprep.mubr.bf16.mxu1 %v7150_v0 }
  0xb8   :  { %4068 = vmatmul.mubr.msk.bf16.gmra.mxu0 %vm251_vm1, %v5106_v45  ;;  %4096 = vmatmul.mubr.msk.bf16.gmra.mxu1 %vm251_vm1, %v5073_v42 }
  0xb9   :  { %573 = vmatprep.mubr.bf16.mxu0 %v7150_v0  ;;  %858 = vmatprep.mubr.bf16.mxu1 %v7150_v0 }
  0xc0   :  { %4069 = vmatmul.mubr.msk.bf16.gmra.mxu0 %vm251_vm1, %v5117_v46  ;;  %4097 = vmatmul.mubr.msk.bf16.gmra.mxu1 %vm251_vm1, %v5084_v43 }
  0xc1   :  { %868 = vmatprep.mubr.bf16.mxu1 %v7150_v0  ;;  %978 = vmatprep.mubr.bf16.mxu0 %v7150_v0 }
  0xc8   :  { %4098 = vmatmul.mubr.msk.bf16.gmra.mxu1 %vm251_vm1, %v5095_v44  ;;  %4108 = vmatmul.mubr.msk.bf16.vlgmr.msra.gmra.mxu0 %vm251_vm1, %v4890_v15 }
  0xc9   :  { %1771 = vmatpush1.bf16.msra.mxu0 %v1753_v48  ;;  %878 = vmatprep.mubr.bf16.mxu1 %v7150_v0 }
  0xca   :  { %988 = vmatprep.mubr.bf16.mxu0 %v7150_v0  ;;  %1772 = vmatprep.subr.bf16.mxu0 %v4565_v49 }
  0xcd   :  { %1773 = vmatpush1.bf16.msra.mxu0 %v4563_v50 }
  0xd0   :  { %4099 = vmatmul.mubr.msk.bf16.gmra.mxu1 %vm251_vm1, %v5106_v45  ;;  %4109 = vmatmul.mubr.msk.bf16.gmra.mxu0 %vm251_vm1, %v4904_v18 }
  0xd1   :  { %888 = vmatprep.mubr.bf16.mxu1 %v7150_v0  ;;  %998 = vmatprep.mubr.bf16.mxu0 %v7150_v0 }
  0xd8   :  { %v365_v51 = vpop.f32.mrf.mxu0  ;;  %v5138_v52 = vpop.f32.mrf.mxu1  ;;  %4100 = vmatmul.mubr.msk.bf16.gmra.mxu1 %vm251_vm1, %v5117_v46  ;;  %4110 = vmatmul.mubr.msk.bf16.gmra.mxu0 %vm251_vm1, %v4917_v22 }
  0xd9   :  { %7152 = vst [vmem:[#allocation9_spill] sm:$0xff] %v5138_v52  ;;  %898 = vmatprep.mubr.bf16.mxu1 %v7150_v0  ;;  %1008 = vmatprep.mubr.bf16.mxu0 %v7150_v0 }
  0xda   :  { %v367_v53 = vpop.f32.mrf.mxu0  ;;  %v5146_v54 = vpop.f32.mrf.mxu1 }
  0xdb   :  { %7153 = vst [vmem:[#allocation10_spill] sm:$0xff] %v5146_v54 }
  0xdc   :  { %v369_v55 = vpop.f32.mrf.mxu0  ;;  %v5148_v56 = vpop.f32.mrf.mxu1 }
  0xdd   :  { %7154 = vst [vmem:[#allocation11_spill] sm:$0xff] %v5148_v56 }
  0xde   :  { %v371_v57 = vpop.f32.mrf.mxu0  ;;  %v5150_v58 = vpop.f32.mrf.mxu1 }
  0xdf   :  { %7155 = vst [vmem:[#allocation12_spill] sm:$0xff] %v5150_v58 }
  0xe0   :  { %v375_v59 = vpop.f32.mrf.mxu0  ;;  %v5152_v60 = vpop.f32.mrf.mxu1  ;;  %4101 = vmatmul.mubr.msk.bf16.gmra.mxu1 %vm251_vm1, %v4877_v8  ;;  %4111 = vmatmul.mubr.msk.bf16.gmra.mxu0 %vm251_vm1, %v4927_v23 }
  0xe1   :  { %7156 = vst [vmem:[#allocation13_spill] sm:$0xff] %v5152_v60  ;;  %1018 = vmatprep.mubr.bf16.mxu0 %v7150_v0  ;;  %1384 = vmatprep.mubr.bf16.mxu1 %v7150_v0 }
  0xe2   :  { %v377_v61 = vpop.f32.mrf.mxu0  ;;  %v5160_v62 = vpop.f32.mrf.mxu1 }
  0xe3   :  { %7157 = vst [vmem:[#allocation14_spill] sm:$0xff] %v5160_v62 }
  0xe4   :  { %v379_v63 = vpop.f32.mrf.mxu0  ;;  %v5162_v1 = vpop.f32.mrf.mxu1 }
  0xe5   :  { %7158 = vst [vmem:[#allocation15_spill] sm:$0xff] %v5162_v1 }
  0xe6   :  { %v381_v2 = vpop.f32.mrf.mxu0  ;;  %v5164_v3 = vpop.f32.mrf.mxu1 }
  0xe7   :  { %7159 = vst [vmem:[#allocation16_spill] sm:$0xff] %v5164_v3 }
  0xe8   :  { %v385_v4 = vpop.f32.mrf.mxu0  ;;  %v670_v5 = vpop.f32.mrf.mxu1  ;;  %4112 = vmatmul.mubr.msk.bf16.gmra.mxu0 %vm251_vm1, %v4938_v24  ;;  %4138 = vmatmul.mubr.msk.bf16.vlgmr.msra.gmra.mxu1 %vm251_vm1, %v4904_v18 }
  0xe9   :  { %v5170_v6 = vadd.f32 %v670_v5, %v365_v51  ;;  %1028 = vmatprep.mubr.bf16.mxu0 %v7150_v0  ;;  %1394 = vmatprep.mubr.bf16.mxu1 %v7150_v0 }
  0xea   :  { %v387_v7 = vpop.f32.mrf.mxu0  ;;  %v672_v8 = vpop.f32.mrf.mxu1 }
  0xeb   :  { %v5174_v9 = vadd.f32 %v672_v8, %v367_v53 }
  0xec   :  { %v389_v10 = vpop.f32.mrf.mxu0  ;;  %v674_v11 = vpop.f32.mrf.mxu1 }
  0xed   :  { %v5176_v12 = vadd.f32 %v674_v11, %v369_v55 }
  0xee   :  { %v391_v13 = vpop.f32.mrf.mxu0  ;;  %v676_v14 = vpop.f32.mrf.mxu1 }
  0xef   :  { %v5178_v15 = vadd.f32 %v676_v14, %v371_v57 }
  0xf0   :  { %v395_v16 = vpop.f32.mrf.mxu0  ;;  %v680_v17 = vpop.f32.mrf.mxu1  ;;  %4113 = vmatmul.mubr.msk.bf16.gmra.mxu0 %vm251_vm1, %v4949_v27  ;;  %4139 = vmatmul.mubr.msk.bf16.gmra.mxu1 %vm251_vm1, %v4917_v22 }
  0xf1   :  { %v5184_v18 = vadd.f32 %v680_v17, %v375_v59  ;;  %1038 = vmatprep.mubr.bf16.mxu0 %v7150_v0  ;;  %1404 = vmatprep.mubr.bf16.mxu1 %v7150_v0 }
  0xf2   :  { %v397_v19 = vpop.f32.mrf.mxu0  ;;  %v682_v20 = vpop.f32.mrf.mxu1 }
  0xf3   :  { %v5188_v21 = vadd.f32 %v682_v20, %v377_v61 }
  0xf4   :  { %v399_v25 = vpop.f32.mrf.mxu0  ;;  %v684_v26 = vpop.f32.mrf.mxu1 }
  0xf5   :  { %v5190_v28 = vadd.f32 %v684_v26, %v379_v63 }
  0xf6   :  { %v401_v29 = vpop.f32.mrf.mxu0  ;;  %v686_v34 = vpop.f32.mrf.mxu1 }
  0xf7   :  { %v5192_v35 = vadd.f32 %v686_v34, %v381_v2 }
  0xf8   :  { %v405_v47 = vpop.f32.mrf.mxu0  ;;  %v690_v22 = vpop.f32.mrf.mxu1  ;;  %4114 = vmatmul.mubr.msk.bf16.gmra.mxu0 %vm251_vm1, %v4962_v30  ;;  %4140 = vmatmul.mubr.msk.bf16.gmra.mxu1 %vm251_vm1, %v4927_v23 }
  0xf9   :  { %v5198_v48 = vadd.f32 %v690_v22, %v385_v4  ;;  %1048 = vmatprep.mubr.bf16.mxu0 %v7150_v0  ;;  %1414 = vmatprep.mubr.bf16.mxu1 %v7150_v0 }
  0xfa   :  { %v407_v49 = vpop.f32.mrf.mxu0  ;;  %v692_v50 = vpop.f32.mrf.mxu1 }
  0xfb   :  { %v5202_v51 = vadd.f32 %v692_v50, %v387_v7 }
  0xfc   :  { %v409_v53 = vpop.f32.mrf.mxu0  ;;  %v694_v55 = vpop.f32.mrf.mxu1 }
  0xfd   :  { %v5204_v57 = vadd.f32 %v694_v55, %v389_v10 }
  0xfe   :  { %v411_v59 = vpop.f32.mrf.mxu0  ;;  %v696_v61 = vpop.f32.mrf.mxu1 }
  0xff   :  { %v5206_v63 = vadd.f32 %v696_v61, %v391_v13 }
 0x100   :  { %v415_v2 = vpop.f32.mrf.mxu0  ;;  %v700_v23 = vpop.f32.mrf.mxu1  ;;  %4115 = vmatmul.mubr.msk.bf16.gmra.mxu0 %vm251_vm1, %v4974_v31  ;;  %4141 = vmatmul.mubr.msk.bf16.gmra.mxu1 %vm251_vm1, %v4938_v24 }
 0x101   :  { %v5212_v4 = vadd.f32 %v700_v23, %v395_v16  ;;  %1058 = vmatprep.mubr.bf16.mxu0 %v7150_v0  ;;  %1424 = vmatprep.mubr.bf16.mxu1 %v7150_v0 }
 0x102   :  { %v417_v5 = vpop.f32.mrf.mxu0  ;;  %v702_v7 = vpop.f32.mrf.mxu1 }
 0x103   :  { %v5216_v8 = vadd.f32 %v702_v7, %v397_v19 }
 0x104   :  { %v419_v10 = vpop.f32.mrf.mxu0  ;;  %v704_v11 = vpop.f32.mrf.mxu1 }
 0x105   :  { %v5218_v13 = vadd.f32 %v704_v11, %v399_v25 }
 0x106   :  { %v421_v14 = vpop.f32.mrf.mxu0  ;;  %v706_v17 = vpop.f32.mrf.mxu1 }
 0x107   :  { %v5220_v20 = vadd.f32 %v706_v17, %v401_v29 }
 0x108   :  { %v425_v26 = vpop.f32.mrf.mxu0  ;;  %v710_v24 = vpop.f32.mrf.mxu1  ;;  %4116 = vmatmul.mubr.msk.bf16.gmra.mxu0 %vm251_vm1, %v4985_v32  ;;  %4142 = vmatmul.mubr.msk.bf16.gmra.mxu1 %vm251_vm1, %v4949_v27 }
 0x109   :  { %v5226_v16 = vadd.f32 %v710_v24, %v405_v47  ;;  %1068 = vmatprep.mubr.bf16.mxu0 %v7150_v0  ;;  %1434 = vmatprep.mubr.bf16.mxu1 %v7150_v0 }
 0x10a   :  { %v427_v19 = vpop.f32.mrf.mxu0  ;;  %v712_v25 = vpop.f32.mrf.mxu1 }
 0x10b   :  { %v5230_v34 = vadd.f32 %v712_v25, %v407_v49 }
 0x10c   :  { %v429_v29 = vpop.f32.mrf.mxu0  ;;  %v714_v22 = vpop.f32.mrf.mxu1 }
 0x10d   :  { %v5232_v50 = vadd.f32 %v714_v22, %v409_v53 }
 0x10e   :  { %v431_v55 = vpop.f32.mrf.mxu0  ;;  %v716_v61 = vpop.f32.mrf.mxu1 }
 0x10f   :  { %v5234_v23 = vadd.f32 %v716_v61, %v411_v59 }
 0x110   :  { %v435_v7 = vpop.f32.mrf.mxu0  ;;  %v720_v27 = vpop.f32.mrf.mxu1  ;;  %4117 = vmatmul.mubr.msk.bf16.gmra.mxu0 %vm251_vm1, %v4996_v33  ;;  %4143 = vmatmul.mubr.msk.bf16.gmra.mxu1 %vm251_vm1, %v4962_v30 }
 0x111   :  { %v5240_v47 = vadd.f32 %v720_v27, %v415_v2  ;;  %1078 = vmatprep.mubr.bf16.mxu0 %v7150_v0  ;;  %1444 = vmatprep.mubr.bf16.mxu1 %v7150_v0 }
 0x112   :  { %v437_v49 = vpop.f32.mrf.mxu0  ;;  %v722_v53 = vpop.f32.mrf.mxu1 }
 0x113   :  { %v5244_v11 = vadd.f32 %v722_v53, %v417_v5 }
 0x114   :  { %v439_v59 = vpop.f32.mrf.mxu0  ;;  %v724_v17 = vpop.f32.mrf.mxu1 }
 0x115   :  { %v5246_v24 = vadd.f32 %v724_v17, %v419_v10 }
 0x116   :  { %v441_v25 = vpop.f32.mrf.mxu0  ;;  %v726_v22 = vpop.f32.mrf.mxu1 }
 0x117   :  { %v5248_v61 = vadd.f32 %v726_v22, %v421_v14 }
 0x118   :  { %v445_v3 = vpop.f32.mrf.mxu0  ;;  %v730_v30 = vpop.f32.mrf.mxu1  ;;  %4118 = vmatmul.mubr.msk.bf16.gmra.mxu0 %vm251_vm1, %v5007_v36  ;;  %4144 = vmatmul.mubr.msk.bf16.gmra.mxu1 %vm251_vm1, %v4974_v31 }
 0x119   :  { %v5254_v2 = vadd.f32 %v730_v30, %v425_v26  ;;  %1088 = vmatprep.mubr.bf16.mxu0 %v7150_v0  ;;  %1454 = vmatprep.mubr.bf16.mxu1 %v7150_v0 }
 0x11a   :  { %v447_v5 = vpop.f32.mrf.mxu0  ;;  %v732_v10 = vpop.f32.mrf.mxu1 }
 0x11b   :  { %v5258_v27 = vadd.f32 %v732_v10, %v427_v19 }
 0x11c   :  { %v449_v14 = vpop.f32.mrf.mxu0  ;;  %v734_v53 = vpop.f32.mrf.mxu1 }
 0x11d   :  { %v5260_v17 = vadd.f32 %v734_v53, %v429_v29 }
 0x11e   :  { %v451_v22 = vpop.f32.mrf.mxu0  ;;  %v736_v58 = vpop.f32.mrf.mxu1 }
 0x11f   :  { %v5262_v1 = vadd.f32 %v736_v58, %v431_v55 }
 0x120   :  { %v455_v62 = vpop.f32.mrf.mxu0  ;;  %v740_v31 = vpop.f32.mrf.mxu1  ;;  %4119 = vmatmul.mubr.msk.bf16.gmra.mxu0 %vm251_vm1, %v5018_v37  ;;  %4145 = vmatmul.mubr.msk.bf16.gmra.mxu1 %vm251_vm1, %v4985_v32 }
 0x121   :  { %v5268_v26 = vadd.f32 %v740_v31, %v435_v7  ;;  %1098 = vmatprep.mubr.bf16.mxu0 %v7150_v0  ;;  %1464 = vmatprep.mubr.bf16.mxu1 %v7150_v0 }
 0x122   :  { %v457_v19 = vpop.f32.mrf.mxu0  ;;  %v742_v29 = vpop.f32.mrf.mxu1 }
 0x123   :  { %v5272_v30 = vadd.f32 %v742_v29, %v437_v49 }
 0x124   :  { %v459_v58 = vpop.f32.mrf.mxu0  ;;  %v744_v55 = vpop.f32.mrf.mxu1 }
 0x125   :  { %v5274_v10 = vadd.f32 %v744_v55, %v439_v59 }
 0x126   :  { %v461_v53 = vpop.f32.mrf.mxu0  ;;  %v746_v60 = vpop.f32.mrf.mxu1 }
 0x127   :  { %7160 = vst [vmem:[#allocation17_spill] sm:$0xff] %v5274_v10  ;;  %v5276_v56 = vadd.f32 %v746_v60, %v441_v25 }
 0x128   :  { %v465_v54 = vpop.f32.mrf.mxu0  ;;  %v750_v32 = vpop.f32.mrf.mxu1  ;;  %4120 = vmatmul.mubr.msk.bf16.gmra.mxu0 %vm251_vm1, %v5029_v38  ;;  %4146 = vmatmul.mubr.msk.bf16.gmra.mxu1 %vm251_vm1, %v4996_v33 }
 0x129   :  { %7161 = vst [vmem:[#allocation18_spill] sm:$0xff] %v5276_v56  ;;  %v5282_v7 = vadd.f32 %v750_v32, %v445_v3  ;;  %1108 = vmatprep.mubr.bf16.mxu0 %v7150_v0  ;;  %1474 = vmatprep.mubr.bf16.mxu1 %v7150_v0 }
 0x12a   :  { %v467_v49 = vpop.f32.mrf.mxu0  ;;  %v752_v59 = vpop.f32.mrf.mxu1 }
 0x12b   :  { %v5286_v31 = vadd.f32 %v752_v59, %v447_v5 }
 0x12c   :  { %v469_v60 = vpop.f32.mrf.mxu0  ;;  %v754_v25 = vpop.f32.mrf.mxu1 }
 0x12d   :  { %7162 = vst [vmem:[#allocation19_spill] sm:$0xff] %v5286_v31  ;;  %v5288_v29 = vadd.f32 %v754_v25, %v449_v14 }
 0x12e   :  { %v471_v55 = vpop.f32.mrf.mxu0  ;;  %v756_v52 = vpop.f32.mrf.mxu1 }
 0x12f   :  { %7163 = vst [vmem:[#allocation20_spill] sm:$0xff] %v5288_v29  ;;  %v5290_v56 = vadd.f32 %v756_v52, %v451_v22 }
 0x130   :  { %v475_v10 = vpop.f32.mrf.mxu0  ;;  %v760_v33 = vpop.f32.mrf.mxu1  ;;  %4121 = vmatmul.mubr.msk.bf16.gmra.mxu0 %vm251_vm1, %v5040_v39  ;;  %4147 = vmatmul.mubr.msk.bf16.gmra.mxu1 %vm251_vm1, %v5007_v36 }
 0x131   :  { %7164 = vst [vmem:[#allocation21_spill] sm:$0xff] %v5290_v56  ;;  %v5296_v3 = vadd.f32 %v760_v33, %v455_v62  ;;  %1118 = vmatprep.mubr.bf16.mxu0 %v7150_v0  ;;  %1484 = vmatprep.mubr.bf16.mxu1 %v7150_v0 }
 0x132   :  { %v477_v5 = vpop.f32.mrf.mxu0  ;;  %v762_v14 = vpop.f32.mrf.mxu1 }
 0x133   :  { %v5300_v32 = vadd.f32 %v762_v14, %v457_v19 }
 0x134   :  { %v479_v52 = vpop.f32.mrf.mxu0  ;;  %v764_v22 = vpop.f32.mrf.mxu1 }
 0x135   :  { %7165 = vst [vmem:[#allocation22_spill] sm:$0xff] %v5300_v32  ;;  %v5302_v59 = vadd.f32 %v764_v22, %v459_v58 }
 0x136   :  { %v481_v25 = vpop.f32.mrf.mxu0  ;;  %v766_v56 = vpop.f32.mrf.mxu1 }
 0x137   :  { %7166 = vst [vmem:[#allocation23_spill] sm:$0xff] %v5302_v59  ;;  %v5304_v29 = vadd.f32 %v766_v56, %v461_v53 }
 0x138   :  { %v485_v31 = vpop.f32.mrf.mxu0  ;;  %v770_v36 = vpop.f32.mrf.mxu1  ;;  %4122 = vmatmul.mubr.msk.bf16.gmra.mxu0 %vm251_vm1, %v5051_v40  ;;  %4148 = vmatmul.mubr.msk.bf16.gmra.mxu1 %vm251_vm1, %v5018_v37 }
 0x139   :  { %7167 = vst [vmem:[#allocation24_spill] sm:$0xff] %v5304_v29  ;;  %v5310_v62 = vadd.f32 %v770_v36, %v465_v54  ;;  %1128 = vmatprep.mubr.bf16.mxu0 %v7150_v0  ;;  %1494 = vmatprep.mubr.bf16.mxu1 %v7150_v0 }
 0x13a   :  { %v487_v19 = vpop.f32.mrf.mxu0  ;;  %v772_v58 = vpop.f32.mrf.mxu1 }
 0x13b   :  { %v5314_v33 = vadd.f32 %v772_v58, %v467_v49 }
 0x13c   :  { %v489_v56 = vpop.f32.mrf.mxu0  ;;  %v774_v53 = vpop.f32.mrf.mxu1 }
 0x13d   :  { %7168 = vst [vmem:[#allocation25_spill] sm:$0xff] %v5314_v33  ;;  %v5316_v14 = vadd.f32 %v774_v53, %v469_v60 }
 0x13e   :  { %v491_v22 = vpop.f32.mrf.mxu0  ;;  %v776_v29 = vpop.f32.mrf.mxu1 }
 0x13f   :  { %7169 = vst [vmem:[#allocation26_spill] sm:$0xff] %v5316_v14  ;;  %v5318_v59 = vadd.f32 %v776_v29, %v471_v55 }
 0x140   :  { %v495_v32 = vpop.f32.mrf.mxu0  ;;  %v780_v37 = vpop.f32.mrf.mxu1  ;;  %4123 = vmatmul.mubr.msk.bf16.gmra.mxu0 %vm251_vm1, %v5062_v41  ;;  %4149 = vmatmul.mubr.msk.bf16.gmra.mxu1 %vm251_vm1, %v5029_v38 }
 0x141   :  { %7170 = vst [vmem:[#allocation27_spill] sm:$0xff] %v5318_v59  ;;  %v5324_v54 = vadd.f32 %v780_v37, %v475_v10  ;;  %1138 = vmatprep.mubr.bf16.mxu0 %v7150_v0  ;;  %1504 = vmatprep.mubr.bf16.mxu1 %v7150_v0 }
 0x142   :  { %v497_v49 = vpop.f32.mrf.mxu0  ;;  %v782_v60 = vpop.f32.mrf.mxu1 }
 0x143   :  { %v5328_v36 = vadd.f32 %v782_v60, %v477_v5 }
 0x144   :  { %v499_v29 = vpop.f32.mrf.mxu0  ;;  %v784_v55 = vpop.f32.mrf.mxu1 }
 0x145   :  { %7171 = vst [vmem:[#allocation28_spill] sm:$0xff] %v5328_v36  ;;  %v5330_v58 = vadd.f32 %v784_v55, %v479_v52 }
 0x146   :  { %v501_v53 = vpop.f32.mrf.mxu0  ;;  %v786_v59 = vpop.f32.mrf.mxu1 }
 0x147   :  { %7172 = vst [vmem:[#allocation29_spill] sm:$0xff] %v5330_v58  ;;  %v5332_v14 = vadd.f32 %v786_v59, %v481_v25 }
 0x148   :  { %v505_v33 = vpop.f32.mrf.mxu0  ;;  %v790_v38 = vpop.f32.mrf.mxu1  ;;  %4124 = vmatmul.mubr.msk.bf16.gmra.mxu0 %vm251_vm1, %v5073_v42  ;;  %4150 = vmatmul.mubr.msk.bf16.gmra.mxu1 %vm251_vm1, %v5040_v39 }
 0x149   :  { %7173 = vst [vmem:[#allocation30_spill] sm:$0xff] %v5332_v14  ;;  %v5338_v10 = vadd.f32 %v790_v38, %v485_v31  ;;  %1148 = vmatprep.mubr.bf16.mxu0 %v7150_v0  ;;  %1514 = vmatprep.mubr.bf16.mxu1 %v7150_v0 }
 0x14a   :  { %v507_v5 = vpop.f32.mrf.mxu0  ;;  %v792_v52 = vpop.f32.mrf.mxu1 }
 0x14b   :  { %v5342_v37 = vadd.f32 %v792_v52, %v487_v19 }
 0x14c   :  { %v509_v59 = vpop.f32.mrf.mxu0  ;;  %v794_v25 = vpop.f32.mrf.mxu1 }
 0x14d   :  { %7174 = vst [vmem:[#allocation31_spill] sm:$0xff] %v5342_v37  ;;  %v5344_v60 = vadd.f32 %v794_v25, %v489_v56 }
 0x14e   :  { %v511_v55 = vpop.f32.mrf.mxu0  ;;  %v796_v14 = vpop.f32.mrf.mxu1 }
 0x14f   :  { %7175 = vst [vmem:[#allocation32_spill] sm:$0xff] %v5344_v60  ;;  %v5346_v58 = vadd.f32 %v796_v14, %v491_v22 }
 0x150   :  { %v515_v36 = vpop.f32.mrf.mxu0  ;;  %v800_v39 = vpop.f32.mrf.mxu1  ;;  %4125 = vmatmul.mubr.msk.bf16.gmra.mxu0 %vm251_vm1, %v5084_v43  ;;  %4151 = vmatmul.mubr.msk.bf16.gmra.mxu1 %vm251_vm1, %v5051_v40 }
 0x151   :  { %7176 = vst [vmem:[#allocation33_spill] sm:$0xff] %v5346_v58  ;;  %v5352_v31 = vadd.f32 %v800_v39, %v495_v32  ;;  %1158 = vmatprep.mubr.bf16.mxu0 %v7150_v0  ;;  %1524 = vmatprep.mubr.bf16.mxu1 %v7150_v0 }
 0x152   :  { %v517_v19 = vpop.f32.mrf.mxu0  ;;  %v802_v56 = vpop.f32.mrf.mxu1 }
 0x153   :  { %v5356_v38 = vadd.f32 %v802_v56, %v497_v49 }
 0x154   :  { %v519_v14 = vpop.f32.mrf.mxu0  ;;  %v804_v22 = vpop.f32.mrf.mxu1 }
 0x155   :  { %7177 = vst [vmem:[#allocation34_spill] sm:$0xff] %v5356_v38  ;;  %v5358_v52 = vadd.f32 %v804_v22, %v499_v29 }
 0x156   :  { %v521_v25 = vpop.f32.mrf.mxu0  ;;  %v806_v58 = vpop.f32.mrf.mxu1 }
 0x157   :  { %7178 = vst [vmem:[#allocation35_spill] sm:$0xff] %v5358_v52  ;;  %v5360_v60 = vadd.f32 %v806_v58, %v501_v53 }
 0x158   :  { %v525_v37 = vpop.f32.mrf.mxu0  ;;  %v810_v40 = vpop.f32.mrf.mxu1  ;;  %4126 = vmatmul.mubr.msk.bf16.gmra.mxu0 %vm251_vm1, %v5095_v44  ;;  %4152 = vmatmul.mubr.msk.bf16.gmra.mxu1 %vm251_vm1, %v5062_v41 }
 0x159   :  { %7179 = vst [vmem:[#allocation36_spill] sm:$0xff] %v5360_v60  ;;  %v5366_v32 = vadd.f32 %v810_v40, %v505_v33  ;;  %1168 = vmatprep.mubr.bf16.mxu0 %v7150_v0  ;;  %1534 = vmatprep.mubr.bf16.mxu1 %v7150_v0 }
 0x15a   :  { %v527_v49 = vpop.f32.mrf.mxu0  ;;  %v812_v29 = vpop.f32.mrf.mxu1 }
 0x15b   :  { %v5370_v39 = vadd.f32 %v812_v29, %v507_v5 }
 0x15c   :  { %v529_v58 = vpop.f32.mrf.mxu0  ;;  %v814_v53 = vpop.f32.mrf.mxu1 }
 0x15d   :  { %7180 = vst [vmem:[#allocation37_spill] sm:$0xff] %v5370_v39  ;;  %v5372_v56 = vadd.f32 %v814_v53, %v509_v59 }
 0x15e   :  { %v531_v22 = vpop.f32.mrf.mxu0  ;;  %v816_v60 = vpop.f32.mrf.mxu1 }
 0x15f   :  { %7181 = vst [vmem:[#allocation38_spill] sm:$0xff] %v5372_v56  ;;  %v5374_v52 = vadd.f32 %v816_v60, %v511_v55 }
 0x160   :  { %v535_v38 = vpop.f32.mrf.mxu0  ;;  %v820_v41 = vpop.f32.mrf.mxu1  ;;  %4127 = vmatmul.mubr.msk.bf16.gmra.mxu0 %vm251_vm1, %v5106_v45  ;;  %4153 = vmatmul.mubr.msk.bf16.gmra.mxu1 %vm251_vm1, %v5073_v42 }
 0x161   :  { %7182 = vst [vmem:[#allocation39_spill] sm:$0xff] %v5374_v52  ;;  %v5380_v33 = vadd.f32 %v820_v41, %v515_v36  ;;  %1178 = vmatprep.mubr.bf16.mxu0 %v7150_v0  ;;  %1544 = vmatprep.mubr.bf16.mxu1 %v7150_v0 }
 0x162   :  { %v537_v5 = vpop.f32.mrf.mxu0  ;;  %v822_v59 = vpop.f32.mrf.mxu1 }
 0x163   :  { %v5384_v40 = vadd.f32 %v822_v59, %v517_v19 }
 0x164   :  { %v539_v60 = vpop.f32.mrf.mxu0  ;;  %v824_v55 = vpop.f32.mrf.mxu1 }
 0x165   :  { %7183 = vst [vmem:[#allocation40_spill] sm:$0xff] %v5384_v40  ;;  %v5386_v29 = vadd.f32 %v824_v55, %v519_v14 }
 0x166   :  { %v541_v53 = vpop.f32.mrf.mxu0  ;;  %v826_v52 = vpop.f32.mrf.mxu1 }
 0x167   :  { %7184 = vst [vmem:[#allocation41_spill] sm:$0xff] %v5386_v29  ;;  %v5388_v56 = vadd.f32 %v826_v52, %v521_v25  ;;  %v4568_v52 = vld [vmem:[%s7143_s3 + $0xf0] ss:$8 sps:$4 sm:$0xff]   ;;  %v4570_v25 = vld [vmem:[%s7143_s3 + $0xf4] ss:$8 sps:$4 sm:$0xff]  }
 0x168   :  { %v545_v39 = vpop.f32.mrf.mxu0  ;;  %v830_v42 = vpop.f32.mrf.mxu1  ;;  %4128 = vmatmul.mubr.msk.bf16.gmra.mxu0 %vm251_vm1, %v5117_v46  ;;  %4154 = vmatmul.mubr.msk.bf16.gmra.mxu1 %vm251_vm1, %v5084_v43 }
 0x169   :  { %7185 = vst [vmem:[#allocation42_spill] sm:$0xff] %v5388_v56  ;;  %v5394_v36 = vadd.f32 %v830_v42, %v525_v37  ;;  %1188 = vmatprep.mubr.bf16.mxu0 %v7150_v0  ;;  %1554 = vmatprep.mubr.bf16.mxu1 %v7150_v0 }
 0x16a   :  { %v547_v19 = vpop.f32.mrf.mxu0  ;;  %v832_v14 = vpop.f32.mrf.mxu1  ;;  %2379 = vmatprep.subr.bf16.mxu1 %v4570_v25  ;;  %v7190_v25 = vmov 0  }
 0x16b   :  { %7186 = vst [vmem:[#allocation43_spill] sm:$0xff] %v5394_v36  ;;  %v5398_v41 = vadd.f32 %v832_v14, %v527_v49  ;;  %2380 = vmatpush1.bf16.msra.mxu1 %v4568_v52 }
 0x16c   :  { %v549_v59 = vpop.f32.mrf.mxu0  ;;  %v834_v43 = vpop.f32.mrf.mxu1 }
 0x16d   :  { %7187 = vst [vmem:[#allocation44_spill] sm:$0xff] %v5398_v41  ;;  %v5406_v37 = vadd.f32 %v834_v43, %v529_v58  ;;  %v5413_v41 = vld [vmem:[%s7140_s0 + $0xb8] sm:$0xff]  }
 0x16e   :  { %v551_v55 = vpop.f32.mrf.mxu0  ;;  %v836_v42 = vpop.f32.mrf.mxu1 }
 0x16f   :  { %7188 = vst [vmem:[#allocation45_spill] sm:$0xff] %v5406_v37  ;;  %v5408_v0 = vadd.f32 %v836_v42, %v531_v22 }
 0x170   :  { %v555_v49 = vpop.f32.mrf.mxu0  ;;  %v840_v14 = vpop.f32.mrf.mxu1  ;;  %4129 = vmatmul.mubr.msk.bf16.gmra.mxu0 %vm251_vm1, %v5413_v41  ;;  %4155 = vmatmul.mubr.msk.bf16.gmra.mxu1 %vm251_vm1, %v5095_v44 }
 0x171   :  { %7189 = vst [vmem:[#allocation46_spill] sm:$0xff] %v5408_v0  ;;  %v5419_v58 = vadd.f32 %v840_v14, %v535_v38  ;;  %1198 = vmatprep.mubr.bf16.mxu0 %v7190_v25  ;;  %1564 = vmatprep.mubr.bf16.mxu1 %v7190_v25  ;;  %v5432_v38 = vld [vmem:[%s7140_s0 + $0xc0] sm:$0xff]  }
 0x172   :  { %v557_v22 = vpop.f32.mrf.mxu0  ;;  %v842_v52 = vpop.f32.mrf.mxu1 }
 0x173   :  { %v5423_v43 = vadd.f32 %v842_v52, %v537_v5  ;;  %v5447_v52 = vld [vmem:[%s7140_s0 + $0xc8] sm:$0xff]  }
 0x174   :  { %v559_v42 = vpop.f32.mrf.mxu0  ;;  %v844_v0 = vpop.f32.mrf.mxu1 }
 0x175   :  { %v5425_v37 = vadd.f32 %v844_v0, %v539_v60 }
 0x176   :  { %v561_v36 = vpop.f32.mrf.mxu0  ;;  %v846_v56 = vpop.f32.mrf.mxu1 }
 0x177   :  { %7191 = vst [vmem:[#allocation47_spill] sm:$0xff] %v5425_v37  ;;  %v5427_v29 = vadd.f32 %v846_v56, %v541_v53 }
 0x178   :  { %v565_v40 = vpop.f32.mrf.mxu0  ;;  %v850_v44 = vpop.f32.mrf.mxu1  ;;  %4130 = vmatmul.mubr.msk.bf16.gmra.mxu0 %vm251_vm1, %v5432_v38  ;;  %4156 = vmatmul.mubr.msk.bf16.gmra.mxu1 %vm251_vm1, %v5106_v45 }
 0x179   :  { %7192 = vst [vmem:[#allocation48_spill] sm:$0xff] %v5427_v29  ;;  %v5438_v5 = vadd.f32 %v850_v44, %v545_v39  ;;  %1208 = vmatprep.mubr.bf16.mxu0 %v7190_v25  ;;  %1574 = vmatprep.mubr.bf16.mxu1 %v7190_v25 }
 0x17a   :  { %v567_v0 = vpop.f32.mrf.mxu0  ;;  %v852_v56 = vpop.f32.mrf.mxu1 }
 0x17b   :  { %7193 = vst [vmem:[#allocation49_spill] sm:$0xff] %v5438_v5  ;;  %v5442_v60 = vadd.f32 %v852_v56, %v547_v19 }
 0x17c   :  { %v569_v53 = vpop.f32.mrf.mxu0  ;;  %v854_v14 = vpop.f32.mrf.mxu1 }
 0x17d   :  { %v5449_v29 = vadd.f32 %v854_v14, %v549_v59 }
 0x17e   :  { %v5451_v45 = vpop.f32.mrf.mxu0  ;;  %v856_v39 = vpop.f32.mrf.mxu1 }
 0x17f   :  { %7194 = vst [vmem:[#allocation50_spill] sm:$0xff] %v5451_v45  ;;  %v5453_v44 = vadd.f32 %v856_v39, %v551_v55  ;;  %v4571_v55 = vld [vmem:[%s7143_s3 + $0xe0] ss:$8 sps:$4 sm:$0xff]   ;;  %v4573_v39 = vld [vmem:[%s7143_s3 + $0xe4] ss:$8 sps:$4 sm:$0xff]  }
 0x180   :  { %v575_v5 = vpop.f32.mrf.mxu0  ;;  %v860_v37 = vpop.f32.mrf.mxu1  ;;  %4131 = vmatmul.mubr.msk.bf16.gmra.mxu0 %vm251_vm1, %v5447_v52  ;;  %4157 = vmatmul.mubr.msk.bf16.gmra.mxu1 %vm251_vm1, %v5117_v46 }
 0x181   :  { %7195 = vst [vmem:[#allocation51_spill] sm:$0xff] %v5453_v44  ;;  %v5459_v19 = vadd.f32 %v860_v37, %v555_v49  ;;  %1584 = vmatprep.mubr.bf16.mxu1 %v7190_v25  ;;  %1790 = vmatprep.mubr.bf16.mxu0 %v7190_v25 }
 0x182   :  { %v577_v59 = vpop.f32.mrf.mxu0  ;;  %v862_v56 = vpop.f32.mrf.mxu1  ;;  %2381 = vmatprep.subr.bf16.mxu1 %v4573_v39 }
 0x183   :  { %7196 = vst [vmem:[#allocation52_spill] sm:$0xff] %v5459_v19  ;;  %v5463_v14 = vadd.f32 %v862_v56, %v557_v22  ;;  %2382 = vmatpush1.bf16.msra.mxu1 %v4571_v55 }
 0x184   :  { %v579_v45 = vpop.f32.mrf.mxu0  ;;  %v864_v46 = vpop.f32.mrf.mxu1 }
 0x185   :  { %7197 = vst [vmem:[#allocation53_spill] sm:$0xff] %v5463_v14  ;;  %v5471_v37 = vadd.f32 %v864_v46, %v559_v42  ;;  %v4739_v14 = vld [vmem:[%s7140_s0 + $0x20] sm:$0xff]  }
 0x186   :  { %v5473_v49 = vpop.f32.mrf.mxu0  ;;  %v866_v19 = vpop.f32.mrf.mxu1 }
 0x187   :  { %7198 = vst [vmem:[#allocation54_spill] sm:$0xff] %v5471_v37  ;;  %7199 = vst [vmem:[#allocation55_spill] sm:$0xff] %v5473_v49  ;;  %v5475_v44 = vadd.f32 %v866_v19, %v561_v36 }
 0x188   :  { %v870_v22 = vpop.f32.mrf.mxu1  ;;  %v980_v56 = vpop.f32.mrf.mxu0  ;;  %4158 = vmatmul.mubr.msk.bf16.gmra.mxu1 %vm251_vm1, %v5413_v41  ;;  %4168 = vmatmul.mubr.msk.bf16.vlgmr.msra.gmra.mxu0 %vm251_vm1, %v4739_v14 }
 0x189   :  { %7200 = vst [vmem:[#allocation56_spill] sm:$0xff] %v5475_v44  ;;  %v5483_v42 = vadd.f32 %v870_v22, %v565_v40  ;;  %v5486_v39 = vadd.f32 %v980_v56, %v5170_v6  ;;  %1594 = vmatprep.mubr.bf16.mxu1 %v7190_v25  ;;  %1800 = vmatprep.mubr.bf16.mxu0 %v7190_v25 }
 0x18a   :  { %v872_v36 = vpop.f32.mrf.mxu1  ;;  %v982_v19 = vpop.f32.mrf.mxu0 }
 0x18b   :  { %7201 = vst [vmem:[#allocation57_spill] sm:$0xff] %v5483_v42  ;;  %v5490_v55 = vadd.f32 %v872_v36, %v567_v0  ;;  %v5493_v46 = vadd.f32 %v982_v19, %v5174_v9  ;;  %v4740_v9 = vld [vmem:[%s7140_s0 + $0x28] sm:$0xff]  }
 0x18c   :  { %v874_v49 = vpop.f32.mrf.mxu1  ;;  %v984_v44 = vpop.f32.mrf.mxu0 }
 0x18d   :  { %v5495_v37 = vadd.f32 %v874_v49, %v569_v53  ;;  %v5498_v40 = vadd.f32 %v984_v44, %v5176_v12 }
 0x18e   :  { %v5500_v6 = vpop.f32.mrf.mxu1  ;;  %v986_v14 = vpop.f32.mrf.mxu0 }
 0x18f   :  { %7202 = vst [vmem:[#allocation58_spill] sm:$0xff] %v5500_v6  ;;  %v5503_v22 = vadd.f32 %v986_v14, %v5178_v15 }
 0x190   :  { %v880_v56 = vpop.f32.mrf.mxu1  ;;  %v990_v42 = vpop.f32.mrf.mxu0  ;;  %4159 = vmatmul.mubr.msk.bf16.gmra.mxu1 %vm251_vm1, %v5432_v38  ;;  %4169 = vmatmul.mubr.msk.bf16.gmra.mxu0 %vm251_vm1, %v4740_v9 }
 0x191   :  { %v5511_v0 = vadd.f32 %v880_v56, %v575_v5  ;;  %v5514_v12 = vadd.f32 %v990_v42, %v5184_v18  ;;  %1604 = vmatprep.mubr.bf16.mxu1 %v7190_v25  ;;  %1810 = vmatprep.mubr.bf16.mxu0 %v7190_v25 }
 0x192   :  { %v882_v15 = vpop.f32.mrf.mxu1  ;;  %v992_v53 = vpop.f32.mrf.mxu0 }
 0x193   :  { %v5518_v44 = vadd.f32 %v882_v15, %v577_v59  ;;  %v5521_v49 = vadd.f32 %v992_v53, %v5188_v21  ;;  %v4741_v21 = vld [vmem:[%s7140_s0 + $0x30] sm:$0xff]  }
 0x194   :  { %v884_v36 = vpop.f32.mrf.mxu1  ;;  %v994_v19 = vpop.f32.mrf.mxu0  ;;  %v4574_v53 = vld [vmem:[%s7143_s3 + $0xd0] ss:$8 sps:$4 sm:$0xff]  }
 0x195   :  { %v5523_v14 = vadd.f32 %v884_v36, %v579_v45  ;;  %v5526_v5 = vadd.f32 %v994_v19, %v5190_v28  ;;  %v4576_v36 = vld [vmem:[%s7143_s3 + $0xd4] ss:$8 sps:$4 sm:$0xff]  }
 0x196   :  { %v5528_v18 = vpop.f32.mrf.mxu1  ;;  %v996_v42 = vpop.f32.mrf.mxu0  ;;  %2383 = vmatprep.subr.bf16.mxu1 %v4576_v36 }
 0x197   :  { %7203 = vst [vmem:[#allocation59_spill] sm:$0xff] %v5528_v18  ;;  %v5531_v56 = vadd.f32 %v996_v42, %v5192_v35  ;;  %v5562_v42 = vld [vmem:[%s7140_s0 + $0xd0] sm:$0xff]   ;;  %2384 = vmatpush1.bf16.msra.mxu1 %v4574_v53 }
 0x198   :  { %v5533_v9 = vpop.f32.mrf.mxu1  ;;  %v1000_v59 = vpop.f32.mrf.mxu0  ;;  %4160 = vmatmul.mubr.msk.bf16.gmra.mxu1 %vm251_vm1, %v5447_v52  ;;  %4170 = vmatmul.mubr.msk.bf16.gmra.mxu0 %vm251_vm1, %v4741_v21 }
 0x199   :  { %v5542_v28 = vadd.f32 %v1000_v59, %v5198_v48  ;;  %1614 = vmatprep.mubr.bf16.mxu1 %v7190_v25  ;;  %1820 = vmatprep.mubr.bf16.mxu0 %v7190_v25 }
 0x19a   :  { %v5546_v35 = vpop.f32.mrf.mxu1  ;;  %v1002_v45 = vpop.f32.mrf.mxu0 }
 0x19b   :  { %v5549_v15 = vadd.f32 %v1002_v45, %v5202_v51 }
 0x19c   :  { %v5557_v48 = vpop.f32.mrf.mxu1  ;;  %v1004_v19 = vpop.f32.mrf.mxu0 }
 0x19d   :  { %7204 = vst [vmem:[#allocation60_spill] sm:$0xff] %v5549_v15  ;;  %v5565_v59 = vadd.f32 %v1004_v19, %v5204_v57  ;;  %v4742_v15 = vld [vmem:[%s7140_s0 + $0x38] sm:$0xff]  }
 0x19e   :  { %v5567_v51 = vpop.f32.mrf.mxu1  ;;  %v1006_v21 = vpop.f32.mrf.mxu0 }
 0x19f   :  { %7205 = vst [vmem:[#allocation61_spill] sm:$0xff] %v5565_v59  ;;  %7206 = vst [vmem:[#allocation62_spill] sm:$0xff] %v5567_v51  ;;  %v5570_v45 = vadd.f32 %v1006_v21, %v5206_v63  ;;  %v4743_v59 = vld [vmem:[%s7140_s0 + $0x40] sm:$0xff]  }
 0x1a0   :  { %v5572_v18 = vpop.f32.mrf.mxu1  ;;  %v1010_v6 = vpop.f32.mrf.mxu0  ;;  %4161 = vmatmul.mubr.msk.bf16.gmra.mxu1 %vm251_vm1, %v5562_v42  ;;  %4171 = vmatmul.mubr.msk.bf16.gmra.mxu0 %vm251_vm1, %v4742_v15 }
 0x1a1   :  { %7207 = vst [vmem:[#allocation63_spill] sm:$0xff] %v5570_v45  ;;  %v5581_v57 = vadd.f32 %v1010_v6, %v5212_v4  ;;  %1830 = vmatprep.mubr.bf16.mxu0 %v7190_v25  ;;  %2411 = vmatprep.mubr.bf16.mxu1 %v7190_v25 }
 0x1a2   :  { %v5585_v63 = vpop.f32.mrf.mxu1  ;;  %v1012_v53 = vpop.f32.mrf.mxu0 }
 0x1a3   :  { %7208 = vst [vmem:[#allocation64_spill] sm:$0xff] %v5581_v57  ;;  %v5588_v36 = vadd.f32 %v1012_v53, %v5216_v8 }
 0x1a4   :  { %v5590_v19 = vpop.f32.mrf.mxu1  ;;  %v1014_v21 = vpop.f32.mrf.mxu0 }
 0x1a5   :  { %v5593_v51 = vadd.f32 %v1014_v21, %v5218_v13 }
 0x1a6   :  { %v5595_v15 = vpop.f32.mrf.mxu1  ;;  %v1016_v4 = vpop.f32.mrf.mxu0 }
 0x1a7   :  { %7209 = vst [vmem:[#allocation65_spill] sm:$0xff] %v5595_v15  ;;  %v5598_v6 = vadd.f32 %v1016_v4, %v5220_v20 }
 0x1a8   :  { %v1020_v57 = vpop.f32.mrf.mxu0  ;;  %v1386_v45 = vpop.f32.mrf.mxu1  ;;  %4172 = vmatmul.mubr.msk.bf16.gmra.mxu0 %vm251_vm1, %v4743_v59 }
 0x1a9   :  { %7210 = vst [vmem:[#allocation66_spill] sm:$0xff] %v5598_v6  ;;  %v5605_v8 = vadd.f32 %v1020_v57, %v5226_v16  ;;  %v5608_v13 = vadd.f32 %v1386_v45, %v5486_v39  ;;  %1840 = vmatprep.mubr.bf16.mxu0 %v7190_v25 }
 0x1aa   :  { %v1022_v53 = vpop.f32.mrf.mxu0  ;;  %v1388_v21 = vpop.f32.mrf.mxu1 }
 0x1ab   :  { %7211 = vst [vmem:[#allocation67_spill] sm:$0xff] %v5605_v8  ;;  %v5612_v20 = vadd.f32 %v1022_v53, %v5230_v34  ;;  %v5615_v4 = vadd.f32 %v1388_v21, %v5493_v46  ;;  %v4744_v46 = vld [vmem:[%s7140_s0 + $0x48] sm:$0xff]  }
 0x1ac   :  { %v1024_v15 = vpop.f32.mrf.mxu0  ;;  %v1390_v6 = vpop.f32.mrf.mxu1  ;;  %v4577_v21 = vld [vmem:[%s7143_s3 + $0xc0] ss:$8 sps:$4 sm:$0xff]  }
 0x1ad   :  { %v5618_v59 = vadd.f32 %v1024_v15, %v5232_v50  ;;  %v5621_v16 = vadd.f32 %v1390_v6, %v5498_v40 }
 0x1ae   :  { %v1026_v39 = vpop.f32.mrf.mxu0  ;;  %v5623_v45 = vpop.f32.mrf.mxu1 }
 0x1af   :  { %7212 = vst [vmem:[#allocation68_spill] sm:$0xff] %v5618_v59  ;;  %v5626_v57 = vadd.f32 %v1026_v39, %v5234_v23 }
 0x1b0   :  { %v1030_v8 = vpop.f32.mrf.mxu0  ;;  %v1396_v34 = vpop.f32.mrf.mxu1  ;;  %4173 = vmatmul.mubr.msk.bf16.gmra.mxu0 %vm251_vm1, %v4744_v46 }
 0x1b1   :  { %7213 = vst [vmem:[#allocation69_spill] sm:$0xff] %v5626_v57  ;;  %v5633_v50 = vadd.f32 %v1030_v8, %v5240_v47  ;;  %v5636_v40 = vadd.f32 %v1396_v34, %v5514_v12  ;;  %1850 = vmatprep.mubr.bf16.mxu0 %v7190_v25  ;;  %v4579_v47 = vld [vmem:[%s7143_s3 + $0xc4] ss:$8 sps:$4 sm:$0xff]  }
 0x1b2   :  { %v1032_v15 = vpop.f32.mrf.mxu0  ;;  %v1398_v6 = vpop.f32.mrf.mxu1  ;;  %2385 = vmatprep.subr.bf16.mxu1 %v4579_v47 }
 0x1b3   :  { %7214 = vst [vmem:[#allocation70_spill] sm:$0xff] %v5633_v50  ;;  %v5640_v23 = vadd.f32 %v1032_v15, %v5244_v11  ;;  %v5643_v53 = vadd.f32 %v1398_v6, %v5521_v49  ;;  %2386 = vmatpush1.bf16.msra.mxu1 %v4577_v21  ;;  %v4581_v50 = vld [vmem:[%s7143_s3 + $0xb0] ss:$8 sps:$4 sm:$0xff]  }
 0x1b4   :  { %v1034_v12 = vpop.f32.mrf.mxu0  ;;  %v1400_v8 = vpop.f32.mrf.mxu1 }
 0x1b5   :  { %7215 = vst [vmem:[#allocation71_spill] sm:$0xff] %v5640_v23  ;;  %v5652_v39 = vadd.f32 %v1034_v12, %v5246_v24  ;;  %v5655_v34 = vadd.f32 %v1400_v8, %v5526_v5  ;;  %v4745_v23 = vld [vmem:[%s7140_s0 + $0x50] sm:$0xff]  }
 0x1b6   :  { %v1036_v11 = vpop.f32.mrf.mxu0  ;;  %v5657_v49 = vpop.f32.mrf.mxu1 }
 0x1b7   :  { %7216 = vst [vmem:[#allocation72_spill] sm:$0xff] %v5652_v39  ;;  %v5660_v46 = vadd.f32 %v1036_v11, %v5248_v61 }
 0x1b8   :  { %v1040_v15 = vpop.f32.mrf.mxu0  ;;  %v5662_v6 = vpop.f32.mrf.mxu1  ;;  %4174 = vmatmul.mubr.msk.bf16.gmra.mxu0 %vm251_vm1, %v4745_v23 }
 0x1b9   :  { %7217 = vst [vmem:[#allocation73_spill] sm:$0xff] %v5660_v46  ;;  %v5669_v24 = vadd.f32 %v1040_v15, %v5254_v2  ;;  %1860 = vmatprep.mubr.bf16.mxu0 %v7190_v25 }
 0x1ba   :  { %v1042_v5 = vpop.f32.mrf.mxu0  ;;  %v5672_v47 = vpop.f32.mrf.mxu1 }
 0x1bb   :  { %7218 = vst [vmem:[#allocation74_spill] sm:$0xff] %v5669_v24  ;;  %v5675_v61 = vadd.f32 %v1042_v5, %v5258_v27  ;;  %v4746_v27 = vld [vmem:[%s7140_s0 + $0x58] sm:$0xff]  }
 0x1bc   :  { %v1044_v21 = vpop.f32.mrf.mxu0  ;;  %v5677_v12 = vpop.f32.mrf.mxu1 }
 0x1bd   :  { %7219 = vst [vmem:[#allocation75_spill] sm:$0xff] %v5675_v61  ;;  %v5680_v8 = vadd.f32 %v1044_v21, %v5260_v17 }
 0x1be   :  { %v1046_v11 = vpop.f32.mrf.mxu0  ;;  %v5682_v46 = vpop.f32.mrf.mxu1 }
 0x1bf   :  { %7220 = vst [vmem:[#allocation76_spill] sm:$0xff] %v5680_v8  ;;  %v5685_v2 = vadd.f32 %v1046_v11, %v5262_v1  ;;  %v7224_v8 = vld [vmem:[#allocation17_spill] sm:$0xff] }
 0x1c0   :  { %v1050_v23 = vpop.f32.mrf.mxu0  ;;  %v5687_v15 = vpop.f32.mrf.mxu1  ;;  %4175 = vmatmul.mubr.msk.bf16.gmra.mxu0 %vm251_vm1, %v4746_v27  ;;  %v7226_v27 = vld [vmem:[#allocation18_spill] sm:$0xff] }
 0x1c1   :  { %7221 = vst [vmem:[#allocation77_spill] sm:$0xff] %v5685_v2  ;;  %v5694_v5 = vadd.f32 %v1050_v23, %v5268_v26  ;;  %1870 = vmatprep.mubr.bf16.mxu0 %v7190_v25 }
 0x1c2   :  { %v1052_v17 = vpop.f32.mrf.mxu0  ;;  %v5697_v21 = vpop.f32.mrf.mxu1 }
 0x1c3   :  { %7222 = vst [vmem:[#allocation78_spill] sm:$0xff] %v5694_v5  ;;  %v5700_v1 = vadd.f32 %v1052_v17, %v5272_v30  ;;  %v4747_v30 = vld [vmem:[%s7140_s0 + $0x60] sm:$0xff]  }
 0x1c4   :  { %v1054_v11 = vpop.f32.mrf.mxu0  ;;  %v5702_v2 = vpop.f32.mrf.mxu1 }
 0x1c5   :  { %7223 = vst [vmem:[#allocation79_spill] sm:$0xff] %v5700_v1  ;;  %v5705_v61 = vadd.f32 %v1054_v11, %v7224_v8 }
 0x1c6   :  { %v1056_v24 = vpop.f32.mrf.mxu0  ;;  %v5707_v39 = vpop.f32.mrf.mxu1 }
 0x1c7   :  { %7225 = vst [vmem:[#allocation17_spill] sm:$0xff] %v5705_v61  ;;  %v5710_v26 = vadd.f32 %v1056_v24, %v7226_v27  ;;  %v7229_v61 = vld [vmem:[#allocation19_spill] sm:$0xff] }
 0x1c8   :  { %v1060_v23 = vpop.f32.mrf.mxu0  ;;  %v5712_v5 = vpop.f32.mrf.mxu1  ;;  %4176 = vmatmul.mubr.msk.bf16.gmra.mxu0 %vm251_vm1, %v4747_v30 }
 0x1c9   :  { %7227 = vst [vmem:[#allocation18_spill] sm:$0xff] %v5710_v26  ;;  %v5719_v17 = vadd.f32 %v1060_v23, %v5282_v7  ;;  %1880 = vmatprep.mubr.bf16.mxu0 %v7190_v25  ;;  %v7231_v26 = vld [vmem:[#allocation20_spill] sm:$0xff]  ;;  %v4583_v7 = vld [vmem:[%s7143_s3 + $0xb4] ss:$8 sps:$4 sm:$0xff]  }
 0x1ca   :  { %v1062_v8 = vpop.f32.mrf.mxu0  ;;  %v5722_v11 = vpop.f32.mrf.mxu1  ;;  %2387 = vmatprep.subr.bf16.mxu1 %v4583_v7 }
 0x1cb   :  { %7228 = vst [vmem:[#allocation80_spill] sm:$0xff] %v5719_v17  ;;  %v5725_v24 = vadd.f32 %v1062_v8, %v7229_v61  ;;  %v7234_v17 = vld [vmem:[#allocation21_spill] sm:$0xff]  ;;  %2388 = vmatpush1.bf16.msra.mxu1 %v4581_v50 }
 0x1cc   :  { %v1064_v27 = vpop.f32.mrf.mxu0  ;;  %v5736_v23 = vpop.f32.mrf.mxu1 }
 0x1cd   :  { %7230 = vst [vmem:[#allocation19_spill] sm:$0xff] %v5725_v24  ;;  %v5728_v1 = vadd.f32 %v1064_v27, %v7231_v26  ;;  %7233 = vst [vmem:[#allocation81_spill] sm:$0xff] %v5736_v23  ;;  %v4748_v26 = vld [vmem:[%s7140_s0 + $0x68] sm:$0xff]   ;;  %v7237_v24 = vld [vmem:[#allocation22_spill] sm:$0xff] }
 0x1ce   :  { %v1066_v30 = vpop.f32.mrf.mxu0  ;;  %v5749_v27 = vpop.f32.mrf.mxu1 }
 0x1cf   :  { %7232 = vst [vmem:[#allocation20_spill] sm:$0xff] %v5728_v1  ;;  %v5739_v57 = vadd.f32 %v1066_v30, %v7234_v17  ;;  %v7239_v30 = vld [vmem:[#allocation23_spill] sm:$0xff] }
 0x1d0   :  { %v1070_v61 = vpop.f32.mrf.mxu0  ;;  %4177 = vmatmul.mubr.msk.bf16.gmra.mxu0 %vm251_vm1, %v4748_v26  ;;  %v5757_v23 = vpop.f32.mrf.mxu1  ;;  %v7242_v26 = vld [vmem:[#allocation24_spill] sm:$0xff] }
 0x1d1   :  { %7235 = vst [vmem:[#allocation21_spill] sm:$0xff] %v5739_v57  ;;  %v5746_v8 = vadd.f32 %v1070_v61, %v5296_v3  ;;  %1890 = vmatprep.mubr.bf16.mxu0 %v7190_v25  ;;  %7241 = vst [vmem:[#allocation83_spill] sm:$0xff] %v5757_v23  ;;  %v4749_v61 = vld [vmem:[%s7140_s0 + $0x70] sm:$0xff]   ;;  %v7249_v23 = vld [vmem:[#allocation27_spill] sm:$0xff] }
 0x1d2   :  { %v1072_v1 = vpop.f32.mrf.mxu0 }
 0x1d3   :  { %7236 = vst [vmem:[#allocation82_spill] sm:$0xff] %v5746_v8  ;;  %v5752_v17 = vadd.f32 %v1072_v1, %v7237_v24  ;;  %v5770_v24 = vpop.f32.mrf.mxu1 }
 0x1d4   :  { %v1074_v7 = vpop.f32.mrf.mxu0 }
 0x1d5   :  { %7238 = vst [vmem:[#allocation22_spill] sm:$0xff] %v5752_v17  ;;  %v5755_v57 = vadd.f32 %v1074_v7, %v7239_v30  ;;  %v7245_v30 = vld [vmem:[#allocation25_spill] sm:$0xff]  ;;  %v5778_v17 = vpop.f32.mrf.mxu1 }
 0x1d6   :  { %v1076_v59 = vpop.f32.mrf.mxu0 }
 0x1d7   :  { %7240 = vst [vmem:[#allocation23_spill] sm:$0xff] %v5755_v57  ;;  %v5760_v50 = vadd.f32 %v1076_v59, %v7242_v26  ;;  %v7247_v26 = vld [vmem:[#allocation26_spill] sm:$0xff] }
 0x1d8   :  { %v1080_v3 = vpop.f32.mrf.mxu0  ;;  %4178 = vmatmul.mubr.msk.bf16.gmra.mxu0 %vm251_vm1, %v4749_v61 }
 0x1d9   :  { %7243 = vst [vmem:[#allocation24_spill] sm:$0xff] %v5760_v50  ;;  %v5767_v1 = vadd.f32 %v1080_v3, %v5310_v62  ;;  %1900 = vmatprep.mubr.bf16.mxu0 %v7190_v25  ;;  %v4750_v3 = vld [vmem:[%s7140_s0 + $0x78] sm:$0xff]  }
 0x1da   :  { %v1082_v7 = vpop.f32.mrf.mxu0 }
 0x1db   :  { %7244 = vst [vmem:[#allocation84_spill] sm:$0xff] %v5767_v1  ;;  %v5773_v57 = vadd.f32 %v1082_v7, %v7245_v30  ;;  %v5791_v30 = vpop.f32.mrf.mxu1 }
 0x1dc   :  { %v1084_v59 = vpop.f32.mrf.mxu0 }
 0x1dd   :  { %7246 = vst [vmem:[#allocation25_spill] sm:$0xff] %v5773_v57  ;;  %v5776_v50 = vadd.f32 %v1084_v59, %v7247_v26  ;;  %v7252_v26 = vld [vmem:[#allocation28_spill] sm:$0xff] }
 0x1de   :  { %v1086_v8 = vpop.f32.mrf.mxu0  ;;  %v4586_v57 = vld [vmem:[%s7143_s3 + $0xa4] ss:$8 sps:$4 sm:$0xff]  }
 0x1df   :  { %7248 = vst [vmem:[#allocation26_spill] sm:$0xff] %v5776_v50  ;;  %v5781_v61 = vadd.f32 %v1086_v8, %v7249_v23  ;;  %v7254_v8 = vld [vmem:[#allocation29_spill] sm:$0xff]  ;;  %2389 = vmatprep.subr.bf16.mxu1 %v4586_v57 }
 0x1e0   :  { %v1090_v62 = vpop.f32.mrf.mxu0  ;;  %4179 = vmatmul.mubr.msk.bf16.gmra.mxu0 %vm251_vm1, %v4750_v3  ;;  %v5802_v3 = vpop.f32.mrf.mxu1 }
 0x1e1   :  { %7250 = vst [vmem:[#allocation27_spill] sm:$0xff] %v5781_v61  ;;  %v5788_v7 = vadd.f32 %v1090_v62, %v5324_v54  ;;  %1910 = vmatprep.mubr.bf16.mxu0 %v7190_v25  ;;  %7256 = vst [vmem:[#allocation86_spill] sm:$0xff] %v5802_v3  ;;  %v4584_v62 = vld [vmem:[%s7143_s3 + $0xa0] ss:$8 sps:$4 sm:$0xff]   ;;  %v7265_v3 = vld [vmem:[#allocation33_spill] sm:$0xff] }
 0x1e2   :  { %v1092_v59 = vpop.f32.mrf.mxu0  ;;  %2390 = vmatpush1.bf16.msra.mxu1 %v4584_v62 }
 0x1e3   :  { %7251 = vst [vmem:[#allocation85_spill] sm:$0xff] %v5788_v7  ;;  %v5794_v50 = vadd.f32 %v1092_v59, %v7252_v26  ;;  %v7257_v7 = vld [vmem:[#allocation30_spill] sm:$0xff]  ;;  %v4751_v26 = vld [vmem:[%s7140_s0 + $0x80] sm:$0xff]  }
 0x1e4   :  { %v1094_v23 = vpop.f32.mrf.mxu0 }
 0x1e5   :  { %7253 = vst [vmem:[#allocation28_spill] sm:$0xff] %v5794_v50  ;;  %v5797_v61 = vadd.f32 %v1094_v23, %v7254_v8  ;;  %v4589_v8 = vld [vmem:[%s7143_s3 + $0x94] ss:$8 sps:$4 sm:$0xff]  }
 0x1e6   :  { %v1096_v54 = vpop.f32.mrf.mxu0  ;;  %2391 = vmatprep.subr.bf16.mxu1 %v4589_v8 }
 0x1e7   :  { %7255 = vst [vmem:[#allocation29_spill] sm:$0xff] %v5797_v61  ;;  %v5808_v1 = vadd.f32 %v1096_v54, %v7257_v7  ;;  %v5821_v7 = vpop.f32.mrf.mxu1  ;;  %v4587_v54 = vld [vmem:[%s7143_s3 + $0x90] ss:$8 sps:$4 sm:$0xff]  }
 0x1e8   :  { %v1100_v59 = vpop.f32.mrf.mxu0  ;;  %4180 = vmatmul.mubr.msk.bf16.gmra.mxu0 %vm251_vm1, %v4751_v26  ;;  %7260 = vst [vmem:[#allocation88_spill] sm:$0xff] %v5821_v7  ;;  %2392 = vmatpush1.bf16.msra.mxu1 %v4587_v54  ;;  %v4592_v26 = vld [vmem:[%s7143_s3 + $0x84] ss:$8 sps:$4 sm:$0xff]   ;;  %v4590_v7 = vld [vmem:[%s7143_s3 + $0x80] ss:$8 sps:$4 sm:$0xff]  }
 0x1e9   :  { %7258 = vst [vmem:[#allocation30_spill] sm:$0xff] %v5808_v1  ;;  %v5815_v23 = vadd.f32 %v1100_v59, %v5338_v10  ;;  %1920 = vmatprep.mubr.bf16.mxu0 %v7190_v25  ;;  %v7261_v1 = vld [vmem:[#allocation31_spill] sm:$0xff]  ;;  %v7263_v10 = vld [vmem:[#allocation32_spill] sm:$0xff]  ;;  %2393 = vmatprep.subr.bf16.mxu1 %v4592_v26  ;;  %v7269_v26 = vld [vmem:[#allocation34_spill] sm:$0xff] }
 0x1ea   :  { %v1102_v57 = vpop.f32.mrf.mxu0 }
 0x1eb   :  { %7259 = vst [vmem:[#allocation87_spill] sm:$0xff] %v5815_v23  ;;  %v5827_v61 = vadd.f32 %v1102_v57, %v7261_v1  ;;  %v5835_v23 = vpop.f32.mrf.mxu1  ;;  %v4752_v57 = vld [vmem:[%s7140_s0 + $0x88] sm:$0xff]  }
 0x1ec   :  { %v1104_v62 = vpop.f32.mrf.mxu0  ;;  %2394 = vmatpush1.bf16.msra.mxu1 %v4590_v7 }
 0x1ed   :  { %7262 = vst [vmem:[#allocation31_spill] sm:$0xff] %v5827_v61  ;;  %v5830_v59 = vadd.f32 %v1104_v62, %v7263_v10  ;;  %v4595_v62 = vld [vmem:[%s7143_s3 + $0x1f4] ss:$8 sps:$4 sm:$0xff]   ;;  %v4593_v10 = vld [vmem:[%s7143_s3 + $0x1f0] ss:$8 sps:$4 sm:$0xff]  }
 0x1ee   :  { %v1106_v50 = vpop.f32.mrf.mxu0  ;;  %3024 = vmatprep.subr.bf16.mxu0 %v4595_v62  ;;  %v4596_v61 = vld [vmem:[%s7143_s3 + $0x1e0] ss:$8 sps:$4 sm:$0xff]  }
 0x1ef   :  { %7264 = vst [vmem:[#allocation32_spill] sm:$0xff] %v5830_v59  ;;  %v5841_v1 = vadd.f32 %v1106_v50, %v7265_v3  ;;  %v5854_v50 = vpop.f32.mrf.mxu1  ;;  %3025 = vmatpush1.bf16.msra.mxu0 %v4593_v10  ;;  %v4753_v10 = vld [vmem:[%s7140_s0 + $0x90] sm:$0xff]  }
 0x1f0   :  { %v1110_v8 = vpop.f32.mrf.mxu0  ;;  %4181 = vmatmul.mubr.msk.bf16.gmra.mxu0 %vm251_vm1, %v4752_v57  ;;  %7268 = vst [vmem:[#allocation90_spill] sm:$0xff] %v5854_v50  ;;  %v4598_v57 = vld [vmem:[%s7143_s3 + $0x1e4] ss:$8 sps:$4 sm:$0xff]  }
 0x1f1   :  { %7266 = vst [vmem:[#allocation33_spill] sm:$0xff] %v5841_v1  ;;  %v5848_v54 = vadd.f32 %v1110_v8, %v5352_v31  ;;  %1930 = vmatprep.mubr.bf16.mxu0 %v7190_v25  ;;  %v7271_v31 = vld [vmem:[#allocation35_spill] sm:$0xff]  ;;  %v7273_v50 = vld [vmem:[#allocation36_spill] sm:$0xff]  ;;  %3026 = vmatprep.subr.bf16.mxu0 %v4598_v57  ;;  %v7277_v57 = vld [vmem:[#allocation37_spill] sm:$0xff] }
 0x1f2   :  { %v1112_v3 = vpop.f32.mrf.mxu0 }
 0x1f3   :  { %7267 = vst [vmem:[#allocation89_spill] sm:$0xff] %v5848_v54  ;;  %v5860_v1 = vadd.f32 %v1112_v3, %v7269_v26  ;;  %v5868_v54 = vpop.f32.mrf.mxu1  ;;  %3027 = vmatpush1.bf16.msra.mxu0 %v4596_v61  ;;  %v4604_v61 = vld [vmem:[%s7143_s3 + $0x1c4] ss:$8 sps:$4 sm:$0xff]  }
 0x1f4   :  { %v1114_v7 = vpop.f32.mrf.mxu0 }
 0x1f5   :  { %7270 = vst [vmem:[#allocation34_spill] sm:$0xff] %v5860_v1  ;;  %v5863_v8 = vadd.f32 %v1114_v7, %v7271_v31  ;;  %v4601_v7 = vld [vmem:[%s7143_s3 + $0x1d4] ss:$8 sps:$4 sm:$0xff]   ;;  %v4599_v31 = vld [vmem:[%s7143_s3 + $0x1d0] ss:$8 sps:$4 sm:$0xff]  }
 0x1f6   :  { %v1116_v59 = vpop.f32.mrf.mxu0  ;;  %3028 = vmatprep.subr.bf16.mxu0 %v4601_v7  ;;  %v4602_v1 = vld [vmem:[%s7143_s3 + $0x1c0] ss:$8 sps:$4 sm:$0xff]  }
 0x1f7   :  { %7272 = vst [vmem:[#allocation35_spill] sm:$0xff] %v5863_v8  ;;  %v5874_v3 = vadd.f32 %v1116_v59, %v7273_v50  ;;  %v5887_v59 = vpop.f32.mrf.mxu1  ;;  %3029 = vmatpush1.bf16.msra.mxu0 %v4599_v31  ;;  %v4754_v31 = vld [vmem:[%s7140_s0 + $0x98] sm:$0xff]  }
 0x1f8   :  { %v1120_v62 = vpop.f32.mrf.mxu0  ;;  %4182 = vmatmul.mubr.msk.bf16.gmra.mxu0 %vm251_vm1, %v4753_v10  ;;  %7276 = vst [vmem:[#allocation92_spill] sm:$0xff] %v5887_v59  ;;  %v7281_v59 = vld [vmem:[#allocation39_spill] sm:$0xff]  ;;  %3030 = vmatprep.subr.bf16.mxu0 %v4604_v61  ;;  %v7285_v61 = vld [vmem:[#allocation40_spill] sm:$0xff] }
 0x1f9   :  { %7274 = vst [vmem:[#allocation36_spill] sm:$0xff] %v5874_v3  ;;  %v5881_v26 = vadd.f32 %v1120_v62, %v5366_v32  ;;  %1940 = vmatprep.mubr.bf16.mxu0 %v7190_v25  ;;  %v7279_v62 = vld [vmem:[#allocation38_spill] sm:$0xff] }
 0x1fa   :  { %v1122_v50 = vpop.f32.mrf.mxu0 }
 0x1fb   :  { %7275 = vst [vmem:[#allocation91_spill] sm:$0xff] %v5881_v26  ;;  %v5893_v3 = vadd.f32 %v1122_v50, %v7277_v57  ;;  %v5901_v26 = vpop.f32.mrf.mxu1  ;;  %3031 = vmatpush1.bf16.msra.mxu0 %v4602_v1  ;;  %v4610_v1 = vld [vmem:[%s7143_s3 + $0x1a4] ss:$8 sps:$4 sm:$0xff]  }
 0x1fc   :  { %v1124_v32 = vpop.f32.mrf.mxu0 }
 0x1fd   :  { %7278 = vst [vmem:[#allocation37_spill] sm:$0xff] %v5893_v3  ;;  %v5896_v10 = vadd.f32 %v1124_v32, %v7279_v62  ;;  %v4607_v32 = vld [vmem:[%s7143_s3 + $0x1b4] ss:$8 sps:$4 sm:$0xff]   ;;  %v4605_v62 = vld [vmem:[%s7143_s3 + $0x1b0] ss:$8 sps:$4 sm:$0xff]  }
 0x1fe   :  { %v1126_v8 = vpop.f32.mrf.mxu0  ;;  %3032 = vmatprep.subr.bf16.mxu0 %v4607_v32  ;;  %v4608_v3 = vld [vmem:[%s7143_s3 + $0x1a0] ss:$8 sps:$4 sm:$0xff]  }
 0x1ff   :  { %7280 = vst [vmem:[#allocation38_spill] sm:$0xff] %v5896_v10  ;;  %v5907_v50 = vadd.f32 %v1126_v8, %v7281_v59  ;;  %v5920_v8 = vpop.f32.mrf.mxu1  ;;  %3033 = vmatpush1.bf16.msra.mxu0 %v4605_v62  ;;  %v4755_v62 = vld [vmem:[%s7140_s0 + $0xa0] sm:$0xff]  }
 0x200   :  { %v1130_v7 = vpop.f32.mrf.mxu0  ;;  %4183 = vmatmul.mubr.msk.bf16.gmra.mxu0 %vm251_vm1, %v4754_v31  ;;  %7284 = vst [vmem:[#allocation94_spill] sm:$0xff] %v5920_v8  ;;  %v7290_v8 = vld [vmem:[#allocation42_spill] sm:$0xff]  ;;  %3034 = vmatprep.subr.bf16.mxu0 %v4610_v1 }
 0x201   :  { %7282 = vst [vmem:[#allocation39_spill] sm:$0xff] %v5907_v50  ;;  %v5914_v57 = vadd.f32 %v1130_v7, %v5380_v33  ;;  %1950 = vmatprep.mubr.bf16.mxu0 %v7190_v25  ;;  %v7287_v7 = vld [vmem:[#allocation41_spill] sm:$0xff] }
 0x202   :  { %v1132_v59 = vpop.f32.mrf.mxu0  ;;  %v4611_v1 = vld [vmem:[%s7143_s3 + $0x190] ss:$8 sps:$4 sm:$0xff]  }
 0x203   :  { %7283 = vst [vmem:[#allocation93_spill] sm:$0xff] %v5914_v57  ;;  %v5926_v50 = vadd.f32 %v1132_v59, %v7285_v61  ;;  %v5934_v57 = vpop.f32.mrf.mxu1  ;;  %v7292_v61 = vld [vmem:[#allocation43_spill] sm:$0xff]  ;;  %3035 = vmatpush1.bf16.msra.mxu0 %v4608_v3 }
 0x204   :  { %v1134_v33 = vpop.f32.mrf.mxu0  ;;  %7289 = vst [vmem:[#allocation95_spill] sm:$0xff] %v5934_v57  ;;  %v4616_v3 = vld [vmem:[%s7143_s3 + $0x184] ss:$8 sps:$4 sm:$0xff]   ;;  %v7300_v57 = vld [vmem:[#allocation46_spill] sm:$0xff] }
 0x205   :  { %7286 = vst [vmem:[#allocation40_spill] sm:$0xff] %v5926_v50  ;;  %v5929_v31 = vadd.f32 %v1134_v33, %v7287_v7  ;;  %v4613_v7 = vld [vmem:[%s7143_s3 + $0x194] ss:$8 sps:$4 sm:$0xff]  }
 0x206   :  { %v1136_v10 = vpop.f32.mrf.mxu0  ;;  %3036 = vmatprep.subr.bf16.mxu0 %v4613_v7 }
 0x207   :  { %7288 = vst [vmem:[#allocation41_spill] sm:$0xff] %v5929_v31  ;;  %v5940_v59 = vadd.f32 %v1136_v10, %v7290_v8  ;;  %v5953_v10 = vpop.f32.mrf.mxu1  ;;  %3037 = vmatpush1.bf16.msra.mxu0 %v4611_v1 }
 0x208   :  { %v1140_v32 = vpop.f32.mrf.mxu0  ;;  %4184 = vmatmul.mubr.msk.bf16.gmra.mxu0 %vm251_vm1, %v4755_v62  ;;  %7294 = vst [vmem:[#allocation96_spill] sm:$0xff] %v5953_v10  ;;  %v7297_v62 = vld [vmem:[#allocation45_spill] sm:$0xff]  ;;  %v4614_v10 = vld [vmem:[%s7143_s3 + $0x180] ss:$8 sps:$4 sm:$0xff]   ;;  %3038 = vmatprep.subr.bf16.mxu0 %v4616_v3 }
 0x209   :  { %7291 = vst [vmem:[#allocation42_spill] sm:$0xff] %v5940_v59  ;;  %v5947_v33 = vadd.f32 %v1140_v32, %v7292_v61  ;;  %1960 = vmatprep.mubr.bf16.mxu0 %v7190_v25  ;;  %v7295_v59 = vld [vmem:[#allocation44_spill] sm:$0xff]  ;;  %v7304_v3 = vld [vmem:[#allocation47_spill] sm:$0xff] }
 0x20a   :  { %v1142_v8 = vpop.f32.mrf.mxu0 }
 0x20b   :  { %7293 = vst [vmem:[#allocation43_spill] sm:$0xff] %v5947_v33  ;;  %v5959_v31 = vadd.f32 %v1142_v8, %v7295_v59  ;;  %v5967_v33 = vpop.f32.mrf.mxu1  ;;  %v4756_v8 = vld [vmem:[%s7140_s0 + $0xa8] sm:$0xff]   ;;  %3039 = vmatpush1.bf16.msra.mxu0 %v4614_v10  ;;  %v4757_v10 = vld [vmem:[%s7140_s0 + $0xb0] sm:$0xff]  }
 0x20c   :  { %v1144_v32 = vpop.f32.mrf.mxu0  ;;  %7299 = vst [vmem:[#allocation97_spill] sm:$0xff] %v5967_v33 }
 0x20d   :  { %7296 = vst [vmem:[#allocation44_spill] sm:$0xff] %v5959_v31  ;;  %v5962_v61 = vadd.f32 %v1144_v32, %v7297_v62  ;;  %v5983_v32 = vpop.f32.mrf.mxu1 }
 0x20e   :  { %v1146_v50 = vpop.f32.mrf.mxu0 }
 0x20f   :  { %7298 = vst [vmem:[#allocation45_spill] sm:$0xff] %v5962_v61  ;;  %v5973_v59 = vadd.f32 %v1146_v50, %v7300_v57  ;;  %v5991_v61 = vpop.f32.mrf.mxu1 }
 0x210   :  { %v1150_v7 = vpop.f32.mrf.mxu0  ;;  %4185 = vmatmul.mubr.msk.bf16.gmra.mxu0 %vm251_vm1, %v4756_v8  ;;  %v7306_v8 = vld [vmem:[#allocation48_spill] sm:$0xff] }
 0x211   :  { %7301 = vst [vmem:[#allocation46_spill] sm:$0xff] %v5973_v59  ;;  %v5980_v1 = vadd.f32 %v1150_v7, %v5419_v58  ;;  %1970 = vmatprep.mubr.bf16.mxu0 %v7190_v25  ;;  %v7308_v7 = vld [vmem:[#allocation49_spill] sm:$0xff] }
 0x212   :  { %v1152_v62 = vpop.f32.mrf.mxu0 }
 0x213   :  { %7302 = vst [vmem:[#allocation98_spill] sm:$0xff] %v5980_v1  ;;  %v5986_v50 = vadd.f32 %v1152_v62, %v5423_v43  ;;  %v6004_v62 = vpop.f32.mrf.mxu1 }
 0x214   :  { %v1154_v57 = vpop.f32.mrf.mxu0 }
 0x215   :  { %7303 = vst [vmem:[#allocation99_spill] sm:$0xff] %v5986_v50  ;;  %v5989_v59 = vadd.f32 %v1154_v57, %v7304_v3  ;;  %v7312_v50 = vld [vmem:[#allocation51_spill] sm:$0xff] }
 0x216   :  { %v1156_v31 = vpop.f32.mrf.mxu0 }
 0x217   :  { %7305 = vst [vmem:[#allocation47_spill] sm:$0xff] %v5989_v59  ;;  %v5994_v33 = vadd.f32 %v1156_v31, %v7306_v8 }
 0x218   :  { %v1160_v58 = vpop.f32.mrf.mxu0  ;;  %4186 = vmatmul.mubr.msk.bf16.gmra.mxu0 %vm251_vm1, %v4757_v10 }
 0x219   :  { %7307 = vst [vmem:[#allocation48_spill] sm:$0xff] %v5994_v33  ;;  %v6001_v43 = vadd.f32 %v1160_v58, %v7308_v7  ;;  %1980 = vmatprep.mubr.bf16.mxu0 %v7190_v25  ;;  %v6012_v33 = vpop.f32.mrf.mxu1  ;;  %v7314_v7 = vld [vmem:[#allocation52_spill] sm:$0xff] }
 0x21a   :  { %v1162_v57 = vpop.f32.mrf.mxu0 }
 0x21b   :  { %7309 = vst [vmem:[#allocation49_spill] sm:$0xff] %v6001_v43  ;;  %v6007_v3 = vadd.f32 %v1162_v57, %v5442_v60  ;;  %v6023_v60 = vpop.f32.mrf.mxu1 }
 0x21c   :  { %v1164_v31 = vpop.f32.mrf.mxu0 }
 0x21d   :  { %7310 = vst [vmem:[#allocation100_spill] sm:$0xff] %v6007_v3  ;;  %v6010_v8 = vadd.f32 %v1164_v31, %v5449_v29  ;;  %v7316_v29 = vld [vmem:[#allocation53_spill] sm:$0xff]  ;;  %v7317_v3 = vld [vmem:[#allocation54_spill] sm:$0xff] }
 0x21e   :  { %v1166_v59 = vpop.f32.mrf.mxu0 }
 0x21f   :  { %7311 = vst [vmem:[#allocation101_spill] sm:$0xff] %v6010_v8  ;;  %v6015_v10 = vadd.f32 %v1166_v59, %v7312_v50  ;;  %v6031_v59 = vpop.f32.mrf.mxu1 }
 0x220   :  { %v1170_v58 = vpop.f32.mrf.mxu0  ;;  %4187 = vmatmul.mubr.msk.bf16.gmra.mxu0 %vm251_vm1, %v5413_v41 }
 0x221   :  { %7313 = vst [vmem:[#allocation51_spill] sm:$0xff] %v6015_v10  ;;  %v6020_v43 = vadd.f32 %v1170_v58, %v7314_v7  ;;  %1990 = vmatprep.mubr.bf16.mxu0 %v7190_v25  ;;  %v7319_v10 = vld [vmem:[#allocation56_spill] sm:$0xff]  ;;  %v7320_v7 = vld [vmem:[#allocation57_spill] sm:$0xff] }
 0x222   :  { %v1172_v57 = vpop.f32.mrf.mxu0 }
 0x223   :  { %7315 = vst [vmem:[#allocation52_spill] sm:$0xff] %v6020_v43  ;;  %v6026_v31 = vadd.f32 %v1172_v57, %v7316_v29  ;;  %v6042_v57 = vpop.f32.mrf.mxu1 }
 0x224   :  { %v1174_v8 = vpop.f32.mrf.mxu0 }
 0x225   :  { %v6029_v1 = vadd.f32 %v1174_v8, %v7317_v3 }
 0x226   :  { %v1176_v50 = vpop.f32.mrf.mxu0 }
 0x227   :  { %7318 = vst [vmem:[#allocation53_spill] sm:$0xff] %v6029_v1  ;;  %v6034_v41 = vadd.f32 %v1176_v50, %v7319_v10  ;;  %v6050_v10 = vpop.f32.mrf.mxu1 }
 0x228   :  { %v1180_v58 = vpop.f32.mrf.mxu0  ;;  %4188 = vmatmul.mubr.msk.bf16.gmra.mxu0 %vm251_vm1, %v5432_v38 }
 0x229   :  { %v6039_v43 = vadd.f32 %v1180_v58, %v7320_v7  ;;  %2000 = vmatprep.mubr.bf16.mxu0 %v7190_v25  ;;  %v6063_v7 = vpop.f32.mrf.mxu1 }
 0x22a   :  { %v1182_v29 = vpop.f32.mrf.mxu0 }
 0x22b   :  { %7321 = vst [vmem:[#allocation54_spill] sm:$0xff] %v6039_v43  ;;  %v6045_v3 = vadd.f32 %v1182_v29, %v5490_v55  ;;  %v4619_v55 = vld [vmem:[%s7143_s3 + $0x74] ss:$8 sps:$4 sm:$0xff]  }
 0x22c   :  { %v1184_v8 = vpop.f32.mrf.mxu0  ;;  %2572 = vmatprep.subr.bf16.mxu1 %v4619_v55 }
 0x22d   :  { %7322 = vst [vmem:[#allocation56_spill] sm:$0xff] %v6045_v3  ;;  %v6048_v1 = vadd.f32 %v1184_v8, %v5495_v37  ;;  %v7330_v3 = vld [vmem:[#allocation10_spill] sm:$0xff] }
 0x22e   :  { %v6052_v50 = vpop.f32.mrf.mxu0 }
 0x22f   :  { %7323 = vst [vmem:[#allocation57_spill] sm:$0xff] %v6048_v1  ;;  %7324 = vst [vmem:[#allocation102_spill] sm:$0xff] %v6052_v50 }
 0x230   :  { %v1190_v38 = vpop.f32.mrf.mxu0  ;;  %4189 = vmatmul.mubr.msk.bf16.gmra.mxu0 %vm251_vm1, %v5447_v52  ;;  %v6071_v52 = vpop.f32.mrf.mxu1 }
 0x231   :  { %v6057_v58 = vadd.f32 %v1190_v38, %v5511_v0  ;;  %2010 = vmatprep.mubr.bf16.mxu0 %v7190_v25  ;;  %v7329_v38 = vld [vmem:[#allocation9_spill] sm:$0xff] }
 0x232   :  { %v1192_v37 = vpop.f32.mrf.mxu0 }
 0x233   :  { %7325 = vst [vmem:[#allocation103_spill] sm:$0xff] %v6057_v58  ;;  %v6066_v29 = vadd.f32 %v1192_v37, %v5518_v44  ;;  %v891_v58 = vadd.f32 %v5533_v9, %v7329_v38  ;;  %v893_v44 = vadd.f32 %v5546_v35, %v7330_v3 }
 0x234   :  { %v1194_v8 = vpop.f32.mrf.mxu0 }
 0x235   :  { %7326 = vst [vmem:[#allocation104_spill] sm:$0xff] %v6066_v29  ;;  %v6069_v1 = vadd.f32 %v1194_v8, %v5523_v14  ;;  %v6084_v14 = vpop.f32.mrf.mxu1  ;;  %v7332_v8 = vld [vmem:[#allocation11_spill] sm:$0xff] }
 0x236   :  { %v6073_v0 = vpop.f32.mrf.mxu0 }
 0x237   :  { %7327 = vst [vmem:[#allocation105_spill] sm:$0xff] %v6069_v1  ;;  %7328 = vst [vmem:[#allocation106_spill] sm:$0xff] %v6073_v0  ;;  %v895_v1 = vadd.f32 %v5557_v48, %v7332_v8  ;;  %v6095_v35 = vpop.f32.mrf.mxu1  ;;  %v7337_v48 = vld [vmem:[#allocation14_spill] sm:$0xff] }
 0x238   :  { %v1200_v50 = vpop.f32.mrf.mxu0  ;;  %4190 = vmatmul.mubr.msk.bf16.gmra.mxu0 %vm251_vm1, %v5562_v42  ;;  %v4580_v42 = vld [vmem:[%s7140_s0 + $0xd8] sm:$0xff]  }
 0x239   :  { %v6081_v37 = vadd.f32 %v1200_v50, %v891_v58  ;;  %2020 = vmatprep.mubr.bf16.mxu0 %v7190_v25  ;;  %v7336_v50 = vld [vmem:[#allocation13_spill] sm:$0xff]  ;;  %v6107_v8 = vpop.f32.mrf.mxu1 }
 0x23a   :  { %v1202_v55 = vpop.f32.mrf.mxu0  ;;  %v901_v58 = vadd.f32 %v5572_v18, %v7336_v50 }
 0x23b   :  { %7331 = vst [vmem:[#allocation9_spill] sm:$0xff] %v6081_v37  ;;  %v6088_v0 = vadd.f32 %v1202_v55, %v893_v44  ;;  %v903_v44 = vadd.f32 %v5585_v63, %v7337_v48  ;;  %v6115_v50 = vpop.f32.mrf.mxu1 }
 0x23c   :  { %v1204_v9 = vpop.f32.mrf.mxu0 }
 0x23d   :  { %7333 = vst [vmem:[#allocation10_spill] sm:$0xff] %v6088_v0  ;;  %v6093_v38 = vadd.f32 %v1204_v9, %v895_v1  ;;  %v7339_v9 = vld [vmem:[#allocation15_spill] sm:$0xff] }
 0x23e   :  { %v6097_v3 = vpop.f32.mrf.mxu0 }
 0x23f   :  { %7334 = vst [vmem:[#allocation11_spill] sm:$0xff] %v6093_v38  ;;  %7335 = vst [vmem:[#allocation107_spill] sm:$0xff] %v6097_v3  ;;  %v905_v38 = vadd.f32 %v5590_v19, %v7339_v9  ;;  %v1628_v19 = vadd.f32 %v5623_v45, %v5503_v22  ;;  %v1632_v22 = vadd.f32 %v5657_v49, %v5531_v56 }
 0x240   :  { %v1210_v37 = vpop.f32.mrf.mxu0  ;;  %4191 = vmatmul.mubr.msk.bf16.gmra.mxu0 %vm251_vm1, %v4580_v42 }
 0x241   :  { %v6104_v55 = vadd.f32 %v1210_v37, %v901_v58  ;;  %3056 = vmatprep.mubr.bf16.mxu0 %v7190_v25  ;;  %v6120_v58 = vpop.f32.mrf.mxu1 }
 0x242   :  { %v1212_v1 = vpop.f32.mrf.mxu0 }
 0x243   :  { %7338 = vst [vmem:[#allocation13_spill] sm:$0xff] %v6104_v55  ;;  %v6111_v3 = vadd.f32 %v1212_v1, %v903_v44 }
 0x244   :  { %v1214_v0 = vpop.f32.mrf.mxu0 }
 0x245   :  { %7340 = vst [vmem:[#allocation14_spill] sm:$0xff] %v6111_v3  ;;  %v6113_v18 = vadd.f32 %v1214_v0, %v905_v38  ;;  %v6126_v38 = vpop.f32.mrf.mxu1 }
 0x246   :  { %v6117_v42 = vpop.f32.mrf.mxu0 }
 0x247   :  { %7341 = vst [vmem:[#allocation15_spill] sm:$0xff] %v6113_v18  ;;  %7342 = vst [vmem:[#allocation108_spill] sm:$0xff] %v6117_v42 }
 0x248   :  { %v1792_v63 = vpop.f32.mrf.mxu0 }
 0x249   :  { %v2031_v37 = vadd.f32 %v1792_v63, %v5608_v13  ;;  %v6129_v63 = vpop.f32.mrf.mxu1 }
 0x24a   :  { %v1794_v48 = vpop.f32.mrf.mxu0 }
 0x24b   :  { %v2032_v55 = vadd.f32 %v1794_v48, %v5615_v4 }
 0x24c   :  { %v1796_v29 = vpop.f32.mrf.mxu0 }
 0x24d   :  { %v2127_v44 = vmax.f32 %v2031_v37, %v2032_v55  ;;  %v2033_v0 = vadd.f32 %v1796_v29, %v5621_v16  ;;  %v6135_v29 = vpop.f32.mrf.mxu1 }
 0x24e   :  { %v1798_v1 = vpop.f32.mrf.mxu0 }
 0x24f   :  { %v2034_v9 = vadd.f32 %v1798_v1, %v1628_v19 }
 0x250   :  { %v1802_v18 = vpop.f32.mrf.mxu0 }
 0x251   :  { %v2128_v42 = vmax.f32 %v2033_v0, %v2034_v9  ;;  %v2035_v13 = vadd.f32 %v1802_v18, %v5636_v40  ;;  %v6140_v40 = vld [vmem:[%s7142_s2] ss:$0 sm:$0xff]  ;;  %v6146_v0 = vpop.f32.mrf.mxu1 }
 0x252   :  { %v1804_v3 = vpop.f32.mrf.mxu0 }
 0x253   :  { %v2036_v4 = vadd.f32 %v1804_v3, %v5643_v53  ;;  %v1633_v53 = vadd.f32 %v5662_v6, %v5542_v28  ;;  %v7343_v3 = vld [vmem:[#allocation60_spill] sm:$0xff] }
 0x254   :  { %v1806_v48 = vpop.f32.mrf.mxu0  ;;  %v1634_v56 = vadd.f32 %v5672_v47, %v7343_v3  ;;  %v6154_v47 = vpop.f32.mrf.mxu1 }
 0x255   :  { %v2129_v45 = vmax.f32 %v2035_v13, %v2036_v4  ;;  %v2037_v16 = vadd.f32 %v1806_v48, %v5655_v34  ;;  %v7344_v48 = vld [vmem:[#allocation61_spill] sm:$0xff] }
 0x256   :  { %v1808_v55 = vpop.f32.mrf.mxu0 }
 0x257   :  { %v2175_v37 = vmax.f32 %v2127_v44, %v2129_v45  ;;  %v2038_v19 = vadd.f32 %v1808_v55, %v1632_v22  ;;  %v1635_v22 = vadd.f32 %v5677_v12, %v7344_v48  ;;  %v7345_v45 = vld [vmem:[#allocation63_spill] sm:$0xff]  ;;  %v1638_v12 = vadd.f32 %v5697_v21, %v5588_v36 }
 0x258   :  { %v1812_v18 = vpop.f32.mrf.mxu0  ;;  %v1636_v55 = vadd.f32 %v5682_v46, %v7345_v45 }
 0x259   :  { %v2130_v49 = vmax.f32 %v2037_v16, %v2038_v19  ;;  %v2206_v1 = vadd.f32 %v6140_v40, %v2175_v37  ;;  %v2039_v9 = vadd.f32 %v1812_v18, %v1633_v53  ;;  %v7346_v18 = vld [vmem:[#allocation64_spill] sm:$0xff] }
 0x25a   :  { %v1814_v34 = vpop.f32.mrf.mxu0  ;;  %v1637_v53 = vadd.f32 %v5687_v15, %v7346_v18 }
 0x25b   :  { %v2176_v44 = vmax.f32 %v2128_v42, %v2130_v49  ;;  %v2040_v13 = vadd.f32 %v1814_v34, %v1634_v56  ;;  %v2230_v19 = vmax.f32 %v2206_v1, 0.0  ;;  %v6162_v49 = vpop.f32.mrf.mxu1  ;;  %v1639_v1 = vadd.f32 %v5702_v2, %v5593_v51 }
 0x25c   :  { %v1816_v4 = vpop.f32.mrf.mxu0 }
 0x25d   :  { %v2207_v28 = vadd.f32 %v6140_v40, %v2176_v44  ;;  %v2131_v6 = vmax.f32 %v2039_v9, %v2040_v13  ;;  %v2041_v43 = vadd.f32 %v1816_v4, %v1635_v22  ;;  %v7347_v4 = vld [vmem:[#allocation66_spill] sm:$0xff]  ;;  %v6168_v15 = vpop.f32.mrf.mxu1 }
 0x25e   :  { %v1818_v16 = vpop.f32.mrf.mxu0  ;;  %v1640_v48 = vadd.f32 %v5707_v39, %v7347_v4 }
 0x25f   :  { %v2231_v3 = vmax.f32 %v2207_v28, 0.0  ;;  %v2042_v37 = vadd.f32 %v1818_v16, %v1636_v55  ;;  %v7348_v28 = vld [vmem:[#allocation67_spill] sm:$0xff] }
 0x260   :  { %v1822_v42 = vpop.f32.mrf.mxu0  ;;  %v1641_v16 = vadd.f32 %v5712_v5, %v7348_v28 }
 0x261   :  { %v6160_v56 = vpack.c.bf16 %v2231_v3, %v2230_v19  ;;  %v2132_v46 = vmax.f32 %v2041_v43, %v2042_v37  ;;  %v2043_v44 = vadd.f32 %v1822_v42, %v1637_v53  ;;  %v1642_v19 = vadd.f32 %v5722_v11, %v5612_v20  ;;  %v6174_v37 = vpop.f32.mrf.mxu1 }
 0x262   :  { %v1824_v34 = vpop.f32.mrf.mxu0 }
 0x263   :  { %v2044_v9 = vadd.f32 %v1824_v34, %v1638_v12  ;;  %v7350_v12 = vld [vmem:[#allocation81_spill] sm:$0xff]  ;;  %v6182_v20 = vpop.f32.mrf.mxu1 }
 0x264   :  { %v1826_v13 = vpop.f32.mrf.mxu0 }
 0x265   :  { %v2133_v22 = vmax.f32 %v2043_v44, %v2044_v9  ;;  %v2045_v21 = vadd.f32 %v1826_v13, %v1639_v1  ;;  %v7351_v44 = vld [vmem:[#allocation69_spill] sm:$0xff] }
 0x266   :  { %v1828_v45 = vpop.f32.mrf.mxu0  ;;  %v1644_v9 = vadd.f32 %v5749_v27, %v7351_v44  ;;  %v4625_v44 = vld [vmem:[%s7143_s3 + $0x54] ss:$8 sps:$4 sm:$0xff]  }
 0x267   :  { %v2177_v36 = vmax.f32 %v2131_v6, %v2133_v22  ;;  %v2046_v55 = vadd.f32 %v1828_v45, %v1640_v48  ;;  %v7349_v6 = vld [vmem:[#allocation68_spill] sm:$0xff]  ;;  %v4617_v45 = vld [vmem:[%s7143_s3 + $0x70] ss:$8 sps:$4 sm:$0xff]  }
 0x268   :  { %v1832_v43 = vpop.f32.mrf.mxu0  ;;  %v1643_v34 = vadd.f32 %v7350_v12, %v7349_v6  ;;  %v7356_v6 = vld [vmem:[#allocation73_spill] sm:$0xff] }
 0x269   :  { %v2134_v3 = vmax.f32 %v2045_v21, %v2046_v55  ;;  %v2208_v39 = vadd.f32 %v6140_v40, %v2177_v36  ;;  %v2047_v42 = vadd.f32 %v1832_v43, %v1641_v16  ;;  %v7352_v36 = vld [vmem:[#allocation70_spill] sm:$0xff]  ;;  %v7353_v21 = vld [vmem:[#allocation83_spill] sm:$0xff]  ;;  %v1648_v12 = vadd.f32 %v5791_v30, %v7356_v6  ;;  %v7362_v6 = vld [vmem:[#allocation77_spill] sm:$0xff] }
 0x26a   :  { %v1834_v51 = vpop.f32.mrf.mxu0  ;;  %v1645_v55 = vadd.f32 %v7353_v21, %v7352_v36  ;;  %v7354_v43 = vld [vmem:[#allocation71_spill] sm:$0xff]  ;;  %v7358_v30 = vld [vmem:[#allocation86_spill] sm:$0xff]  ;;  %v7360_v36 = vld [vmem:[#allocation88_spill] sm:$0xff] }
 0x26b   :  { %v2178_v2 = vmax.f32 %v2132_v46, %v2134_v3  ;;  %v2048_v18 = vadd.f32 %v1834_v51, %v1642_v19  ;;  %v2232_v1 = vmax.f32 %v2208_v39, 0.0  ;;  %v1646_v27 = vadd.f32 %v5770_v24, %v7354_v43  ;;  %v4622_v19 = vld [vmem:[%s7143_s3 + $0x64] ss:$8 sps:$4 sm:$0xff]   ;;  %v6196_v3 = vpop.f32.mrf.mxu1  ;;  %v4620_v24 = vld [vmem:[%s7143_s3 + $0x60] ss:$8 sps:$4 sm:$0xff]  }
 0x26c   :  { %v1836_v53 = vpop.f32.mrf.mxu0 }
 0x26d   :  { %v2209_v5 = vadd.f32 %v6140_v40, %v2178_v2  ;;  %v2135_v13 = vmax.f32 %v2047_v42, %v2048_v18  ;;  %v2049_v48 = vadd.f32 %v1836_v53, %v1643_v34  ;;  %v7355_v18 = vld [vmem:[#allocation72_spill] sm:$0xff] }
 0x26e   :  { %v1838_v11 = vpop.f32.mrf.mxu0  ;;  %v1647_v53 = vadd.f32 %v5778_v17, %v7355_v18  ;;  %v4623_v17 = vld [vmem:[%s7143_s3 + $0x50] ss:$8 sps:$4 sm:$0xff]   ;;  %v7361_v18 = vld [vmem:[#allocation76_spill] sm:$0xff] }
 0x26f   :  { %v2233_v4 = vmax.f32 %v2209_v5, 0.0  ;;  %v2050_v22 = vadd.f32 %v1838_v11, %v1644_v9  ;;  %v6210_v9 = vpop.f32.mrf.mxu1 }
 0x270   :  { %v1842_v46 = vpop.f32.mrf.mxu0 }
 0x271   :  { %v6191_v28 = vpack.c.bf16 %v2233_v4, %v2232_v1  ;;  %v2136_v16 = vmax.f32 %v2049_v48, %v2050_v22  ;;  %v2051_v39 = vadd.f32 %v1842_v46, %v1645_v55  ;;  %v7357_v22 = vld [vmem:[#allocation74_spill] sm:$0xff]  ;;  %v6222_v43 = vpop.f32.mrf.mxu1 }
 0x272   :  { %v1844_v51 = vpop.f32.mrf.mxu0  ;;  %v1649_v46 = vadd.f32 %v7358_v30, %v7357_v22 }
 0x273   :  { %v2052_v2 = vadd.f32 %v1844_v51, %v1646_v27  ;;  %2412 = vmatmul.mubr.bf16.vlgmr.msra.gmra.mxu1 %v6191_v28 }
 0x274   :  { %v1846_v42 = vpop.f32.mrf.mxu0  ;;  %2421 = vmatprep.mubr.bf16.mxu1 %v7190_v25  ;;  %2573 = vmatpush1.bf16.msra.mxu1 %v4617_v45  ;;  %v7359_v45 = vld [vmem:[#allocation75_spill] sm:$0xff] }
 0x275   :  { %v2137_v34 = vmax.f32 %v2051_v39, %v2052_v2  ;;  %2574 = vmatprep.subr.bf16.mxu1 %v4622_v19  ;;  %v2053_v1 = vadd.f32 %v1846_v42, %v1647_v53  ;;  %v1650_v21 = vadd.f32 %v7360_v36, %v7359_v45  ;;  %v1651_v53 = vadd.f32 %v5835_v23, %v7361_v18  ;;  %v4629_v23 = vld [vmem:[%s7143_s3 + $0x30] ss:$8 sps:$4 sm:$0xff]   ;;  %v7365_v36 = vld [vmem:[#allocation79_spill] sm:$0xff] }
 0x276   :  { %v1848_v5 = vpop.f32.mrf.mxu0  ;;  %v7367_v18 = vld [vmem:[#allocation17_spill] sm:$0xff] }
 0x277   :  { %v2179_v11 = vmax.f32 %v2135_v13, %v2137_v34  ;;  %v2054_v4 = vadd.f32 %v1848_v5, %v1648_v12  ;;  %v4628_v13 = vld [vmem:[%s7143_s3 + $0x44] ss:$8 sps:$4 sm:$0xff]   ;;  %v7363_v12 = vld [vmem:[#allocation90_spill] sm:$0xff] }
 0x278   :  { %v1852_v48 = vpop.f32.mrf.mxu0  ;;  %2575 = vmatpush1.bf16.msra.mxu1 %v4620_v24  ;;  %v4626_v24 = vld [vmem:[%s7143_s3 + $0x40] ss:$8 sps:$4 sm:$0xff]   ;;  %v1652_v34 = vadd.f32 %v7363_v12, %v7362_v6  ;;  %v7368_v6 = vld [vmem:[#allocation18_spill] sm:$0xff] }
 0x279   :  { %v2138_v55 = vmax.f32 %v2053_v1, %v2054_v4  ;;  %2576 = vmatprep.subr.bf16.mxu1 %v4625_v44  ;;  %v2210_v19 = vadd.f32 %v6140_v40, %v2179_v11  ;;  %v2055_v39 = vadd.f32 %v1852_v48, %v1649_v46  ;;  %v6236_v11 = vpop.f32.mrf.mxu1  ;;  %v7364_v46 = vld [vmem:[#allocation78_spill] sm:$0xff] }
 0x27a   :  { %v1854_v27 = vpop.f32.mrf.mxu0  ;;  %v1653_v45 = vadd.f32 %v5868_v54, %v7364_v46  ;;  %v4632_v54 = vld [vmem:[%s7143_s3 + $0x20] ss:$8 sps:$4 sm:$0xff]   ;;  %v7369_v12 = vld [vmem:[#allocation94_spill] sm:$0xff] }
 0x27b   :  { %v2180_v51 = vmax.f32 %v2136_v16, %v2138_v55  ;;  %v2056_v2 = vadd.f32 %v1854_v27, %v1650_v21  ;;  %v4631_v16 = vld [vmem:[%s7143_s3 + $0x34] ss:$8 sps:$4 sm:$0xff]   ;;  %v2234_v4 = vmax.f32 %v2210_v19, 0.0  ;;  %v7366_v21 = vld [vmem:[#allocation92_spill] sm:$0xff]  ;;  %v7371_v46 = vld [vmem:[#allocation95_spill] sm:$0xff] }
 0x27c   :  { %v1856_v42 = vpop.f32.mrf.mxu0  ;;  %2577 = vmatpush1.bf16.msra.mxu1 %v4623_v17  ;;  %v1654_v55 = vadd.f32 %v7366_v21, %v7365_v36  ;;  %v4634_v19 = vld [vmem:[%s7143_s3 + $0x24] ss:$8 sps:$4 sm:$0xff]  }
 0x27d   :  { %v2211_v44 = vadd.f32 %v6140_v40, %v2180_v51  ;;  %v2139_v5 = vmax.f32 %v2055_v39, %v2056_v2  ;;  %2578 = vmatprep.subr.bf16.mxu1 %v4628_v13  ;;  %v2057_v17 = vadd.f32 %v1856_v42, %v1651_v53  ;;  %v6250_v51 = vpop.f32.mrf.mxu1  ;;  %v1655_v53 = vadd.f32 %v5901_v26, %v7367_v18  ;;  %v4635_v26 = vld [vmem:[%s7143_s3 + $0x10] ss:$8 sps:$4 sm:$0xff]   ;;  %v7372_v36 = vld [vmem:[#allocation19_spill] sm:$0xff]  ;;  %v7373_v21 = vld [vmem:[#allocation96_spill] sm:$0xff] }
 0x27e   :  { %v1858_v1 = vpop.f32.mrf.mxu0 }
 0x27f   :  { %v2235_v48 = vmax.f32 %v2211_v44, 0.0  ;;  %v2058_v22 = vadd.f32 %v1858_v1, %v1652_v34  ;;  %v1656_v34 = vadd.f32 %v7369_v12, %v7368_v6  ;;  %v6264_v1 = vpop.f32.mrf.mxu1  ;;  %v4638_v6 = vld [vmem:[%s7143_s3] ss:$8 sps:$4 sm:$0xff]  }
 0x280   :  { %v1862_v30 = vpop.f32.mrf.mxu0  ;;  %2579 = vmatpush1.bf16.msra.mxu1 %v4626_v24  ;;  %v7374_v12 = vld [vmem:[#allocation20_spill] sm:$0xff] }
 0x281   :  { %v2140_v13 = vmax.f32 %v2057_v17, %v2058_v22  ;;  %v6245_v27 = vpack.c.bf16 %v2235_v48, %v2234_v4  ;;  %2580 = vmatprep.subr.bf16.mxu1 %v4631_v16  ;;  %v2059_v2 = vadd.f32 %v1862_v30, %v1653_v45  ;;  %v4637_v16 = vld [vmem:[%s7143_s3 + $0x14] ss:$8 sps:$4 sm:$0xff]  }
 0x282   :  { %v1864_v39 = vpop.f32.mrf.mxu0 }
 0x283   :  { %v2060_v42 = vadd.f32 %v1864_v39, %v1654_v55  ;;  %2422 = vmatmul.mubr.bf16.gmra.mxu1 %v6245_v27  ;;  %v1658_v55 = vadd.f32 %v7373_v21, %v7372_v36  ;;  %v6276_v39 = vpop.f32.mrf.mxu1  ;;  %v7377_v21 = vld [vmem:[#allocation82_spill] sm:$0xff] }
 0x284   :  { %v1866_v24 = vpop.f32.mrf.mxu0  ;;  %2431 = vmatprep.mubr.bf16.mxu1 %v7190_v25  ;;  %2581 = vmatpush1.bf16.msra.mxu1 %v4629_v23  ;;  %v7370_v23 = vld [vmem:[#allocation80_spill] sm:$0xff] }
 0x285   :  { %v2141_v44 = vmax.f32 %v2059_v2, %v2060_v42  ;;  %2582 = vmatprep.subr.bf16.mxu1 %v4634_v19  ;;  %v2061_v17 = vadd.f32 %v1866_v24, %v1655_v53  ;;  %v1657_v45 = vadd.f32 %v7371_v46, %v7370_v23 }
 0x286   :  { %v1868_v4 = vpop.f32.mrf.mxu0 }
 0x287   :  { %v2181_v48 = vmax.f32 %v2139_v5, %v2141_v44  ;;  %v2062_v22 = vadd.f32 %v1868_v4, %v1656_v34  ;;  %v4640_v5 = vld [vmem:[%s7143_s3 + $0x4] ss:$8 sps:$4 sm:$0xff]   ;;  %v7375_v34 = vld [vmem:[#allocation97_spill] sm:$0xff] }
 0x288   :  { %v1872_v30 = vpop.f32.mrf.mxu0  ;;  %2583 = vmatpush1.bf16.msra.mxu1 %v4632_v54  ;;  %v1659_v44 = vadd.f32 %v7375_v34, %v7374_v12 }
 0x289   :  { %v2142_v19 = vmax.f32 %v2061_v17, %v2062_v22  ;;  %2584 = vmatprep.subr.bf16.mxu1 %v4637_v16  ;;  %v2212_v42 = vadd.f32 %v6140_v40, %v2181_v48  ;;  %v2063_v54 = vadd.f32 %v1872_v30, %v1657_v45  ;;  %v7376_v16 = vld [vmem:[#allocation21_spill] sm:$0xff]  ;;  %v6290_v48 = vpop.f32.mrf.mxu1 }
 0x28a   :  { %v1874_v2 = vpop.f32.mrf.mxu0  ;;  %v1660_v4 = vadd.f32 %v5983_v32, %v7376_v16  ;;  %v1661_v32 = vadd.f32 %v5991_v61, %v7377_v21  ;;  %v7379_v61 = vld [vmem:[#allocation23_spill] sm:$0xff] }
 0x28b   :  { %v2182_v24 = vmax.f32 %v2140_v13, %v2142_v19  ;;  %v2064_v18 = vadd.f32 %v1874_v2, %v1658_v55  ;;  %v4643_v13 = vld [vmem:[%s7143_s3 + $0x174] ss:$8 sps:$4 sm:$0xff]  }
 0x28c   :  { %v1876_v53 = vpop.f32.mrf.mxu0  ;;  %2585 = vmatpush1.bf16.msra.mxu1 %v4635_v26  ;;  %v2236_v26 = vmax.f32 %v2212_v42, 0.0  ;;  %v7378_v55 = vld [vmem:[#allocation22_spill] sm:$0xff] }
 0x28d   :  { %v2213_v17 = vadd.f32 %v6140_v40, %v2182_v24  ;;  %v2143_v22 = vmax.f32 %v2063_v54, %v2064_v18  ;;  %2586 = vmatprep.subr.bf16.mxu1 %v4640_v5  ;;  %v2065_v46 = vadd.f32 %v1876_v53, %v1659_v44  ;;  %v1662_v19 = vadd.f32 %v6004_v62, %v7378_v55  ;;  %v6298_v24 = vpop.f32.mrf.mxu1 }
 0x28e   :  { %v1878_v30 = vpop.f32.mrf.mxu0  ;;  %v1663_v62 = vadd.f32 %v6012_v33, %v7379_v61 }
 0x28f   :  { %v2237_v23 = vmax.f32 %v2213_v17, 0.0  ;;  %v2066_v45 = vadd.f32 %v1878_v30, %v1660_v4  ;;  %v6308_v44 = vpop.f32.mrf.mxu1 }
 0x290   :  { %v1882_v36 = vpop.f32.mrf.mxu0  ;;  %2587 = vmatpush1.bf16.msra.mxu1 %v4638_v6  ;;  %v7380_v6 = vld [vmem:[#allocation24_spill] sm:$0xff] }
 0x291   :  { %v2144_v5 = vmax.f32 %v2065_v46, %v2066_v45  ;;  %v6296_v2 = vpack.c.bf16 %v2237_v23, %v2236_v26  ;;  %2782 = vmatprep.subr.bf16.mxu1 %v4643_v13  ;;  %v2067_v18 = vadd.f32 %v1882_v36, %v1661_v32  ;;  %v1664_v12 = vadd.f32 %v6023_v60, %v7380_v6  ;;  %v7381_v26 = vld [vmem:[#allocation84_spill] sm:$0xff]  ;;  %v7382_v46 = vld [vmem:[#allocation25_spill] sm:$0xff]  ;;  %v6314_v21 = vpop.f32.mrf.mxu1 }
 0x292   :  { %v1884_v54 = vpop.f32.mrf.mxu0  ;;  %v1665_v23 = vadd.f32 %v6031_v59, %v7381_v26  ;;  %v1666_v45 = vadd.f32 %v6042_v57, %v7382_v46 }
 0x293   :  { %v2068_v42 = vadd.f32 %v1884_v54, %v1662_v19  ;;  %2432 = vmatmul.mubr.bf16.gmra.mxu1 %v6296_v2  ;;  %3057 = vmatmul.mubr.bf16.vlgmr.msra.gmra.mxu0 %v6296_v2  ;;  %v6322_v57 = vpop.f32.mrf.mxu1 }
 0x294   :  { %v1886_v53 = vpop.f32.mrf.mxu0  ;;  %2441 = vmatprep.mubr.bf16.mxu1 %v7190_v25  ;;  %3066 = vmatprep.mubr.bf16.mxu0 %v7190_v25 }
 0x295   :  { %v2145_v34 = vmax.f32 %v2067_v18, %v2068_v42  ;;  %v2069_v17 = vadd.f32 %v1886_v53, %v1663_v62  ;;  %v7384_v42 = vld [vmem:[#allocation27_spill] sm:$0xff]  ;;  %v6330_v26 = vpop.f32.mrf.mxu1 }
 0x296   :  { %v1888_v16 = vpop.f32.mrf.mxu0  ;;  %v1668_v53 = vadd.f32 %v6063_v7, %v7384_v42 }
 0x297   :  { %v2183_v4 = vmax.f32 %v2143_v22, %v2145_v34  ;;  %v2070_v13 = vadd.f32 %v1888_v16, %v1664_v12  ;;  %v7383_v22 = vld [vmem:[#allocation26_spill] sm:$0xff] }
 0x298   :  { %v1892_v30 = vpop.f32.mrf.mxu0  ;;  %v1667_v18 = vadd.f32 %v6050_v10, %v7383_v22 }
 0x299   :  { %v2146_v36 = vmax.f32 %v2069_v17, %v2070_v13  ;;  %v2214_v60 = vadd.f32 %v6140_v40, %v2183_v4  ;;  %v2071_v55 = vadd.f32 %v1892_v30, %v1665_v23  ;;  %v7385_v4 = vld [vmem:[#allocation85_spill] sm:$0xff]  ;;  %v7386_v13 = vld [vmem:[#allocation28_spill] sm:$0xff] }
 0x29a   :  { %v1894_v33 = vpop.f32.mrf.mxu0  ;;  %v1669_v17 = vadd.f32 %v6071_v52, %v7385_v4  ;;  %v1670_v10 = vadd.f32 %v6084_v14, %v7386_v13  ;;  %v7387_v52 = vld [vmem:[#allocation29_spill] sm:$0xff] }
 0x29b   :  { %v2184_v32 = vmax.f32 %v2144_v5, %v2146_v36  ;;  %v2072_v19 = vadd.f32 %v1894_v33, %v1666_v45  ;;  %v2238_v6 = vmax.f32 %v2214_v60, 0.0  ;;  %v1671_v14 = vadd.f32 %v6095_v35, %v7387_v52  ;;  %v7388_v33 = vld [vmem:[#allocation30_spill] sm:$0xff] }
 0x29c   :  { %v1896_v54 = vpop.f32.mrf.mxu0  ;;  %v1672_v60 = vadd.f32 %v6107_v8, %v7388_v33 }
 0x29d   :  { %v2215_v59 = vadd.f32 %v6140_v40, %v2184_v32  ;;  %v2147_v61 = vmax.f32 %v2071_v55, %v2072_v19  ;;  %v2073_v34 = vadd.f32 %v1896_v54, %v1667_v18  ;;  %v6340_v55 = vpop.f32.mrf.mxu1 }
 0x29e   :  { %v1898_v62 = vpop.f32.mrf.mxu0 }
 0x29f   :  { %v2239_v12 = vmax.f32 %v2215_v59, 0.0  ;;  %v2074_v16 = vadd.f32 %v1898_v62, %v1668_v53  ;;  %v7389_v53 = vld [vmem:[#allocation87_spill] sm:$0xff] }
 0x2a0   :  { %v1902_v5 = vpop.f32.mrf.mxu0  ;;  %v1673_v59 = vadd.f32 %v6115_v50, %v7389_v53  ;;  %v7390_v62 = vld [vmem:[#allocation31_spill] sm:$0xff] }
 0x2a1   :  { %v6328_v30 = vpack.c.bf16 %v2239_v12, %v2238_v6  ;;  %v2148_v7 = vmax.f32 %v2073_v34, %v2074_v16  ;;  %v2075_v46 = vadd.f32 %v1902_v5, %v1669_v17  ;;  %v1674_v6 = vadd.f32 %v6120_v58, %v7390_v62  ;;  %v6346_v34 = vpop.f32.mrf.mxu1  ;;  %v7396_v62 = vld [vmem:[#allocation36_spill] sm:$0xff] }
 0x2a2   :  { %v1904_v23 = vpop.f32.mrf.mxu0 }
 0x2a3   :  { %v2076_v45 = vadd.f32 %v1904_v23, %v1670_v10  ;;  %2442 = vmatmul.mubr.bf16.gmra.mxu1 %v6328_v30  ;;  %3067 = vmatmul.mubr.bf16.gmra.mxu0 %v6328_v30  ;;  %v7392_v10 = vld [vmem:[#allocation33_spill] sm:$0xff]  ;;  %v6354_v58 = vpop.f32.mrf.mxu1 }
 0x2a4   :  { %v1906_v36 = vpop.f32.mrf.mxu0  ;;  %2451 = vmatprep.mubr.bf16.mxu1 %v7190_v25  ;;  %3076 = vmatprep.mubr.bf16.mxu0 %v7190_v25  ;;  %v1676_v23 = vadd.f32 %v6129_v63, %v7392_v10  ;;  %v7398_v10 = vld [vmem:[#allocation37_spill] sm:$0xff] }
 0x2a5   :  { %v2149_v32 = vmax.f32 %v2075_v46, %v2076_v45  ;;  %v2077_v22 = vadd.f32 %v1906_v36, %v1671_v14 }
 0x2a6   :  { %v1908_v19 = vpop.f32.mrf.mxu0 }
 0x2a7   :  { %v2185_v54 = vmax.f32 %v2147_v61, %v2149_v32  ;;  %v2078_v18 = vadd.f32 %v1908_v19, %v1672_v60  ;;  %v7391_v61 = vld [vmem:[#allocation32_spill] sm:$0xff]  ;;  %v7393_v60 = vld [vmem:[#allocation89_spill] sm:$0xff]  ;;  %v7394_v19 = vld [vmem:[#allocation34_spill] sm:$0xff] }
 0x2a8   :  { %v1912_v42 = vpop.f32.mrf.mxu0  ;;  %v1675_v13 = vadd.f32 %v6126_v38, %v7391_v61  ;;  %v1677_v32 = vadd.f32 %v6135_v29, %v7393_v60  ;;  %v1678_v38 = vadd.f32 %v6146_v0, %v7394_v19  ;;  %v7395_v29 = vld [vmem:[#allocation35_spill] sm:$0xff] }
 0x2a9   :  { %v2150_v12 = vmax.f32 %v2077_v22, %v2078_v18  ;;  %v2216_v8 = vadd.f32 %v6140_v40, %v2185_v54  ;;  %v2079_v5 = vadd.f32 %v1912_v42, %v1673_v59  ;;  %v6362_v22 = vpop.f32.mrf.mxu1  ;;  %v1679_v0 = vadd.f32 %v6154_v47, %v7395_v29  ;;  %v7397_v61 = vld [vmem:[#allocation91_spill] sm:$0xff]  ;;  %v7401_v29 = vld [vmem:[#allocation93_spill] sm:$0xff] }
 0x2aa   :  { %v1914_v35 = vpop.f32.mrf.mxu0  ;;  %v7400_v60 = vld [vmem:[#allocation39_spill] sm:$0xff] }
 0x2ab   :  { %v2186_v16 = vmax.f32 %v2148_v7, %v2150_v12  ;;  %v2080_v4 = vadd.f32 %v1914_v35, %v1674_v6  ;;  %v2240_v36 = vmax.f32 %v2216_v8, 0.0  ;;  %v1680_v6 = vadd.f32 %v6162_v49, %v7396_v62  ;;  %v6372_v35 = vpop.f32.mrf.mxu1  ;;  %v7402_v62 = vld [vmem:[#allocation40_spill] sm:$0xff] }
 0x2ac   :  { %v1916_v17 = vpop.f32.mrf.mxu0 }
 0x2ad   :  { %v2217_v50 = vadd.f32 %v6140_v40, %v2186_v16  ;;  %v2151_v46 = vmax.f32 %v2079_v5, %v2080_v4  ;;  %v2081_v14 = vadd.f32 %v1916_v17, %v1675_v13  ;;  %v1681_v13 = vadd.f32 %v6168_v15, %v7397_v61 }
 0x2ae   :  { %v1918_v45 = vpop.f32.mrf.mxu0 }
 0x2af   :  { %v2241_v52 = vmax.f32 %v2217_v50, 0.0  ;;  %v2082_v33 = vadd.f32 %v1918_v45, %v1676_v23  ;;  %v1682_v23 = vadd.f32 %v6174_v37, %v7398_v10  ;;  %v6378_v45 = vpop.f32.mrf.mxu1 }
 0x2b0   :  { %v1922_v7 = vpop.f32.mrf.mxu0 }
 0x2b1   :  { %v6360_v54 = vpack.c.bf16 %v2241_v52, %v2240_v36  ;;  %v2152_v63 = vmax.f32 %v2081_v14, %v2082_v33  ;;  %v2083_v42 = vadd.f32 %v1922_v7, %v1677_v32  ;;  %v1684_v32 = vadd.f32 %v6196_v3, %v7400_v60  ;;  %v6386_v37 = vpop.f32.mrf.mxu1 }
 0x2b2   :  { %v1924_v18 = vpop.f32.mrf.mxu0 }
 0x2b3   :  { %v2084_v53 = vadd.f32 %v1924_v18, %v1678_v38  ;;  %2452 = vmatmul.mubr.bf16.gmra.mxu1 %v6360_v54  ;;  %3077 = vmatmul.mubr.bf16.gmra.mxu0 %v6360_v54 }
 0x2b4   :  { %v1926_v59 = vpop.f32.mrf.mxu0  ;;  %2461 = vmatprep.mubr.bf16.mxu1 %v7190_v25  ;;  %3086 = vmatprep.mubr.bf16.mxu0 %v7190_v25 }
 0x2b5   :  { %v2153_v12 = vmax.f32 %v2083_v42, %v2084_v53  ;;  %v2085_v5 = vadd.f32 %v1926_v59, %v1679_v0  ;;  %v1685_v0 = vadd.f32 %v6210_v9, %v7401_v29  ;;  %v7403_v9 = vld [vmem:[#allocation41_spill] sm:$0xff] }
 0x2b6   :  { %v1928_v8 = vpop.f32.mrf.mxu0 }
 0x2b7   :  { %v2187_v16 = vmax.f32 %v2151_v46, %v2153_v12  ;;  %v2086_v4 = vadd.f32 %v1928_v8, %v1680_v6  ;;  %v7399_v46 = vld [vmem:[#allocation38_spill] sm:$0xff]  ;;  %v6394_v12 = vpop.f32.mrf.mxu1 }
 0x2b8   :  { %v1932_v17 = vpop.f32.mrf.mxu0  ;;  %v1683_v7 = vadd.f32 %v6182_v20, %v7399_v46  ;;  %v1686_v20 = vadd.f32 %v6222_v43, %v7402_v62  ;;  %v1687_v43 = vadd.f32 %v6236_v11, %v7403_v9 }
 0x2b9   :  { %v2154_v50 = vmax.f32 %v2085_v5, %v2086_v4  ;;  %v2218_v49 = vadd.f32 %v6140_v40, %v2187_v16  ;;  %v2087_v52 = vadd.f32 %v1932_v17, %v1681_v13  ;;  %v7404_v17 = vld [vmem:[#allocation42_spill] sm:$0xff]  ;;  %v6404_v10 = vpop.f32.mrf.mxu1 }
 0x2ba   :  { %v1934_v47 = vpop.f32.mrf.mxu0  ;;  %v1688_v61 = vadd.f32 %v6250_v51, %v7404_v17 }
 0x2bb   :  { %v2188_v36 = vmax.f32 %v2152_v63, %v2154_v50  ;;  %v2088_v14 = vadd.f32 %v1934_v47, %v1682_v23  ;;  %v2242_v18 = vmax.f32 %v2218_v49, 0.0  ;;  %v6410_v60 = vpop.f32.mrf.mxu1 }
 0x2bc   :  { %v1936_v33 = vpop.f32.mrf.mxu0 }
 0x2bd   :  { %v2219_v15 = vadd.f32 %v6140_v40, %v2188_v36  ;;  %v2155_v19 = vmax.f32 %v2087_v52, %v2088_v14  ;;  %v2089_v53 = vadd.f32 %v1936_v33, %v1683_v7  ;;  %v7405_v52 = vld [vmem:[#allocation43_spill] sm:$0xff]  ;;  %v7406_v33 = vld [vmem:[#allocation44_spill] sm:$0xff] }
 0x2be   :  { %v1938_v38 = vpop.f32.mrf.mxu0  ;;  %v1689_v14 = vadd.f32 %v6264_v1, %v7405_v52  ;;  %v1690_v46 = vadd.f32 %v6276_v39, %v7406_v33  ;;  %v6418_v39 = vpop.f32.mrf.mxu1 }
 0x2bf   :  { %v2243_v42 = vmax.f32 %v2219_v15, 0.0  ;;  %v2090_v59 = vadd.f32 %v1938_v38, %v1684_v32 }
 0x2c0   :  { %v1942_v63 = vpop.f32.mrf.mxu0 }
 0x2c1   :  { %v6392_v6 = vpack.c.bf16 %v2243_v42, %v2242_v18  ;;  %v2156_v3 = vmax.f32 %v2089_v53, %v2090_v59  ;;  %v2091_v16 = vadd.f32 %v1942_v63, %v1685_v0  ;;  %v7408_v53 = vld [vmem:[#allocation46_spill] sm:$0xff] }
 0x2c2   :  { %v1944_v8 = vpop.f32.mrf.mxu0  ;;  %v1692_v59 = vadd.f32 %v6298_v24, %v7408_v53 }
 0x2c3   :  { %v2092_v5 = vadd.f32 %v1944_v8, %v1686_v20  ;;  %2462 = vmatmul.mubr.bf16.gmra.mxu1 %v6392_v6  ;;  %3087 = vmatmul.mubr.bf16.gmra.mxu0 %v6392_v6 }
 0x2c4   :  { %v1946_v4 = vpop.f32.mrf.mxu0  ;;  %2471 = vmatprep.mubr.bf16.mxu1 %v7190_v25  ;;  %3096 = vmatprep.mubr.bf16.mxu0 %v7190_v25 }
 0x2c5   :  { %v2157_v13 = vmax.f32 %v2091_v16, %v2092_v5  ;;  %v2093_v47 = vadd.f32 %v1946_v4, %v1687_v43  ;;  %v7409_v16 = vld [vmem:[#allocation98_spill] sm:$0xff]  ;;  %v7410_v4 = vld [vmem:[#allocation99_spill] sm:$0xff]  ;;  %v6426_v43 = vpop.f32.mrf.mxu1 }
 0x2c6   :  { %v1948_v23 = vpop.f32.mrf.mxu0  ;;  %v1693_v5 = vadd.f32 %v6308_v44, %v7409_v16  ;;  %v7411_v44 = vld [vmem:[#allocation47_spill] sm:$0xff] }
 0x2c7   :  { %v2189_v50 = vmax.f32 %v2155_v19, %v2157_v13  ;;  %v2094_v49 = vadd.f32 %v1948_v23, %v1688_v61  ;;  %v7407_v19 = vld [vmem:[#allocation45_spill] sm:$0xff] }
 0x2c8   :  { %v1952_v36 = vpop.f32.mrf.mxu0  ;;  %v1691_v42 = vadd.f32 %v6290_v48, %v7407_v19  ;;  %v1694_v48 = vadd.f32 %v6314_v21, %v7410_v4  ;;  %v1695_v21 = vadd.f32 %v6322_v57, %v7411_v44 }
 0x2c9   :  { %v2158_v7 = vmax.f32 %v2093_v47, %v2094_v49  ;;  %v2220_v51 = vadd.f32 %v6140_v40, %v2189_v50  ;;  %v2095_v15 = vadd.f32 %v1952_v36, %v1689_v14  ;;  %v7412_v50 = vld [vmem:[#allocation48_spill] sm:$0xff]  ;;  %v6436_v36 = vpop.f32.mrf.mxu1 }
 0x2ca   :  { %v1954_v11 = vpop.f32.mrf.mxu0  ;;  %v1696_v47 = vadd.f32 %v6330_v26, %v7412_v50 }
 0x2cb   :  { %v2190_v32 = vmax.f32 %v2156_v3, %v2158_v7  ;;  %v2096_v38 = vadd.f32 %v1954_v11, %v1690_v46  ;;  %v2244_v0 = vmax.f32 %v2220_v51, 0.0  ;;  %v7413_v11 = vld [vmem:[#allocation49_spill] sm:$0xff] }
 0x2cc   :  { %v1956_v18 = vpop.f32.mrf.mxu0  ;;  %v1697_v51 = vadd.f32 %v6340_v55, %v7413_v11 }
 0x2cd   :  { %v2221_v1 = vadd.f32 %v6140_v40, %v2190_v32  ;;  %v2159_v63 = vmax.f32 %v2095_v15, %v2096_v38  ;;  %v2097_v20 = vadd.f32 %v1956_v18, %v1691_v42  ;;  %v7414_v32 = vld [vmem:[#allocation100_spill] sm:$0xff]  ;;  %v6442_v18 = vpop.f32.mrf.mxu1 }
 0x2ce   :  { %v1958_v29 = vpop.f32.mrf.mxu0  ;;  %v1698_v15 = vadd.f32 %v6346_v34, %v7414_v32  ;;  %v4641_v32 = vld [vmem:[%s7143_s3 + $0x170] ss:$8 sps:$4 sm:$0xff]  }
 0x2cf   :  { %v2245_v62 = vmax.f32 %v2221_v1, 0.0  ;;  %v2098_v8 = vadd.f32 %v1958_v29, %v1692_v59  ;;  %v7415_v1 = vld [vmem:[#allocation101_spill] sm:$0xff]  ;;  %v7416_v29 = vld [vmem:[#allocation51_spill] sm:$0xff]  ;;  %v6450_v34 = vpop.f32.mrf.mxu1 }
 0x2d0   :  { %v1962_v3 = vpop.f32.mrf.mxu0 }
 0x2d1   :  { %v6424_v9 = vpack.c.bf16 %v2245_v62, %v2244_v0  ;;  %v2160_v24 = vmax.f32 %v2097_v20, %v2098_v8  ;;  %v2099_v61 = vadd.f32 %v1962_v3, %v1693_v5  ;;  %v1700_v0 = vadd.f32 %v6362_v22, %v7416_v29  ;;  %v6458_v22 = vpop.f32.mrf.mxu1 }
 0x2d2   :  { %v1964_v17 = vpop.f32.mrf.mxu0 }
 0x2d3   :  { %v2100_v13 = vadd.f32 %v1964_v17, %v1694_v48  ;;  %2472 = vmatmul.mubr.bf16.gmra.mxu1 %v6424_v9  ;;  %3097 = vmatmul.mubr.bf16.gmra.mxu0 %v6424_v9  ;;  %v7417_v48 = vld [vmem:[#allocation52_spill] sm:$0xff] }
 0x2d4   :  { %v1966_v23 = vpop.f32.mrf.mxu0  ;;  %2481 = vmatprep.mubr.bf16.mxu1 %v7190_v25  ;;  %3106 = vmatprep.mubr.bf16.mxu0 %v7190_v25 }
 0x2d5   :  { %v2161_v49 = vmax.f32 %v2099_v61, %v2100_v13  ;;  %v2101_v33 = vadd.f32 %v1966_v23, %v1695_v21 }
 0x2d6   :  { %v1968_v52 = vpop.f32.mrf.mxu0 }
 0x2d7   :  { %v2191_v14 = vmax.f32 %v2159_v63, %v2161_v49  ;;  %v2102_v46 = vadd.f32 %v1968_v52, %v1696_v47  ;;  %v1699_v63 = vadd.f32 %v6354_v58, %v7415_v1  ;;  %v1702_v58 = vadd.f32 %v6378_v45, %v6026_v31  ;;  %v6468_v47 = vpop.f32.mrf.mxu1 }
 0x2d8   :  { %v1972_v7 = vpop.f32.mrf.mxu0  ;;  %v1704_v45 = vadd.f32 %v6394_v12, %v6034_v41 }
 0x2d9   :  { %v2162_v38 = vmax.f32 %v2101_v33, %v2102_v46  ;;  %v2222_v26 = vadd.f32 %v6140_v40, %v2191_v14  ;;  %v2103_v42 = vadd.f32 %v1972_v7, %v1697_v51  ;;  %v7419_v46 = vld [vmem:[#allocation50_spill] sm:$0xff] }
 0x2da   :  { %v1974_v57 = vpop.f32.mrf.mxu0  ;;  %v7420_v7 = vld [vmem:[#allocation58_spill] sm:$0xff] }
 0x2db   :  { %v2192_v19 = vmax.f32 %v2160_v24, %v2162_v38  ;;  %v2104_v53 = vadd.f32 %v1974_v57, %v1698_v15  ;;  %v2246_v8 = vmax.f32 %v2222_v26, 0.0  ;;  %v1701_v24 = vadd.f32 %v6372_v35, %v7417_v48  ;;  %v7418_v35 = vld [vmem:[#allocation53_spill] sm:$0xff]  ;;  %v7421_v15 = vld [vmem:[#allocation54_spill] sm:$0xff]  ;;  %v7422_v38 = vld [vmem:[#allocation56_spill] sm:$0xff] }
 0x2dc   :  { %v1976_v59 = vpop.f32.mrf.mxu0  ;;  %v1703_v31 = vadd.f32 %v6386_v37, %v7418_v35  ;;  %v877_v11 = vadd.f32 %v7420_v7, %v7419_v46  ;;  %v1705_v37 = vadd.f32 %v6404_v10, %v7421_v15  ;;  %v1706_v41 = vadd.f32 %v6410_v60, %v7422_v38  ;;  %v4646_v57 = vld [vmem:[%s7143_s3 + $0x164] ss:$8 sps:$4 sm:$0xff]   ;;  %v7423_v26 = vld [vmem:[#allocation102_spill] sm:$0xff]  ;;  %v4644_v60 = vld [vmem:[%s7143_s3 + $0x160] ss:$8 sps:$4 sm:$0xff]  }
 0x2dd   :  { %v2223_v55 = vadd.f32 %v6140_v40, %v2192_v19  ;;  %v2163_v62 = vmax.f32 %v2103_v42, %v2104_v53  ;;  %v2105_v16 = vadd.f32 %v1976_v59, %v1699_v63  ;;  %v1608_v42 = vpop.f32.mrf.mxu1 }
 0x2de   :  { %v1978_v20 = vpop.f32.mrf.mxu0  ;;  %v1302_v19 = vadd.f32 %v7423_v26, %v877_v11  ;;  %v7430_v11 = vld [vmem:[#allocation105_spill] sm:$0xff] }
 0x2df   :  { %v2247_v3 = vmax.f32 %v2223_v55, 0.0  ;;  %v2106_v5 = vadd.f32 %v1978_v20, %v1700_v0  ;;  %v7424_v0 = vld [vmem:[#allocation57_spill] sm:$0xff] }
 0x2e0   :  { %v1982_v4 = vpop.f32.mrf.mxu0  ;;  %v1707_v55 = vadd.f32 %v6418_v39, %v7424_v0 }
 0x2e1   :  { %v2164_v17 = vmax.f32 %v2105_v16, %v2106_v5  ;;  %v6456_v61 = vpack.c.bf16 %v2247_v3, %v2246_v8  ;;  %v2107_v23 = vadd.f32 %v1982_v4, %v1701_v24  ;;  %v6496_v3 = vpop.f32.mrf.mxu1 }
 0x2e2   :  { %v1984_v13 = vpop.f32.mrf.mxu0 }
 0x2e3   :  { %v2108_v44 = vadd.f32 %v1984_v13, %v1702_v58  ;;  %2482 = vmatmul.mubr.bf16.gmra.mxu1 %v6456_v61  ;;  %3107 = vmatmul.mubr.bf16.gmra.mxu0 %v6456_v61  ;;  %v7425_v58 = vld [vmem:[#allocation55_spill] sm:$0xff] }
 0x2e4   :  { %v1986_v21 = vpop.f32.mrf.mxu0  ;;  %2604 = vmatprep.mubr.bf16.mxu1 %v7190_v25  ;;  %3116 = vmatprep.mubr.bf16.mxu0 %v7190_v25 }
 0x2e5   :  { %v2165_v50 = vmax.f32 %v2107_v23, %v2108_v44  ;;  %v2109_v14 = vadd.f32 %v1986_v21, %v1703_v31  ;;  %v7427_v23 = vld [vmem:[#allocation103_spill] sm:$0xff]  ;;  %v7428_v21 = vld [vmem:[#allocation104_spill] sm:$0xff] }
 0x2e6   :  { %v1988_v49 = vpop.f32.mrf.mxu0  ;;  %v1709_v44 = vadd.f32 %v6436_v36, %v7427_v23  ;;  %v1710_v35 = vadd.f32 %v6442_v18, %v7428_v21  ;;  %v4650_v18 = vld [vmem:[%s7143_s3 + $0x140] ss:$8 sps:$4 sm:$0xff]  }
 0x2e7   :  { %v2193_v52 = vmax.f32 %v2163_v62, %v2165_v50  ;;  %v2110_v33 = vadd.f32 %v1988_v49, %v1704_v45  ;;  %v1708_v62 = vadd.f32 %v6426_v43, %v1302_v19  ;;  %v4647_v43 = vld [vmem:[%s7143_s3 + $0x150] ss:$8 sps:$4 sm:$0xff]   ;;  %v4652_v50 = vld [vmem:[%s7143_s3 + $0x144] ss:$8 sps:$4 sm:$0xff]   ;;  %v6512_v49 = vpop.f32.mrf.mxu1 }
 0x2e8   :  { %v1992_v51 = vpop.f32.mrf.mxu0 }
 0x2e9   :  { %v2166_v12 = vmax.f32 %v2109_v14, %v2110_v33  ;;  %v2224_v59 = vadd.f32 %v6140_v40, %v2193_v52  ;;  %v2111_v63 = vadd.f32 %v1992_v51, %v1705_v37  ;;  %v7429_v14 = vld [vmem:[#allocation106_spill] sm:$0xff]  ;;  %v1711_v51 = vadd.f32 %v6450_v34, %v7430_v11  ;;  %v1616_v37 = vpop.f32.mrf.mxu1 }
 0x2ea   :  { %v1994_v53 = vpop.f32.mrf.mxu0  ;;  %v4653_v34 = vld [vmem:[%s7143_s3 + $0x130] ss:$8 sps:$4 sm:$0xff]  }
 0x2eb   :  { %v2194_v1 = vmax.f32 %v2164_v17, %v2166_v12  ;;  %v2112_v29 = vadd.f32 %v1994_v53, %v1706_v41  ;;  %2605 = vmatmul.mubr.bf16.vlgmr.msra.gmra.mxu1 %v6160_v56  ;;  %v4649_v56 = vld [vmem:[%s7143_s3 + $0x154] ss:$8 sps:$4 sm:$0xff]   ;;  %v2248_v5 = vmax.f32 %v2224_v59, 0.0  ;;  %v7426_v17 = vld [vmem:[#allocation59_spill] sm:$0xff] }
 0x2ec   :  { %v1996_v10 = vpop.f32.mrf.mxu0  ;;  %2783 = vmatpush1.bf16.msra.mxu1 %v4641_v32  ;;  %2614 = vmatprep.mubr.bf16.mxu1 %v7190_v25  ;;  %v887_v39 = vadd.f32 %v7426_v17, %v7425_v58  ;;  %v7432_v53 = vld [vmem:[#allocation10_spill] sm:$0xff] }
 0x2ed   :  { %v2225_v20 = vadd.f32 %v6140_v40, %v2194_v1  ;;  %v2167_v8 = vmax.f32 %v2111_v63, %v2112_v29  ;;  %2784 = vmatprep.subr.bf16.mxu1 %v4646_v57  ;;  %v2113_v48 = vadd.f32 %v1996_v10, %v1707_v55  ;;  %v1714_v59 = vadd.f32 %v1608_v42, %v7432_v53  ;;  %v4658_v63 = vld [vmem:[%s7143_s3 + $0x124] ss:$8 sps:$4 sm:$0xff]   ;;  %v1618_v29 = vpop.f32.mrf.mxu1 }
 0x2ee   :  { %v1998_v16 = vpop.f32.mrf.mxu0  ;;  %v1306_v33 = vadd.f32 %v7429_v14, %v887_v39  ;;  %v7435_v39 = vld [vmem:[#allocation16_spill] sm:$0xff] }
 0x2ef   :  { %v2249_v4 = vmax.f32 %v2225_v20, 0.0  ;;  %v2114_v24 = vadd.f32 %v1998_v16, %v1708_v62  ;;  %v1620_v16 = vpop.f32.mrf.mxu1 }
 0x2f0   :  { %v2002_v13 = vpop.f32.mrf.mxu0  ;;  %2785 = vmatpush1.bf16.msra.mxu1 %v4644_v60  ;;  %v1712_v32 = vadd.f32 %v6458_v22, %v1306_v33  ;;  %v7431_v22 = vld [vmem:[#allocation9_spill] sm:$0xff]  ;;  %v4664_v33 = vld [vmem:[%s7143_s3 + $0x104] ss:$8 sps:$4 sm:$0xff]  }
 0x2f1   :  { %v2168_v31 = vmax.f32 %v2113_v48, %v2114_v24  ;;  %v6507_v45 = vpack.c.bf16 %v2249_v4, %v2248_v5  ;;  %2786 = vmatprep.subr.bf16.mxu1 %v4649_v56  ;;  %v2115_v46 = vadd.f32 %v2002_v13, %v1709_v44  ;;  %v1713_v19 = vadd.f32 %v6468_v47, %v7431_v22  ;;  %v4656_v47 = vld [vmem:[%s7143_s3 + $0x120] ss:$8 sps:$4 sm:$0xff]   ;;  %v4661_v56 = vld [vmem:[%s7143_s3 + $0x114] ss:$8 sps:$4 sm:$0xff]  }
 0x2f2   :  { %v2004_v52 = vpop.f32.mrf.mxu0  ;;  %v7433_v4 = vld [vmem:[#allocation12_spill] sm:$0xff]  ;;  %v7434_v48 = vld [vmem:[#allocation62_spill] sm:$0xff]  ;;  %v7436_v13 = vld [vmem:[#allocation65_spill] sm:$0xff] }
 0x2f3   :  { %v2116_v7 = vadd.f32 %v2004_v52, %v1710_v35  ;;  %2615 = vmatmul.mubr.bf16.gmra.mxu1 %v6191_v28  ;;  %3117 = vmatmul.mubr.bf16.gmra.mxu0 %v6507_v45  ;;  %v4655_v28 = vld [vmem:[%s7143_s3 + $0x134] ss:$8 sps:$4 sm:$0xff]   ;;  %v897_v24 = vadd.f32 %v7434_v48, %v7433_v4  ;;  %v7437_v44 = vld [vmem:[#allocation107_spill] sm:$0xff]  ;;  %v4677_v48 = vld [vmem:[%s7143_s3 + $0x230] ss:$8 sps:$4 sm:$0xff]  }
 0x2f4   :  { %v2006_v36 = vpop.f32.mrf.mxu0  ;;  %2624 = vmatprep.mubr.bf16.mxu1 %v7190_v25  ;;  %2787 = vmatpush1.bf16.msra.mxu1 %v4647_v43  ;;  %v907_v43 = vadd.f32 %v7436_v13, %v7435_v39  ;;  %v7438_v35 = vld [vmem:[#allocation13_spill] sm:$0xff]  ;;  %v4688_v13 = vld [vmem:[%s7143_s3 + $0x204] ss:$8 sps:$4 sm:$0xff]  }
 0x2f5   :  { %v2169_v15 = vmax.f32 %v2115_v46, %v2116_v7  ;;  %3126 = vmatprep.mubr.bf16.mxu0 %v7190_v25  ;;  %2788 = vmatprep.subr.bf16.mxu1 %v4652_v50  ;;  %v2117_v12 = vadd.f32 %v2006_v36, %v1711_v51  ;;  %v1310_v21 = vadd.f32 %v7437_v44, %v897_v24  ;;  %v7439_v50 = vld [vmem:[#allocation14_spill] sm:$0xff]  ;;  %v7440_v46 = vld [vmem:[#allocation108_spill] sm:$0xff]  ;;  %v1622_v36 = vpop.f32.mrf.mxu1 }
 0x2f6   :  { %v2008_v38 = vpop.f32.mrf.mxu0  ;;  %v1718_v52 = vadd.f32 %v1618_v29, %v7439_v50  ;;  %v1314_v7 = vadd.f32 %v7440_v46, %v907_v43  ;;  %v4758_v29 = vld [vmem:[%s7142_s2] ss:$0 sm:$0xff]  ;;  %v4679_v4 = vld [vmem:[%s7143_s3 + $0x234] ss:$8 sps:$4 sm:$0xff]  }
 0x2f7   :  { %v2195_v41 = vmax.f32 %v2167_v8, %v2169_v15  ;;  %v2118_v57 = vadd.f32 %v2008_v38, %v1712_v32  ;;  %v1716_v11 = vadd.f32 %v6512_v49, %v1310_v21  ;;  %v7441_v15 = vld [vmem:[#allocation11_spill] sm:$0xff] }
 0x2f8   :  { %v2012_v26 = vpop.f32.mrf.mxu0  ;;  %2789 = vmatpush1.bf16.msra.mxu1 %v4650_v18  ;;  %v4662_v38 = vld [vmem:[%s7143_s3 + $0x100] ss:$8 sps:$4 sm:$0xff]   ;;  %v1720_v49 = vadd.f32 %v1622_v36, %v1314_v7 }
 0x2f9   :  { %v2170_v1 = vmax.f32 %v2117_v12, %v2118_v57  ;;  %2790 = vmatprep.subr.bf16.mxu1 %v4655_v28  ;;  %v2226_v60 = vadd.f32 %v6140_v40, %v2195_v41  ;;  %v2119_v55 = vadd.f32 %v2012_v26, %v1713_v19  ;;  %v1715_v28 = vadd.f32 %v6496_v3, %v7441_v15  ;;  %v7442_v41 = vld [vmem:[#allocation15_spill] sm:$0xff] }
 0x2fa   :  { %v2014_v10 = vpop.f32.mrf.mxu0  ;;  %v1719_v12 = vadd.f32 %v1620_v16, %v7442_v41  ;;  %v4671_v16 = vld [vmem:[%s7143_s3 + $0x250] ss:$8 sps:$4 sm:$0xff]   ;;  %v4680_v24 = vld [vmem:[%s7143_s3 + $0x220] ss:$8 sps:$4 sm:$0xff]  }
 0x2fb   :  { %v2196_v0 = vmax.f32 %v2168_v31, %v2170_v1  ;;  %v2120_v62 = vadd.f32 %v2014_v10, %v1714_v59  ;;  %2625 = vmatmul.mubr.bf16.gmra.mxu1 %v6245_v27  ;;  %v2250_v58 = vmax.f32 %v2226_v60, 0.0  ;;  %v1717_v31 = vadd.f32 %v1616_v37, %v7438_v35  ;;  %v4686_v43 = vld [vmem:[%s7143_s3 + $0x200] ss:$8 sps:$4 sm:$0xff]  }
 0x2fc   :  { %v2016_v20 = vpop.f32.mrf.mxu0  ;;  %2634 = vmatprep.mubr.bf16.mxu1 %v7190_v25  ;;  %2791 = vmatpush1.bf16.msra.mxu1 %v4653_v34  ;;  %v4667_v34 = vld [vmem:[%s7143_s3 + $0x274] ss:$8 sps:$4 sm:$0xff]  }
 0x2fd   :  { %v2227_v42 = vadd.f32 %v6140_v40, %v2196_v0  ;;  %v2171_v8 = vmax.f32 %v2119_v55, %v2120_v62  ;;  %2792 = vmatprep.subr.bf16.mxu1 %v4658_v63  ;;  %v4659_v40 = vld [vmem:[%s7143_s3 + $0x110] ss:$8 sps:$4 sm:$0xff]   ;;  %v2121_v3 = vadd.f32 %v2016_v20, %v1715_v28 }
 0x2fe   :  { %v2018_v5 = vpop.f32.mrf.mxu0 }
 0x2ff   :  { %v2251_v17 = vmax.f32 %v2227_v42, 0.0  ;;  %v2122_v57 = vadd.f32 %v2018_v5, %v1716_v11  ;;  %v4670_v42 = vld [vmem:[%s7143_s3 + $0x264] ss:$8 sps:$4 sm:$0xff]   ;;  %v4674_v5 = vld [vmem:[%s7143_s3 + $0x240] ss:$8 sps:$4 sm:$0xff]  }
 0x300   :  { %v2022_v23 = vpop.f32.mrf.mxu0  ;;  %2793 = vmatpush1.bf16.msra.mxu1 %v4656_v47  ;;  %v4665_v47 = vld [vmem:[%s7143_s3 + $0x270] ss:$8 sps:$4 sm:$0xff]  }
 0x301   :  { %v6557_v14 = vpack.c.bf16 %v2251_v17, %v2250_v58  ;;  %2794 = vmatprep.subr.bf16.mxu1 %v4661_v56  ;;  %v2123_v51 = vadd.f32 %v2022_v23, %v1717_v31  ;;  %v2172_v1 = vmax.f32 %v2121_v3, %v2122_v57  ;;  %v4673_v56 = vld [vmem:[%s7143_s3 + $0x254] ss:$8 sps:$4 sm:$0xff]   ;;  %v4683_v17 = vld [vmem:[%s7143_s3 + $0x210] ss:$8 sps:$4 sm:$0xff]  }
 0x302   :  { %v2024_v18 = vpop.f32.mrf.mxu0  ;;  %v4685_v58 = vld [vmem:[%s7143_s3 + $0x214] ss:$8 sps:$4 sm:$0xff]  }
 0x303   :  { %v2124_v32 = vadd.f32 %v2024_v18, %v1718_v52  ;;  %2635 = vmatmul.mubr.bf16.gmra.mxu1 %v6296_v2  ;;  %3127 = vmatmul.mubr.bf16.gmra.mxu0 %v6557_v14 }
 0x304   :  { %v2026_v37 = vpop.f32.mrf.mxu0  ;;  %2644 = vmatprep.mubr.bf16.mxu1 %v7190_v25  ;;  %2795 = vmatpush1.bf16.msra.mxu1 %v4659_v40 }
 0x305   :  { %v2173_v26 = vmax.f32 %v2123_v51, %v2124_v32  ;;  %2796 = vmatprep.subr.bf16.mxu1 %v4664_v33  ;;  %v2125_v53 = vadd.f32 %v2026_v37, %v1719_v12 }
 0x306   :  { %v2028_v22 = vpop.f32.mrf.mxu0 }
 0x307   :  { %v2197_v19 = vmax.f32 %v2171_v8, %v2173_v26  ;;  %v2126_v59 = vadd.f32 %v2028_v22, %v1720_v49  ;;  %v4668_v8 = vld [vmem:[%s7143_s3 + $0x260] ss:$8 sps:$4 sm:$0xff]  }
 0x308   :  { %2797 = vmatpush1.bf16.msra.mxu1 %v4662_v38 }
 0x309   :  { %v2174_v63 = vmax.f32 %v2125_v53, %v2126_v59  ;;  %3266 = vmatprep.subr.bf16.mxu1 %v4667_v34  ;;  %v2228_v10 = vadd.f32 %v4758_v29, %v2197_v19  ;;  %v4689_v53 = vld [vmem:[%s7145_s5 + $0x78] sm:$0xff]  }
 0x30a   :  { %v4690_v59 = vld [vmem:[%s7145_s5 + $0x38] sm:$0xff]   ;;  %4427 = vmatprep.subr.bf16.mxu0 %v4689_v53  ;;  %v4704_v53 = vld [vmem:[%s7145_s5 + $0xa8] sm:$0xff]  }
 0x30b   :  { %v2198_v60 = vmax.f32 %v2172_v1, %v2174_v63  ;;  %2645 = vmatmul.mubr.bf16.gmra.mxu1 %v6328_v30  ;;  %v2252_v55 = vmax.f32 %v2228_v10, 0.0  ;;  %4428 = vmatpush3.bf16.msra.mxu0 %v4690_v59  ;;  %v4694_v10 = vld [vmem:[%s7145_s5 + $0x30] sm:$0xff]  }
 0x30c   :  { %2654 = vmatprep.mubr.bf16.mxu1 %v7190_v25  ;;  %v4706_v59 = vld [vmem:[%s7145_s5 + $0x10] sm:$0xff]  }
 0x30d   :  { %v2229_v0 = vadd.f32 %v4758_v29, %v2198_v60  ;;  %v4693_v29 = vld [vmem:[%s7145_s5 + $0x70] sm:$0xff]  }
 0x30e   :  { %4429 = vmatprep.subr.bf16.mxu0 %v4693_v29 }
 0x30f   :  { %v2253_v62 = vmax.f32 %v2229_v0, 0.0  ;;  %4430 = vmatpush3.bf16.msra.mxu0 %v4694_v10 }
 0x311   :  { %v6581_v20 = vpack.c.bf16 %v2253_v62, %v2252_v55  ;;  %v4695_v55 = vld [vmem:[%s7145_s5 + $0x68] sm:$0xff]   ;;  %v4691_v62 = vld [vmem:[%s7145_s5 + $0xf8] sm:$0xff]  }
 0x312   :  { %4431 = vmatprep.subr.bf16.mxu0 %v4695_v55  ;;  %v4707_v55 = vld [vmem:[%s7145_s5 + $0x48] sm:$0xff]  }
 0x313   :  { %2655 = vmatmul.mubr.bf16.gmra.mxu1 %v6360_v54 }
 0x314   :  { %2664 = vmatprep.mubr.bf16.mxu1 %v7190_v25 }
 0x31b   :  { %2665 = vmatmul.mubr.bf16.gmra.mxu1 %v6392_v6 }
 0x31c   :  { %2674 = vmatprep.mubr.bf16.mxu1 %v7190_v25 }
 0x323   :  { %2675 = vmatmul.mubr.bf16.gmra.mxu1 %v6424_v9 }
 0x324   :  { %2814 = vmatprep.mubr.bf16.mxu1 %v7190_v25 }
 0x32b   :  { %2815 = vmatmul.mubr.bf16.vlgmr.msra.gmra.mxu1 %v6245_v27  ;;  %v4676_v27 = vld [vmem:[%s7143_s3 + $0x244] ss:$8 sps:$4 sm:$0xff]  }
 0x32c   :  { %3267 = vmatpush1.bf16.msra.mxu1 %v4665_v47  ;;  %2824 = vmatprep.mubr.bf16.mxu1 %v7190_v25  ;;  %v4697_v47 = vld [vmem:[%s7145_s5 + $0x28] sm:$0xff]  }
 0x32d   :  { %3268 = vmatprep.subr.bf16.mxu1 %v4670_v42  ;;  %4432 = vmatpush3.bf16.msra.mxu0 %v4697_v47  ;;  %v4708_v47 = vld [vmem:[%s7145_s5 + $0xe0] sm:$0xff]  }
 0x330   :  { %3269 = vmatpush1.bf16.msra.mxu1 %v4668_v8 }
 0x331   :  { %3270 = vmatprep.subr.bf16.mxu1 %v4673_v56  ;;  %v4699_v56 = vld [vmem:[%s7145_s5 + $0x60] sm:$0xff]  }
 0x332   :  { %4433 = vmatprep.subr.bf16.mxu0 %v4699_v56  ;;  %v4710_v56 = vld [vmem:[%s7145_s5 + $0xa0] sm:$0xff]  }
 0x333   :  { %2825 = vmatmul.mubr.bf16.gmra.mxu1 %v6296_v2  ;;  %v4682_v2 = vld [vmem:[%s7143_s3 + $0x224] ss:$8 sps:$4 sm:$0xff]   ;;  %v6634_v39 = vpop.f32.mrf.mxu1 }
 0x334   :  { %2834 = vmatprep.mubr.bf16.mxu1 %v7190_v25  ;;  %3271 = vmatpush1.bf16.msra.mxu1 %v4671_v16  ;;  %v4700_v16 = vld [vmem:[%s7145_s5 + $0x20] sm:$0xff]  }
 0x335   :  { %3272 = vmatprep.subr.bf16.mxu1 %v4676_v27  ;;  %v6644_v23 = vpop.f32.mrf.mxu1  ;;  %4434 = vmatpush3.bf16.msra.mxu0 %v4700_v16 }
 0x337   :  { %v6646_v40 = vpop.f32.mrf.mxu1 }
 0x338   :  { %3273 = vmatpush1.bf16.msra.mxu1 %v4674_v5  ;;  %v4696_v5 = vld [vmem:[%s7145_s5 + $0xf0] sm:$0xff]  }
 0x339   :  { %3274 = vmatprep.subr.bf16.mxu1 %v4679_v4  ;;  %v6650_v44 = vpop.f32.mrf.mxu1  ;;  %v4698_v4 = vld [vmem:[%s7145_s5 + $0xb0] sm:$0xff]  }
 0x33b   :  { %2835 = vmatmul.mubr.bf16.gmra.mxu1 %v6328_v30 }
 0x33c   :  { %2844 = vmatprep.mubr.bf16.mxu1 %v7190_v25  ;;  %3275 = vmatpush1.bf16.msra.mxu1 %v4677_v48 }
 0x33d   :  { %3276 = vmatprep.subr.bf16.mxu1 %v4682_v2  ;;  %v4701_v2 = vld [vmem:[%s7145_s5 + $0x58] sm:$0xff]  }
 0x33e   :  { %4435 = vmatprep.subr.bf16.mxu0 %v4701_v2 }
 0x340   :  { %3277 = vmatpush1.bf16.msra.mxu1 %v4680_v24  ;;  %v4703_v24 = vld [vmem:[%s7145_s5 + $0x18] sm:$0xff]  }
 0x341   :  { %3278 = vmatprep.subr.bf16.mxu1 %v4685_v58  ;;  %4436 = vmatpush3.bf16.msra.mxu0 %v4703_v24 }
 0x343   :  { %2845 = vmatmul.mubr.bf16.gmra.mxu1 %v6360_v54  ;;  %v6652_v21 = vpop.f32.mrf.mxu1 }
 0x344   :  { %2854 = vmatprep.mubr.bf16.mxu1 %v7190_v25  ;;  %3279 = vmatpush1.bf16.msra.mxu1 %v4683_v17 }
 0x345   :  { %3280 = vmatprep.subr.bf16.mxu1 %v4688_v13  ;;  %v6654_v35 = vpop.f32.mrf.mxu1  ;;  %v4705_v13 = vld [vmem:[%s7145_s5 + $0x50] sm:$0xff]  }
 0x346   :  { %4437 = vmatprep.subr.bf16.mxu0 %v4705_v13 }
 0x347   :  { %v6658_v31 = vpop.f32.mrf.mxu1  ;;  %4438 = vmatpush3.bf16.msra.mxu0 %v4706_v59 }
 0x348   :  { %3281 = vmatpush1.bf16.msra.mxu1 %v4686_v43  ;;  %v4702_v43 = vld [vmem:[%s7145_s5 + $0xe8] sm:$0xff]   ;;  %4439 = vmatprep.subr.bf16.mxu0 %v4707_v55  ;;  %v4713_v55 = vld [vmem:[%s7145_s5 + $0xd8] sm:$0xff]  }
 0x349   :  { %v6660_v50 = vpop.f32.mrf.mxu1  ;;  %4449 = vmatprep.subr.bf16.mxu1 %v4691_v62  ;;  %v4709_v62 = vld [vmem:[%s7145_s5 + $0x8] sm:$0xff]  }
 0x34b   :  { %2855 = vmatmul.mubr.bf16.gmra.mxu1 %v6392_v6  ;;  %4440 = vmatpush3.bf16.msra.mxu0 %v4709_v62  ;;  %v4714_v62 = vld [vmem:[%s7145_s5 + $0x98] sm:$0xff]  }
 0x34c   :  { %2864 = vmatprep.mubr.bf16.mxu1 %v7190_v25 }
 0x353   :  { %2865 = vmatmul.mubr.bf16.gmra.mxu1 %v6424_v9  ;;  %v6664_v52 = vpop.f32.mrf.mxu1 }
 0x354   :  { %2874 = vmatprep.mubr.bf16.mxu1 %v7190_v25 }
 0x355   :  { %v6666_v33 = vpop.f32.mrf.mxu1 }
 0x357   :  { %v6670_v46 = vpop.f32.mrf.mxu1 }
 0x359   :  { %v6672_v7 = vpop.f32.mrf.mxu1 }
 0x35b   :  { %2875 = vmatmul.mubr.bf16.gmra.mxu1 %v6456_v61 }
 0x35c   :  { %2884 = vmatprep.mubr.bf16.mxu1 %v7190_v25 }
 0x363   :  { %2885 = vmatmul.mubr.bf16.gmra.mxu1 %v6507_v45  ;;  %v6674_v36 = vpop.f32.mrf.mxu1 }
 0x364   :  { %3298 = vmatprep.mubr.bf16.mxu1 %v7190_v25 }
 0x365   :  { %v6678_v18 = vpop.f32.mrf.mxu1 }
 0x367   :  { %v6680_v11 = vpop.f32.mrf.mxu1 }
 0x368   :  { %7443 = vst [vmem:[#allocation60_spill] sm:$0xff] %v6680_v11 }
 0x369   :  { %v6684_v51 = vpop.f32.mrf.mxu1 }
 0x36a   :  { %7444 = vst [vmem:[#allocation61_spill] sm:$0xff] %v6684_v51  ;;  %v4715_v51 = vld [vmem:[%s7145_s5 + $0xd0] sm:$0xff]  }
 0x36b   :  { %3299 = vmatmul.mubr.bf16.vlgmr.msra.gmra.mxu1 %v6328_v30 }
 0x36c   :  { %3308 = vmatprep.mubr.bf16.mxu1 %v7190_v25 }
 0x373   :  { %3309 = vmatmul.mubr.bf16.gmra.mxu1 %v6360_v54  ;;  %v6686_v32 = vpop.f32.mrf.mxu1 }
 0x374   :  { %3318 = vmatprep.mubr.bf16.mxu1 %v7190_v25 }
 0x375   :  { %v6690_v15 = vpop.f32.mrf.mxu1 }
 0x377   :  { %v6692_v30 = vpop.f32.mrf.mxu1 }
 0x379   :  { %v6696_v28 = vpop.f32.mrf.mxu1 }
 0x37b   :  { %3319 = vmatmul.mubr.bf16.gmra.mxu1 %v6392_v6 }
 0x37c   :  { %3328 = vmatprep.mubr.bf16.mxu1 %v7190_v25 }
 0x383   :  { %3329 = vmatmul.mubr.bf16.gmra.mxu1 %v6424_v9  ;;  %v6698_v54 = vpop.f32.mrf.mxu1 }
 0x384   :  { %3338 = vmatprep.mubr.bf16.mxu1 %v7190_v25 }
 0x385   :  { %v6700_v37 = vpop.f32.mrf.mxu1 }
 0x387   :  { %v6704_v6 = vpop.f32.mrf.mxu1 }
 0x389   :  { %v6706_v38 = vpop.f32.mrf.mxu1 }
 0x38b   :  { %3339 = vmatmul.mubr.bf16.gmra.mxu1 %v6456_v61 }
 0x38c   :  { %3348 = vmatprep.mubr.bf16.mxu1 %v7190_v25 }
 0x393   :  { %3349 = vmatmul.mubr.bf16.gmra.mxu1 %v6507_v45  ;;  %v6710_v9 = vpop.f32.mrf.mxu1 }
 0x394   :  { %3358 = vmatprep.mubr.bf16.mxu1 %v7190_v25 }
 0x395   :  { %v6712_v41 = vpop.f32.mrf.mxu1 }
 0x397   :  { %v6716_v12 = vpop.f32.mrf.mxu1 }
 0x399   :  { %v6718_v61 = vpop.f32.mrf.mxu1 }
 0x39b   :  { %3359 = vmatmul.mubr.bf16.gmra.mxu1 %v6557_v14 }
 0x39c   :  { %3368 = vmatprep.mubr.bf16.mxu1 %v7190_v25 }
 0x3a3   :  { %v6720_v49 = vpop.f32.mrf.mxu1  ;;  %3369 = vmatmul.mubr.bf16.gmra.mxu1 %v6581_v20  ;;  %v4692_v20 = vld [vmem:[%s7145_s5 + $0xb8] sm:$0xff]  }
 0x3a4   :  { %4450 = vmatpush3.bf16.msra.mxu1 %v4692_v20 }
 0x3a5   :  { %v6723_v57 = vpop.f32.mrf.mxu1  ;;  %4451 = vmatprep.subr.bf16.mxu1 %v4696_v5  ;;  %v4711_v5 = vld [vmem:[%s7145_s5 + $0x40] sm:$0xff]  }
 0x3a6   :  { %4441 = vmatprep.subr.bf16.mxu0 %v4711_v5 }
 0x3a7   :  { %v6725_v45 = vpop.f32.mrf.mxu1 }
 0x3a8   :  { %4452 = vmatpush3.bf16.msra.mxu1 %v4698_v4  ;;  %v4712_v4 = vld [vmem:[%s7145_s5] sm:$0xff]  }
 0x3a9   :  { %v6727_v26 = vpop.f32.mrf.mxu1  ;;  %4453 = vmatprep.subr.bf16.mxu1 %v4702_v43  ;;  %4442 = vmatpush3.bf16.msra.mxu0 %v4712_v4 }
 0x3ab   :  { %v6729_v34 = vpop.f32.mrf.mxu1 }
 0x3ac   :  { %4454 = vmatpush3.bf16.msra.mxu1 %v4704_v53 }
 0x3ad   :  { %v6731_v22 = vpop.f32.mrf.mxu1  ;;  %4455 = vmatprep.subr.bf16.mxu1 %v4708_v47 }
 0x3af   :  { %v6733_v14 = vpop.f32.mrf.mxu1 }
 0x3b0   :  { %4456 = vmatpush3.bf16.msra.mxu1 %v4710_v56 }
 0x3b1   :  { %v6735_v25 = vpop.f32.mrf.mxu1  ;;  %4457 = vmatprep.subr.bf16.mxu1 %v4713_v55 }
 0x3b3   :  { %v6737_v3 = vpop.f32.mrf.mxu1 }
 0x3b4   :  { %4458 = vmatpush3.bf16.msra.mxu1 %v4714_v62 }
 0x3b5   :  { %v6739_v19 = vpop.f32.mrf.mxu1  ;;  %4459 = vmatprep.subr.bf16.mxu1 %v4715_v51 }
 0x3b7   :  { %v6747_v1 = vpop.f32.mrf.mxu1 }
 0x3b9   :  { %v6749_v63 = vpop.f32.mrf.mxu1 }
 0x3bb   :  { %v6757_v60 = vpop.f32.mrf.mxu1 }
 0x3bd   :  { %v6759_v0 = vpop.f32.mrf.mxu1 }
 0x3bf   :  { %v6773_v42 = vpop.f32.mrf.mxu1 }
 0x3c1   :  { %v6775_v8 = vpop.f32.mrf.mxu1 }
 0x3c3   :  { %v6783_v27 = vpop.f32.mrf.mxu1 }
 0x3c5   :  { %v6791_v48 = vpop.f32.mrf.mxu1 }
 0x3c7   :  { %v6799_v58 = vpop.f32.mrf.mxu1 }
 0x3c8   :  { %7445 = vst [vmem:[#allocation63_spill] sm:$0xff] %v6799_v58  ;;  %v4716_v58 = vld [vmem:[%s7145_s5 + $0x90] sm:$0xff]  }
 0x3c9   :  { %v6801_v17 = vpop.f32.mrf.mxu1  ;;  %4460 = vmatpush3.bf16.msra.mxu1 %v4716_v58 }
 0x3ca   :  { %7446 = vst [vmem:[#allocation64_spill] sm:$0xff] %v6801_v17 }
 0x3cb   :  { %v6815_v29 = vpop.f32.mrf.mxu1 }
 0x3cd   :  { %v6817_v10 = vpop.f32.mrf.mxu1 }
 0x3cf   :  { %v6825_v20 = vpop.f32.mrf.mxu1 }
 0x3d1   :  { %v6833_v16 = vpop.f32.mrf.mxu1 }
 0x3d3   :  { %v6841_v2 = vpop.f32.mrf.mxu1 }
 0x3d5   :  { %v6843_v24 = vpop.f32.mrf.mxu1 }
 0x3d7   :  { %v6845_v13 = vpop.f32.mrf.mxu1 }
 0x3d9   :  { %v6847_v43 = vpop.f32.mrf.mxu1 }
 0x3db   :  { %v6849_v53 = vpop.f32.mrf.mxu1 }
 0x3dd   :  { %v6851_v59 = vpop.f32.mrf.mxu1 }
 0x3df   :  { %v6859_v47 = vpop.f32.mrf.mxu1 }
 0x3e1   :  { %v2672_v56 = vpop.f32.mrf.mxu1 }
 0x3e2   :  { %v6862_v5 = vadd.f32 %v2672_v56, %v6718_v61  ;;  %v2607_v56 = vadd.f32 %v6729_v34, %v6634_v39  ;;  %v2611_v39 = vadd.f32 %v6733_v14, %v6646_v40  ;;  %v4719_v34 = vld [vmem:[%s7145_s5 + $0xc0] sm:$0xff]   ;;  %v2617_v40 = vadd.f32 %v6737_v3, %v6652_v21  ;;  %v6924_v21 = vpop.f32.mrf.mxu0 }
 0x3e3   :  { %v2676_v4 = vpop.f32.mrf.mxu1 }
 0x3e4   :  { %v6865_v17 = vadd.f32 %v2676_v4, %v6720_v49 }
 0x3e5   :  { %v2678_v11 = vpop.f32.mrf.mxu1 }
 0x3e6   :  { %7447 = vst [vmem:[#allocation66_spill] sm:$0xff] %v6865_v17  ;;  %v6874_v55 = vadd.f32 %v2678_v11, %v6723_v57  ;;  %v4717_v17 = vld [vmem:[%s7145_s5 + $0xc8] sm:$0xff]   ;;  %v2609_v57 = vadd.f32 %v6731_v22, %v6644_v23  ;;  %v2613_v23 = vadd.f32 %v6735_v25, %v6650_v44  ;;  %v2621_v44 = vadd.f32 %v6747_v1, %v6658_v31 }
 0x3e7   :  { %v2680_v62 = vpop.f32.mrf.mxu1  ;;  %v4718_v11 = vld [vmem:[%s7145_s5 + $0x88] sm:$0xff]   ;;  %4461 = vmatprep.subr.bf16.mxu1 %v4717_v17  ;;  %v2629_v31 = vadd.f32 %v6759_v0, %v6666_v33  ;;  %v2637_v33 = vadd.f32 %v6783_v27, %v6674_v36  ;;  %v2647_v36 = vadd.f32 %v6815_v29, %v6686_v32  ;;  %v2653_v32 = vadd.f32 %v6833_v16, %v6696_v28 }
 0x3e8   :  { %v6877_v61 = vadd.f32 %v2680_v62, %v6725_v45  ;;  %4462 = vmatpush3.bf16.msra.mxu1 %v4718_v11  ;;  %v4720_v62 = vld [vmem:[%s7145_s5 + $0x80] sm:$0xff]   ;;  %v2619_v11 = vadd.f32 %v6739_v19, %v6654_v35  ;;  %v2627_v35 = vadd.f32 %v6757_v60, %v6664_v52  ;;  %v2633_v52 = vadd.f32 %v6775_v8, %v6672_v7 }
 0x3e9   :  { %v2682_v49 = vpop.f32.mrf.mxu1  ;;  %4463 = vmatprep.subr.bf16.mxu1 %v4719_v34  ;;  %v2661_v28 = vadd.f32 %v6845_v13, %v6704_v6 }
 0x3ea   :  { %v6882_v4 = vadd.f32 %v2682_v49, %v6727_v26 }
 0x3eb   :  { %v2816_v51 = vpop.f32.mrf.mxu1 }
 0x3ec   :  { %v6892_v45 = vadd.f32 %v2816_v51, %v2607_v56  ;;  %4464 = vmatpush3.bf16.msra.mxu1 %v4720_v62 }
 0x3ed   :  { %v2818_v58 = vpop.f32.mrf.mxu1 }
 0x3ee   :  { %v6896_v26 = vadd.f32 %v2818_v58, %v2609_v57 }
 0x3ef   :  { %v2820_v49 = vpop.f32.mrf.mxu1 }
 0x3f0   :  { %v6906_v22 = vadd.f32 %v2820_v49, %v2611_v39  ;;  %v2623_v39 = vadd.f32 %v6749_v63, %v6660_v50  ;;  %v6934_v49 = vpop.f32.mrf.mxu0  ;;  %v2631_v50 = vadd.f32 %v6773_v42, %v6670_v46  ;;  %v2639_v46 = vadd.f32 %v6791_v48, %v6678_v18 }
 0x3f1   :  { %v2822_v17 = vpop.f32.mrf.mxu1  ;;  %v2649_v18 = vadd.f32 %v6817_v10, %v6690_v15  ;;  %v2657_v15 = vadd.f32 %v6841_v2, %v6698_v54  ;;  %v2663_v54 = vadd.f32 %v6847_v43, %v6706_v38  ;;  %v2671_v38 = vadd.f32 %v6859_v47, %v6716_v12 }
 0x3f2   :  { %v6910_v14 = vadd.f32 %v2822_v17, %v2613_v23 }
 0x3f3   :  { %v2826_v56 = vpop.f32.mrf.mxu1 }
 0x3f4   :  { %v6914_v51 = vadd.f32 %v2826_v56, %v2617_v40  ;;  %v6944_v40 = vpop.f32.mrf.mxu0 }
 0x3f5   :  { %v2828_v57 = vpop.f32.mrf.mxu1 }
 0x3f6   :  { %v6918_v25 = vadd.f32 %v2828_v57, %v2619_v11  ;;  %v6954_v57 = vpop.f32.mrf.mxu0 }
 0x3f7   :  { %v2830_v58 = vpop.f32.mrf.mxu1 }
 0x3f8   :  { %v6922_v34 = vadd.f32 %v2830_v58, %v2621_v44  ;;  %v6958_v8 = vpop.f32.mrf.mxu0 }
 0x3f9   :  { %v2832_v3 = vpop.f32.mrf.mxu1 }
 0x3fa   :  { %v6928_v19 = vadd.f32 %v2832_v3, %v2623_v39  ;;  %v6966_v27 = vpop.f32.mrf.mxu0 }
 0x3fb   :  { %v2836_v62 = vpop.f32.mrf.mxu1 }
 0x3fc   :  { %v6932_v1 = vadd.f32 %v2836_v62, %v2627_v35  ;;  %v2651_v62 = vadd.f32 %v6825_v20, %v6692_v30  ;;  %v2659_v30 = vadd.f32 %v6843_v24, %v6700_v37  ;;  %v2667_v37 = vadd.f32 %v6849_v53, %v6710_v9 }
 0x3fd   :  { %v2838_v23 = vpop.f32.mrf.mxu1 }
 0x3fe   :  { %v6938_v63 = vadd.f32 %v2838_v23, %v2629_v31  ;;  %v6976_v23 = vpop.f32.mrf.mxu0 }
 0x3ff   :  { %v2840_v17 = vpop.f32.mrf.mxu1 }
 0x400   :  { %v6942_v60 = vadd.f32 %v2840_v17, %v2631_v50 }
 0x401   :  { %v2842_v56 = vpop.f32.mrf.mxu1 }
 0x402   :  { %v6948_v0 = vadd.f32 %v2842_v56, %v2633_v52  ;;  %v3074_v52 = vpop.f32.mrf.mxu0 }
 0x403   :  { %v2846_v11 = vpop.f32.mrf.mxu1 }
 0x404   :  { %v6952_v42 = vadd.f32 %v2846_v11, %v2637_v33  ;;  %v6990_v33 = vpop.f32.mrf.mxu0 }
 0x405   :  { %v2848_v44 = vpop.f32.mrf.mxu1 }
 0x406   :  { %v6956_v7 = vadd.f32 %v2848_v44, %v2639_v46  ;;  %v3080_v44 = vpop.f32.mrf.mxu0 }
 0x407   :  { %v6960_v58 = vpop.f32.mrf.mxu1 }
 0x408   :  { %v7008_v13 = vpop.f32.mrf.mxu0 }
 0x409   :  { %v6962_v39 = vpop.f32.mrf.mxu1 }
 0x40a   :  { %v3084_v9 = vpop.f32.mrf.mxu0 }
 0x40b   :  { %v2856_v3 = vpop.f32.mrf.mxu1 }
 0x40c   :  { %v6970_v48 = vadd.f32 %v2856_v3, %v2647_v36 }
 0x40d   :  { %v2858_v35 = vpop.f32.mrf.mxu1 }
 0x40e   :  { %v6974_v31 = vadd.f32 %v2858_v35, %v2649_v18  ;;  %v2669_v18 = vadd.f32 %v6851_v59, %v6712_v41  ;;  %v7448_v59 = vld [vmem:[#allocation66_spill] sm:$0xff] }
 0x40f   :  { %v2860_v50 = vpop.f32.mrf.mxu1 }
 0x410   :  { %v6980_v29 = vadd.f32 %v2860_v50, %v2651_v62 }
 0x411   :  { %v2862_v17 = vpop.f32.mrf.mxu1 }
 0x412   :  { %v6984_v10 = vadd.f32 %v2862_v17, %v2653_v32  ;;  %v7019_v17 = vpop.f32.mrf.mxu0 }
 0x413   :  { %v2866_v56 = vpop.f32.mrf.mxu1 }
 0x414   :  { %v6988_v20 = vadd.f32 %v2866_v56, %v2657_v15  ;;  %v7027_v12 = vpop.f32.mrf.mxu0 }
 0x415   :  { %v2868_v11 = vpop.f32.mrf.mxu1 }
 0x416   :  { %v6994_v16 = vadd.f32 %v2868_v11, %v2659_v30 }
 0x417   :  { %v2870_v46 = vpop.f32.mrf.mxu1 }
 0x418   :  { %v6998_v2 = vadd.f32 %v2870_v46, %v2661_v28  ;;  %v7033_v28 = vpop.f32.mrf.mxu0  ;;  %v3137_v46 = vadd.f32 %v6924_v21, %v6892_v45 }
 0x419   :  { %v2872_v36 = vpop.f32.mrf.mxu1 }
 0x41a   :  { %v7002_v24 = vadd.f32 %v2872_v36, %v2663_v54  ;;  %v3138_v54 = vadd.f32 %v6934_v49, %v6896_v26  ;;  %v3141_v49 = vadd.f32 %v6958_v8, %v6914_v51  ;;  %v7057_v51 = vld [vmem:[%s7144_s4] ss:$0 sm:$0xff] }
 0x41b   :  { %v2876_v3 = vpop.f32.mrf.mxu1 }
 0x41c   :  { %v7006_v6 = vadd.f32 %v2876_v3, %v2667_v37 }
 0x41d   :  { %v2878_v35 = vpop.f32.mrf.mxu1 }
 0x41e   :  { %v7012_v43 = vadd.f32 %v2878_v35, %v2669_v18 }
 0x41f   :  { %v2880_v62 = vpop.f32.mrf.mxu1 }
 0x420   :  { %v7014_v50 = vadd.f32 %v2880_v62, %v2671_v38  ;;  %v3139_v38 = vadd.f32 %v6944_v40, %v6906_v22  ;;  %v3140_v62 = vadd.f32 %v6954_v57, %v6910_v14  ;;  %v3143_v14 = vadd.f32 %v6976_v23, %v6922_v34 }
 0x421   :  { %v2882_v53 = vpop.f32.mrf.mxu1  ;;  %v3144_v57 = vadd.f32 %v3074_v52, %v6928_v19 }
 0x422   :  { %v7017_v32 = vadd.f32 %v2882_v53, %v6862_v5 }
 0x423   :  { %v2886_v41 = vpop.f32.mrf.mxu1 }
 0x424   :  { %v7022_v15 = vadd.f32 %v2886_v41, %v7448_v59 }
 0x425   :  { %v2888_v56 = vpop.f32.mrf.mxu1 }
 0x426   :  { %v7025_v30 = vadd.f32 %v2888_v56, %v6874_v55  ;;  %v7039_v55 = vpop.f32.mrf.mxu0  ;;  %v3142_v56 = vadd.f32 %v6966_v27, %v6918_v25  ;;  %v3145_v27 = vadd.f32 %v6990_v33, %v6932_v1  ;;  %v7449_v1 = vld [vmem:[#allocation60_spill] sm:$0xff]  ;;  %v7450_v33 = vld [vmem:[#allocation63_spill] sm:$0xff] }
 0x427   :  { %v7029_v47 = vpop.f32.mrf.mxu1 }
 0x428   :  { %v7045_v53 = vpop.f32.mrf.mxu0 }
 0x429   :  { %v7031_v11 = vpop.f32.mrf.mxu1 }
 0x42b   :  { %v3300_v5 = vpop.f32.mrf.mxu1 }
 0x42c   :  { %v3379_v37 = vadd.f32 %v3300_v5, %v3137_v46  ;;  %v3100_v5 = vpop.f32.mrf.mxu0 }
 0x42d   :  { %v3302_v36 = vpop.f32.mrf.mxu1 }
 0x42e   :  { %v3380_v3 = vadd.f32 %v3302_v36, %v3138_v54 }
 0x42f   :  { %v3304_v18 = vpop.f32.mrf.mxu1 }
 0x430   :  { %v3411_v35 = vmax.f32 %v3379_v37, %v3380_v3  ;;  %v3381_v45 = vadd.f32 %v3304_v18, %v3139_v38  ;;  %v3102_v37 = vpop.f32.mrf.mxu0 }
 0x431   :  { %v3306_v41 = vpop.f32.mrf.mxu1 }
 0x432   :  { %v3382_v21 = vadd.f32 %v3306_v41, %v3140_v62  ;;  %v3146_v41 = vadd.f32 %v3080_v44, %v6938_v63  ;;  %v3104_v34 = vpop.f32.mrf.mxu0  ;;  %v2641_v63 = vadd.f32 %v7450_v33, %v7449_v1  ;;  %v7451_v44 = vld [vmem:[#allocation61_spill] sm:$0xff] }
 0x433   :  { %v3310_v59 = vpop.f32.mrf.mxu1 }
 0x434   :  { %v3412_v26 = vmax.f32 %v3381_v45, %v3382_v21  ;;  %v3383_v54 = vadd.f32 %v3310_v59, %v3141_v49  ;;  %v3108_v21 = vpop.f32.mrf.mxu0 }
 0x435   :  { %v3312_v46 = vpop.f32.mrf.mxu1 }
 0x436   :  { %v3384_v22 = vadd.f32 %v3312_v46, %v3142_v56  ;;  %v3147_v46 = vadd.f32 %v7008_v13, %v6942_v60 }
 0x437   :  { %v3314_v40 = vpop.f32.mrf.mxu1 }
 0x438   :  { %v3413_v36 = vmax.f32 %v3383_v54, %v3384_v22  ;;  %v3385_v38 = vadd.f32 %v3314_v40, %v3143_v14  ;;  %v3148_v54 = vadd.f32 %v3084_v9, %v6948_v0  ;;  %v7452_v22 = vld [vmem:[#allocation64_spill] sm:$0xff] }
 0x439   :  { %v3316_v3 = vpop.f32.mrf.mxu1  ;;  %v2643_v40 = vadd.f32 %v7452_v22, %v7451_v44 }
 0x43a   :  { %v3427_v18 = vmax.f32 %v3411_v35, %v3413_v36  ;;  %v3386_v62 = vadd.f32 %v3316_v3, %v3144_v57 }
 0x43b   :  { %v3320_v25 = vpop.f32.mrf.mxu1  ;;  %v2910_v0 = vadd.f32 %v6962_v39, %v2643_v40  ;;  %v3156_v40 = vadd.f32 %v3104_v34, %v6984_v10 }
 0x43c   :  { %v3414_v8 = vmax.f32 %v3385_v38, %v3386_v62  ;;  %v3442_v19 = vadd.f32 %v7057_v51, %v3427_v18  ;;  %v3387_v35 = vadd.f32 %v3320_v25, %v3145_v27  ;;  %v3110_v18 = vpop.f32.mrf.mxu0  ;;  %v2909_v38 = vadd.f32 %v6960_v58, %v2641_v63 }
 0x43d   :  { %v3322_v23 = vpop.f32.mrf.mxu1  ;;  %v3149_v62 = vadd.f32 %v7019_v17, %v6952_v42  ;;  %v3150_v25 = vadd.f32 %v7027_v12, %v6956_v7  ;;  %v3152_v58 = vadd.f32 %v7039_v55, %v2910_v0  ;;  %v3153_v7 = vadd.f32 %v7045_v53, %v6970_v48 }
 0x43e   :  { %v3428_v52 = vmax.f32 %v3412_v26, %v3414_v8  ;;  %v3388_v45 = vadd.f32 %v3322_v23, %v3146_v41  ;;  %v3450_v26 = vmax.f32 %v3442_v19, 0.0  ;;  %v3112_v23 = vpop.f32.mrf.mxu0  ;;  %v3154_v12 = vadd.f32 %v3100_v5, %v6974_v31 }
 0x43f   :  { %v3324_v59 = vpop.f32.mrf.mxu1 }
 0x440   :  { %v3443_v49 = vadd.f32 %v7057_v51, %v3428_v52  ;;  %v3415_v56 = vmax.f32 %v3387_v35, %v3388_v45  ;;  %v3389_v57 = vadd.f32 %v3324_v59, %v3147_v46  ;;  %v3151_v35 = vadd.f32 %v7033_v28, %v2909_v38  ;;  %v3114_v39 = vpop.f32.mrf.mxu0 }
 0x441   :  { %v3326_v36 = vpop.f32.mrf.mxu1  ;;  %v3157_v38 = vadd.f32 %v3108_v21, %v6988_v20 }
 0x442   :  { %v3451_v14 = vmax.f32 %v3443_v49, 0.0  ;;  %v3390_v3 = vadd.f32 %v3326_v36, %v3148_v54  ;;  %v3118_v54 = vpop.f32.mrf.mxu0 }
 0x443   :  { %v3330_v60 = vpop.f32.mrf.mxu1 }
 0x444   :  { %v4423_v13 = vpack.c.bf16 %v3451_v14, %v3450_v26  ;;  %v3416_v9 = vmax.f32 %v3389_v57, %v3390_v3  ;;  %v3391_v27 = vadd.f32 %v3330_v60, %v3149_v62  ;;  %v3120_v26 = vpop.f32.mrf.mxu0  ;;  %v3158_v62 = vadd.f32 %v3110_v18, %v6994_v16 }
 0x445   :  { %v3332_v8 = vpop.f32.mrf.mxu1 }
 0x446   :  { %v3392_v41 = vadd.f32 %v3332_v8, %v3150_v25  ;;  %v3122_v0 = vpop.f32.mrf.mxu0  ;;  %v3159_v25 = vadd.f32 %v3112_v23, %v6998_v2  ;;  %v3160_v8 = vadd.f32 %v3114_v39, %v7002_v24 }
 0x447   :  { %v3334_v19 = vpop.f32.mrf.mxu1 }
 0x448   :  { %v3417_v52 = vmax.f32 %v3391_v27, %v3392_v41  ;;  %v3393_v17 = vadd.f32 %v3334_v19, %v3151_v35  ;;  %v3124_v27 = vpop.f32.mrf.mxu0  ;;  %v3161_v35 = vadd.f32 %v3118_v54, %v7006_v6 }
 0x449   :  { %v3336_v45 = vpop.f32.mrf.mxu1 }
 0x44a   :  { %v3429_v42 = vmax.f32 %v3415_v56, %v3417_v52  ;;  %v3394_v59 = vadd.f32 %v3336_v45, %v3152_v58  ;;  %v3155_v56 = vadd.f32 %v3102_v37, %v6980_v29  ;;  %v3128_v21 = vpop.f32.mrf.mxu0  ;;  %v3162_v58 = vadd.f32 %v3120_v26, %v7012_v43 }
 0x44b   :  { %v3340_v49 = vpop.f32.mrf.mxu1 }
 0x44c   :  { %v3418_v46 = vmax.f32 %v3393_v17, %v3394_v59  ;;  %v3395_v63 = vadd.f32 %v3340_v49, %v3153_v7  ;;  %v3444_v28 = vadd.f32 %v7057_v51, %v3429_v42  ;;  %v3130_v23 = vpop.f32.mrf.mxu0  ;;  %v3163_v49 = vadd.f32 %v3122_v0, %v7014_v50  ;;  %v4722_v0 = vld [vmem:[%s7147_s7 + $0x30] sm:$0xff]  }
 0x44d   :  { %v3342_v1 = vpop.f32.mrf.mxu1  ;;  %v3166_v50 = vadd.f32 %v3130_v23, %v7025_v30 }
 0x44e   :  { %v3430_v33 = vmax.f32 %v3416_v9, %v3418_v46  ;;  %v3396_v44 = vadd.f32 %v3342_v1, %v3154_v12  ;;  %v3452_v31 = vmax.f32 %v3444_v28, 0.0  ;;  %v3164_v46 = vadd.f32 %v3124_v27, %v7017_v32  ;;  %v3132_v1 = vpop.f32.mrf.mxu0 }
 0x44f   :  { %v3344_v55 = vpop.f32.mrf.mxu1  ;;  %v2926_v28 = vadd.f32 %v7031_v11, %v6882_v4 }
 0x450   :  { %v3419_v22 = vmax.f32 %v3395_v63, %v3396_v44  ;;  %v3445_v36 = vadd.f32 %v7057_v51, %v3430_v33  ;;  %v3397_v48 = vadd.f32 %v3344_v55, %v3155_v56  ;;  %v2925_v33 = vadd.f32 %v7029_v47, %v6877_v61 }
 0x451   :  { %v3346_v14 = vpop.f32.mrf.mxu1  ;;  %v3165_v63 = vadd.f32 %v3128_v21, %v7022_v15 }
 0x452   :  { %v3398_v53 = vadd.f32 %v3346_v14, %v3156_v40  ;;  %v3453_v5 = vmax.f32 %v3445_v36, 0.0  ;;  %v3134_v36 = vpop.f32.mrf.mxu0 }
 0x453   :  { %v3350_v57 = vpop.f32.mrf.mxu1 }
 0x454   :  { %v3420_v3 = vmax.f32 %v3397_v48, %v3398_v53  ;;  %v4424_v60 = vpack.c.bf16 %v3453_v5, %v3452_v31  ;;  %v3399_v29 = vadd.f32 %v3350_v57, %v3157_v38  ;;  %v3167_v48 = vadd.f32 %v3132_v1, %v2925_v33 }
 0x455   :  { %v3352_v9 = vpop.f32.mrf.mxu1  ;;  %v3168_v53 = vadd.f32 %v3134_v36, %v2926_v28 }
 0x456   :  { %v3400_v37 = vadd.f32 %v3352_v9, %v3158_v62  ;;  %3817 = vmatprep.mubr.bf16.mxu0 %v4424_v60  ;;  %v4721_v62 = vld [vmem:[%s7147_s7 + $0x38] sm:$0xff]   ;;  %v4807_v60 = vmov 0.0   ;;  %v4724_v9 = vld [vmem:[%s7147_s7 + $0x20] sm:$0xff]  }
 0x457   :  { %v3354_v10 = vpop.f32.mrf.mxu1  ;;  %3818 = vmatmul.mubr.bf16.vlgmr.msra.gmra.mxu0 %v4423_v13  ;;  %4480 = vmatprep.subr.bf16.mxu0 %v4807_v60 }
 0x458   :  { %v3421_v34 = vmax.f32 %v3399_v29, %v3400_v37  ;;  %v3401_v52 = vadd.f32 %v3354_v10, %v3159_v25  ;;  %4481 = vmatpush3.bf16.msra.mxu0 %v4721_v62  ;;  %v4725_v29 = vld [vmem:[%s7147_s7 + $0x18] sm:$0xff]   ;;  %v4726_v37 = vld [vmem:[%s7147_s7 + $0x10] sm:$0xff]   ;;  %v4727_v10 = vld [vmem:[%s7147_s7 + $0x8] sm:$0xff]   ;;  %4496 = vmatprep.mubr.msk.bf16.mxu0 %vm4808_vm2, %v4807_v60 }
 0x459   :  { %v3356_v41 = vpop.f32.mrf.mxu1  ;;  %4482 = vmatprep.subr.bf16.mxu0 %v4807_v60 }
 0x45a   :  { %v3431_v19 = vmax.f32 %v3419_v22, %v3421_v34  ;;  %v3402_v20 = vadd.f32 %v3356_v41, %v3160_v8  ;;  %v4728_v34 = vld [vmem:[%s7147_s7] sm:$0xff]  }
 0x45b   :  { %v3360_v16 = vpop.f32.mrf.mxu1 }
 0x45c   :  { %v3422_v18 = vmax.f32 %v3401_v52, %v3402_v20  ;;  %v3446_v13 = vadd.f32 %v7057_v51, %v3431_v19  ;;  %v3403_v17 = vadd.f32 %v3360_v16, %v3161_v35  ;;  %4483 = vmatpush3.bf16.msra.mxu0 %v4722_v0  ;;  %v4346_v16 = vld [vmem:[%s7146_s6] ss:$0 sm:$0xff]  ;;  %s4809_s6 = smov [#allocation6]  }
 0x45d   :  { %v3362_v45 = vpop.f32.mrf.mxu1  ;;  %4484 = vmatprep.subr.bf16.mxu0 %v4807_v60 }
 0x45e   :  { %v3432_v42 = vmax.f32 %v3420_v3, %v3422_v18  ;;  %v3404_v2 = vadd.f32 %v3362_v45, %v3162_v58  ;;  %v3454_v12 = vmax.f32 %v3446_v13, 0.0 }
 0x45f   :  { %v3364_v24 = vpop.f32.mrf.mxu1 }
 0x460   :  { %v3447_v59 = vadd.f32 %v7057_v51, %v3432_v42  ;;  %v3423_v39 = vmax.f32 %v3403_v17, %v3404_v2  ;;  %v3405_v54 = vadd.f32 %v3364_v24, %v3163_v49  ;;  %v4383_v24 = vld [vmem:[%s7148_s8] ss:$0 sm:$0xff]  ;;  %s4007_s8 = sshll.u32 %s4809_s6, 4  ;;  %s4008_s8 = int_to_ptr.vmem [resolvable:$true] %s4007_s8 }
 0x461   :  { %v3366_v7 = vpop.f32.mrf.mxu1  ;;  %s4779_s22 = scalar_lea.vmem %s4008_s8, 256  ;;  %p4784_p6 = scmp.lt.s32.totalorder %s4008_s8, %s4008_s8 }
 0x462   :  { %v3455_v6 = vmax.f32 %v3447_v59, 0.0  ;;  %v3406_v43 = vadd.f32 %v3366_v7, %v3164_v46  ;;  %p4780_p5 = scmp.ne.s32.totalorder %s4008_s8, %s4779_s22  ;;  %p4785_p7 = scmp.lt.s32.totalorder %s4779_s22, %s4779_s22 }
 0x463   :  { %v3370_v44 = vpop.f32.mrf.mxu1 }
 0x464   :  { %v4425_v55 = vpack.c.bf16 %v3455_v6, %v3454_v12  ;;  %v3424_v22 = vmax.f32 %v3405_v54, %v3406_v43  ;;  %v3407_v56 = vadd.f32 %v3370_v44, %v3165_v63  ;;  %p4786_p8 = por %p4785_p7, %p4784_p6 }
 0x465   :  { %v3372_v32 = vpop.f32.mrf.mxu1 }
 0x466   :  { %v3408_v40 = vadd.f32 %v3372_v32, %v3166_v50  ;;  %p4787_p9 = pnand %p4786_p8, %p4780_p5 }
 0x467   :  { %v3374_v26 = vpop.f32.mrf.mxu1 }
 0x468   :  { %v3425_v14 = vmax.f32 %v3407_v56, %v3408_v40  ;;  %v3409_v47 = vadd.f32 %v3374_v26, %v3167_v48 }
 0x469   :  { %v3376_v31 = vpop.f32.mrf.mxu1 }
 0x46a   :  { %v3433_v61 = vmax.f32 %v3423_v39, %v3425_v14  ;;  %v3410_v15 = vadd.f32 %v3376_v31, %v3168_v53 }
 0x46c   :  { %v3426_v5 = vmax.f32 %v3409_v47, %v3410_v15  ;;  %v3448_v4 = vadd.f32 %v7057_v51, %v3433_v61 }
 0x46e   :  { %v3434_v57 = vmax.f32 %v3424_v22, %v3426_v5  ;;  %v3456_v3 = vmax.f32 %v3448_v4, 0.0 }
 0x470   :  { %v3449_v11 = vadd.f32 %v7057_v51, %v3434_v57  ;;  %v4723_v51 = vld [vmem:[%s7147_s7 + $0x28] sm:$0xff]  }
 0x471   :  { %4485 = vmatpush3.bf16.msra.mxu0 %v4723_v51 }
 0x472   :  { %v3457_v30 = vmax.f32 %v3449_v11, 0.0  ;;  %4486 = vmatprep.subr.bf16.mxu0 %v4807_v60 }
 0x474   :  { %v4426_v38 = vpack.c.bf16 %v3457_v30, %v3456_v3 }
 0x475   :  { %4487 = vmatpush3.bf16.msra.mxu0 %v4724_v9 }
 0x476   :  { %3858 = vmatprep.mubr.bf16.mxu1 %v4426_v38  ;;  %4488 = vmatprep.subr.bf16.mxu0 %v4807_v60 }
 0x477   :  { %3859 = vmatmul.mubr.bf16.vlgmr.msra.gmra.mxu1 %v4425_v55 }
 0x479   :  { %4489 = vmatpush3.bf16.msra.mxu0 %v4725_v29 }
 0x47a   :  { %4490 = vmatprep.subr.bf16.mxu0 %v4807_v60 }
 0x47d   :  { %4491 = vmatpush3.bf16.msra.mxu0 %v4726_v37 }
 0x47e   :  { %4492 = vmatprep.subr.bf16.mxu0 %v4807_v60 }
 0x481   :  { %4493 = vmatpush3.bf16.msra.mxu0 %v4727_v10 }
 0x482   :  { %4494 = vmatprep.subr.bf16.mxu0 %v4807_v60 }
 0x485   :  { %4495 = vmatpush3.bf16.msra.mxu0 %v4728_v34 }
 0x517   :  { %v4443_v25 = vpop.f32.mrf.mxu0 }
 0x519   :  { %v4444_v8 = vpop.f32.mrf.mxu0 }
 0x51a   :  { %v4445_v20 = vadd.f32 %v4444_v8, %v4443_v25 }
 0x51b   :  { %v4446_v27 = vpop.f32.mrf.mxu0 }
 0x51c   :  { %v3820_v45 = vadd.f32 %v4445_v20, %v4346_v16 }
 0x51d   :  { %v4447_v41 = vpop.f32.mrf.mxu0 }
 0x51e   :  { %v4448_v21 = vadd.f32 %v4447_v41, %v4446_v27 }
 0x520   :  { %v3823_v13 = vadd.f32 %v4448_v21, %v4346_v16 }
 0x537   :  { %v4465_v19 = vpop.f32.mrf.mxu1 }
 0x539   :  { %v4466_v52 = vpop.f32.mrf.mxu1 }
 0x53a   :  { %v4467_v35 = vadd.f32 %v4466_v52, %v4465_v19 }
 0x53b   :  { %v4468_v18 = vpop.f32.mrf.mxu1 }
 0x53c   :  { %v3861_v17 = vadd.f32 %v4467_v35, %v3820_v45 }
 0x53d   :  { %v4469_v58 = vpop.f32.mrf.mxu1 }
 0x53e   :  { %v4470_v42 = vadd.f32 %v4469_v58, %v4468_v18 }
 0x540   :  { %v3864_v2 = vadd.f32 %v4470_v42, %v3823_v13 }
 0x542   :  { %v3867_v23 = vpack.c.bf16 %v3864_v2, %v3861_v17 }
 0x544   :  { %4497 = vmatmul.mubr.bf16.vlgmr.msra.gmra.mxu0 %v3867_v23 }
 0x604   :  { %v3973_v59 = vpop.f32.mrf.mxu0 }
 0x605   :  { %v3974_v39 = vadd.f32 %v4383_v24, %v3973_v59 }
 0x606   :  { %v4498_v49 = vpop.f32.mrf.mxu0 }
 0x607   :  { %3980 = vmax.xlane.f32.xlu0 %v3974_v39 }
 0x608   :  { %v3976_v46 = vpop.f32.mrf.mxu0 }
 0x609   :  { %v3977_v7 = vadd.f32 %v4383_v24, %v3976_v46 }
 0x60a   :  { %v4499_v12 = vpop.f32.mrf.mxu0 }
 0x60b   :  { %3982 = vmax.xlane.f32.xlu0 %v3977_v7 }
 0x690   :  { %v3981_v6 = vpop.xlane.xlu0 %3980 }
 0x691   :  { %v3984_v54 = vsub.f32 %v3974_v39, %v3981_v6 }
 0x693   :  { %v3986_v43 = vmul.f32 1.442695, %v3984_v54 }
 0x694   :  { %v3983_v1 = vpop.xlane.xlu0 %3982 }
 0x695   :  { %v3985_v33 = vsub.f32 %v3977_v7, %v3983_v1  ;;  %4729 = vpow2.f32 %v3986_v43 }
 0x697   :  { %v3988_v63 = vmul.f32 1.442695, %v3985_v33 }
 0x699   :  { %4731 = vpow2.f32 %v3988_v63 }
 0x6a2   :  { %v4730_v44 = vpop.eup %4729 }
 0x6a3   :  { %3990 = vadd.xlane.f32.xlu1 %v4730_v44 }
 0x6a6   :  { %v4732_v28 = vpop.eup %4731 }
 0x6a7   :  { %3992 = vadd.xlane.f32.xlu1 %v4732_v28 }
 0x72c   :  { %v3991_v55 = vpop.xlane.xlu1 %3990 }
 0x72d   :  { %4733 = vlog2.f32 %v3991_v55 }
 0x730   :  { %v3993_v22 = vpop.xlane.xlu1 %3992 }
 0x731   :  { %4735 = vlog2.f32 %v3993_v22 }
 0x73a   :  { %v4734_v50 = vpop.eup %4733 }
 0x73b   :  { %v3995_v32 = vmul.f32 0.6931472, %v4734_v50 }
 0x73d   :  { %v3998_v56 = vsub.f32 %v3984_v54, %v3995_v32 }
 0x73e   :  { %v4736_v40 = vpop.eup %4735 }
 0x73f   :  { %v3997_v36 = vmul.f32 0.6931472, %v4736_v40  ;;  %4000 = vst [vmem:[#allocation6] sm:$0xff] %v3998_v56 }
 0x741   :  { %v3999_v26 = vsub.f32 %v3985_v33, %v3997_v36 }
 0x743   :  { %4001 = vst [vmem:[#allocation6 + $0x8] sm:$0xff] %v3999_v26 }
 0x744   :  { %4790 = shalt.err (!%p4787_p9)
}
 0x745   :  { %4013 = dma.vmem_to_hbm [thread:$0]  %s4008_s8, 256, %s7149_s9, [#allocation5], %s4804_s12, %s4804_s12, %s4805_s13  }
 0x746   :  { %4801 = dma.done.wait [#allocation5], 256  }
 0x747   :  { %4802 = vsyncadd [#allocation5], 4294967040 }
 0x748   :  { %4017 = vsyncpa [#allocation4], 1 }
 0x749   :  { %4018 = vsyncpa [#allocation5], 1 }

</bundles_post_ra>
